<compile_context>
chip_gen: v7x
topology: tpu7x:2x2x1
jax: 0.10.0
libtpu: 0.0.40
codegen_flags: <defaults>
</compile_context>

<pallas_src>
import functools

import jax
import jax.numpy as jnp
from jax import lax
from jax.experimental import pallas as pl
from jax.experimental.pallas import tpu as pltpu


_PARALLEL_N = pltpu.CompilerParams(dimension_semantics=("parallel",))


# ----------------------------- fused StdConv2d -----------------------------

def _conv_kernel(x_ref, w_ref, o_ref, *, row_offsets, rows, csize):
    """Per-sample convolution as an in-kernel tap loop on the MXU.

    x_ref : (R, Cf)        flattened padded (or space-to-depth) activation slab
    w_ref : (T, csize, Co) per-tap weight slabs (resident across the grid)
    o_ref : (rows, Co)     "wide" output rows (row stride = padded width)
    """
    acc = None
    for t, roff in enumerate(row_offsets):
        a = x_ref[pl.ds(roff, rows), pl.ds(0, csize)]
        part = jnp.dot(a, w_ref[t], preferred_element_type=jnp.float32)
        acc = part if acc is None else acc + part
    o_ref[...] = acc.astype(o_ref.dtype)


def conv2d(x, wp):
    """Weight-standardized conv (no bias) on NHWC bf16 input.

    Returns (y_wide, wo): y_wide is (N, Ho, Wq, Cout); only columns [0, wo)
    of each row are valid.  The following GroupNorm consumes the wide layout
    directly and drops the garbage columns for free.
    """
    K, p, stride = wp['k'], wp['pad'], wp['stride']
    cin, cout = wp['cin'], wp['cout']
    N, H, W, C = x.shape
    assert C == cin

    if K == 1 and stride == 2:
        # 1x1 strided conv == 1x1 conv on the subsampled activation.
        x = x[:, ::2, ::2, :]
        N, H, W, C = x.shape
        stride = 1

    if stride == 1:
        Hp, Wp = H + 2 * p, W + 2 * p
        Ho, Wo = Hp - K + 1, Wp - K + 1
        Wq = Wp
        rows = Ho * Wq
        max_off = (K - 1) * Wp + (K - 1)
        Hb = Hp
        while Hb * Wp < rows + max_off:           # a few extra zero rows so the
            Hb += 1                               # wide rows never read OOB
        if p > 0 or Hb != Hp:
            x = jnp.pad(x, ((0, 0), (p, p + Hb - Hp), (p, p), (0, 0)))
        xf = x.reshape(N, Hb * Wp, C)
        cf = C
        csize = C
        row_offsets = [di * Wp + dj for di in range(K) for dj in range(K)]
    else:
        # stride-2 KxK conv via space-to-depth: every tap group becomes a
        # contiguous slice of the flattened slab (no strided loads).
        Hp, Wp = H + 2 * p, W + 2 * p
        Ho, Wo = (Hp - K) // 2 + 1, (Wp - K) // 2 + 1
        We = Wp + (Wp % 2)
        Wq = We // 2
        rows = Ho * Wq
        nq = (K + 1) // 2
        max_off = (nq - 1) * Wq + (nq - 1)
        Hb = Hp + (Hp % 2)
        while (Hb // 2) * Wq < rows + max_off:
            Hb += 2
        x = jnp.pad(x, ((0, 0), (p, p + Hb - Hp), (p, p + We - Wp), (0, 0)))
        xs = x.reshape(N, Hb // 2, 2, Wq, 2, C).transpose(0, 1, 3, 2, 4, 5)
        xf = xs.reshape(N, (Hb // 2) * Wq, 4 * C)
        cf = 4 * C
        csize = 4 * C
        row_offsets = [qi * Wq + qj for qi in range(nq) for qj in range(nq)]

    R = xf.shape[1]
    T = len(row_offsets)
    kern = functools.partial(_conv_kernel, row_offsets=row_offsets,
                             rows=rows, csize=csize)
    out = pl.pallas_call(
        kern,
        out_shape=jax.ShapeDtypeStruct((N, rows, cout), jnp.bfloat16),
        grid=(N,),
        in_specs=[pl.BlockSpec((None, R, cf), lambda n: (n, 0, 0)),
                  pl.BlockSpec((T, csize, cout), lambda n: (0, 0, 0))],
        out_specs=pl.BlockSpec((None, rows, cout), lambda n: (n, 0, 0)),
        compiler_params=_PARALLEL_N,
    )(xf, wp['mat'])
    return out.reshape(N, Ho, Wq, cout), Wo


# ------------------- fused GroupNorm (+ReLU) (+residual add) -------------------

def _gn_kernel(*refs, wo, eps, relu, has_res, has_groups, inv_count):
    x_ref = refs[0]
    idx = 1
    if has_groups:
        mg_ref, mgt_ref = refs[idx], refs[idx + 1]
        idx += 2
    g_ref, b_ref = refs[idx], refs[idx + 1]
    idx += 2
    res_ref = refs[idx] if has_res else None
    o_ref = refs[-1]

    x = x_ref[:, pl.ds(0, wo), :].astype(jnp.float32)            # (Ho, Wo, C)

    def group_reduce(v):                                         # (1, C) -> (1, C)
        if not has_groups:
            return v
        g = jnp.dot(v, mg_ref[...], preferred_element_type=jnp.float32)
        return jnp.dot(g, mgt_ref[...], preferred_element_type=jnp.float32)

    s1 = jnp.sum(jnp.sum(x, axis=0), axis=0, keepdims=True)      # (1, C)
    mean = group_reduce(s1) * inv_count                          # per-group mean
    xc = x - mean
    s2 = jnp.sum(jnp.sum(xc * xc, axis=0), axis=0, keepdims=True)
    var = group_reduce(s2) * inv_count                           # centered (biased)
    scale = lax.rsqrt(var + eps) * g_ref[...]
    y = xc * scale + b_ref[...]
    if has_res:
        y = y + res_ref[...].astype(jnp.float32)
    if relu:
        y = jnp.maximum(y, 0.0)
    o_ref[...] = y.astype(o_ref.dtype)


def group_norm(x_wide, wo, gamma, beta, groups, eps, relu, residual=None):
    """Single-pass GroupNorm on a (possibly wide) conv output.

    x_wide: (N, Ho, Wq, C) bf16 where only columns [0, wo) are valid.
    Output: (N, Ho, wo, C) bf16.
    """
    N, Ho, Wq, C = x_wide.shape
    cg = C // groups
    has_groups = cg > 1
    has_res = residual is not None
    gamma2 = gamma.reshape(1, C).astype(jnp.float32)
    beta2 = beta.reshape(1, C).astype(jnp.float32)
    inv_count = 1.0 / float(Ho * wo * cg)

    in_specs = [pl.BlockSpec((None, Ho, Wq, C), lambda n: (n, 0, 0, 0))]
    args = [x_wide]
    if has_groups:
        gid = jnp.arange(C, dtype=jnp.int32) // cg
        mg = (gid[:, None] == jnp.arange(groups, dtype=jnp.int32)[None, :]
              ).astype(jnp.float32)                              # (C, G) membership
        in_specs += [pl.BlockSpec((C, groups), lambda n: (0, 0)),
                     pl.BlockSpec((groups, C), lambda n: (0, 0))]
        args += [mg, jnp.transpose(mg)]
    in_specs += [pl.BlockSpec((1, C), lambda n: (0, 0)),
                 pl.BlockSpec((1, C), lambda n: (0, 0))]
    args += [gamma2, beta2]
    if has_res:
        in_specs.append(pl.BlockSpec((None, Ho, wo, C), lambda n: (n, 0, 0, 0)))
        args.append(residual)

    kern = functools.partial(_gn_kernel, wo=wo, eps=eps, relu=relu,
                             has_res=has_res, has_groups=has_groups,
                             inv_count=inv_count)
    out = pl.pallas_call(
        kern,
        out_shape=jax.ShapeDtypeStruct((N, Ho, wo, C), jnp.bfloat16),
        grid=(N,),
        in_specs=in_specs,
        out_specs=pl.BlockSpec((None, Ho, wo, C), lambda n: (n, 0, 0, 0)),
        compiler_params=_PARALLEL_N,
    )(*args)
    return out


# ----------------------------- MaxPool2d(3, stride=2) -----------------------------

def _maxpool_kernel(x_ref, o_ref, *, taps, Ho, Wo, C):
    m = None
    for (ro, co, cho) in taps:
        v = x_ref[pl.ds(ro, Ho), pl.ds(co, Wo), pl.ds(cho, C)]
        m = v if m is None else jnp.maximum(m, v)
    o_ref[...] = m


def maxpool_3x3_s2(x):
    """MaxPool2d(kernel_size=3, stride=2, padding=0) on NHWC, one read + one write."""
    N, H, W, C = x.shape
    Ho, Wo = (H - 3) // 2 + 1, (W - 3) // 2 + 1
    He, We = H + (H % 2), W + (W % 2)
    if (He, We) != (H, W):
        x = jnp.pad(x, ((0, 0), (0, He - H), (0, We - W), (0, 0)))
    H2, W2 = He // 2, We // 2
    xs = x.reshape(N, H2, 2, W2, 2, C).transpose(0, 1, 3, 2, 4, 5)
    xs = xs.reshape(N, H2, W2, 4 * C)
    taps = [(di // 2, dj // 2, ((di % 2) * 2 + (dj % 2)) * C)
            for di in range(3) for dj in range(3)]
    kern = functools.partial(_maxpool_kernel, taps=taps, Ho=Ho, Wo=Wo, C=C)
    return pl.pallas_call(
        kern,
        out_shape=jax.ShapeDtypeStruct((N, Ho, Wo, C), x.dtype),
        grid=(N,),
        in_specs=[pl.BlockSpec((None, H2, W2, 4 * C), lambda n: (n, 0, 0, 0))],
        out_specs=pl.BlockSpec((None, Ho, Wo, C), lambda n: (n, 0, 0, 0)),
        compiler_params=_PARALLEL_N,
    )(xs)


# ----------------------------- weight preparation -----------------------------

def _std_weight(w):
    # StdConv2d: torch.var_mean(w, dim=[1,2,3], unbiased=False); eps = 1e-5
    m = jnp.mean(w, axis=(1, 2, 3), keepdims=True)
    v = jnp.mean(jnp.square(w - m), axis=(1, 2, 3), keepdims=True)
    return (w - m) / jnp.sqrt(v + 1e-5)


def _prep_conv(w, pad, stride):
    """Hoisted once per parameter set: weight-standardize + lay the filter out as
    per-tap (or per-parity-group for stride-2) bf16 matmul slabs."""
    cout, cin, K, _ = w.shape
    ws = _std_weight(w.astype(jnp.float32))
    ws = jnp.transpose(ws, (2, 3, 1, 0))                        # (K, K, cin, cout)
    if stride == 2 and K > 1:
        nq = (K + 1) // 2
        mats = []
        for qi in range(nq):
            for qj in range(nq):
                slabs = []
                for pi in range(2):
                    for pj in range(2):
                        di, dj = 2 * qi + pi, 2 * qj + pj
                        if di < K and dj < K:
                            slabs.append(ws[di, dj])
                        else:
                            slabs.append(jnp.zeros((cin, cout), jnp.float32))
                mats.append(jnp.concatenate(slabs, axis=0))     # (4*cin, cout)
        mat = jnp.stack(mats, axis=0)                           # (nq*nq, 4*cin, cout)
    else:
        mat = ws.reshape(K * K, cin, cout)                      # (K*K, cin, cout)
    return {'mat': mat.astype(jnp.bfloat16), 'k': K, 'pad': pad,
            'stride': stride, 'cin': cin, 'cout': cout}


# ----------------------------- ResNetV2 model -----------------------------

def preact_bottleneck(x, unit):
    if 'proj' in unit:
        rw, rwo = conv2d(x, unit['proj'])
        residual = group_norm(rw, rwo, unit['gnp_g'], unit['gnp_b'],
                              groups=unit['cout'], eps=1e-5, relu=False)
    else:
        residual = x
    yw, wo = conv2d(x, unit['c1'])
    y = group_norm(yw, wo, unit['g1'], unit['b1'], groups=32, eps=1e-6, relu=True)
    yw, wo = conv2d(y, unit['c2'])
    y = group_norm(yw, wo, unit['g2'], unit['b2'], groups=32, eps=1e-6, relu=True)
    yw, wo = conv2d(y, unit['c3'])
    # gn3 + residual add + final ReLU fused into a single pass
    return group_norm(yw, wo, unit['g3'], unit['b3'], groups=32, eps=1e-6,
                      relu=True, residual=residual)


def resnetv2_forward(x_nchw, params):
    b, c, in_size, _ = x_nchw.shape
    x = jnp.transpose(x_nchw, (0, 2, 3, 1)).astype(jnp.bfloat16)   # -> NHWC bf16
    # root: StdConv2d(3, width, 7, stride=2, pad=3) -> GN(32) -> ReLU
    xw, wo = conv2d(x, params['root']['conv'])
    x = group_norm(xw, wo, params['root']['gn_g'], params['root']['gn_b'],
                   groups=32, eps=1e-6, relu=True)
    features = [x]
    x = maxpool_3x3_s2(x)

    blocks = params['body']
    for i in range(len(blocks) - 1):
        for unit in blocks[i]:
            x = preact_bottleneck(x, unit)
        right_size = int(in_size / 4 / (i + 1))
        if x.shape[1] != right_size:
            pad_h = right_size - x.shape[1]
            pad_w = right_size - x.shape[2]
            assert 0 < pad_h < 3, f"x {x.shape} should {right_size}"
            feat = jnp.pad(x, ((0, 0), (0, pad_h), (0, pad_w), (0, 0)))
        else:
            feat = x
        features.append(feat)
    for unit in blocks[-1]:
        x = preact_bottleneck(x, unit)

    out = jnp.transpose(x, (0, 3, 1, 2)).astype(jnp.float32)       # -> NCHW f32
    feats_nchw = [jnp.transpose(f, (0, 3, 1, 2)).astype(jnp.float32)
                  for f in features]
    return out, feats_nchw[::-1]


# ----------------------------- deterministic params -----------------------------

def _init_conv(key, cout, cin, k):
    return 0.1 * jax.random.normal(key, (cout, cin, k, k), jnp.float32)


def _init_gn(key, c):
    k1, k2 = jax.random.split(key)
    gamma = 1.0 + 0.1 * jax.random.normal(k1, (c,), jnp.float32)
    beta = 0.1 * jax.random.normal(k2, (c,), jnp.float32)
    return gamma, beta


def init_resnetv2_params(key, block_units, width_factor):
    width = int(64 * width_factor)
    keys = iter(jax.random.split(key, 512))
    params = {'root': {}}
    params['root']['conv'] = _init_conv(next(keys), width, 3, 7)
    params['root']['gn_g'], params['root']['gn_b'] = _init_gn(next(keys), width)

    cfgs = [(width, width * 4, width, 1),
            (width * 4, width * 8, width * 2, 2),
            (width * 8, width * 16, width * 4, 2)]
    body = []
    for bi, (cin0, cout, cmid, stride0) in enumerate(cfgs):
        units = []
        for u in range(block_units[bi]):
            cin = cin0 if u == 0 else cout
            stride = stride0 if u == 0 else 1
            unit = {'stride': stride, 'cout': cout}
            unit['w1'] = _init_conv(next(keys), cmid, cin, 1)
            unit['g1'], unit['b1'] = _init_gn(next(keys), cmid)
            unit['w2'] = _init_conv(next(keys), cmid, cmid, 3)
            unit['g2'], unit['b2'] = _init_gn(next(keys), cmid)
            unit['w3'] = _init_conv(next(keys), cout, cmid, 1)
            unit['g3'], unit['b3'] = _init_gn(next(keys), cout)
            if stride != 1 or cin != cout:
                unit['proj_w'] = _init_conv(next(keys), cout, cin, 1)
                unit['gnp_g'], unit['gnp_b'] = _init_gn(next(keys), cout)
            units.append(unit)
        body.append(units)
    params['body'] = body
    return params, width


def prepare_resnetv2_params(params):
    """Hoist weight standardization / layout transforms out of the forward path."""
    p = {'root': {'conv': _prep_conv(params['root']['conv'], pad=3, stride=2),
                  'gn_g': params['root']['gn_g'],
                  'gn_b': params['root']['gn_b']}}
    body = []
    for block in params['body']:
        units = []
        for u in block:
            s = u['stride']
            pu = {'stride': s, 'cout': u['cout'],
                  'c1': _prep_conv(u['w1'], pad=0, stride=1),
                  'c2': _prep_conv(u['w2'], pad=1, stride=s),
                  'c3': _prep_conv(u['w3'], pad=0, stride=1),
                  'g1': u['g1'], 'b1': u['b1'],
                  'g2': u['g2'], 'b2': u['b2'],
                  'g3': u['g3'], 'b3': u['b3']}
            if 'proj_w' in u:
                pu['proj'] = _prep_conv(u['proj_w'], pad=0, stride=s)
                pu['gnp_g'] = u['gnp_g']
                pu['gnp_b'] = u['gnp_b']
            units.append(pu)
        body.append(units)
    p['body'] = body
    return p


# ----------------------------- main -----------------------------

if __name__ == "__main__":
    key = jax.random.PRNGKey(0)
    kp, kx = jax.random.split(key)

    block_units = (1, 1, 1)     # one PreActBottleneck per stage (small synthetic config)
    width_factor = 0.5          # width = 32 (keeps GroupNorm(32, ...) valid)
    raw_params, width = init_resnetv2_params(kp, block_units, width_factor)
    params = prepare_resnetv2_params(raw_params)   # hoisted once per parameter set

    # PyTorch-style NCHW input: batch=2, 3 channels, 32x32 spatial.
    x = jax.random.normal(kx, (2, 3, 32, 32), jnp.float32)

    out, feats = resnetv2_forward(x, params)
    out = jax.block_until_ready(out)
    feats = [jax.block_until_ready(f) for f in feats]

    # Sanity: expected shapes for in_size=32, width=32
    assert out.shape == (2, 16 * width, 2, 2), out.shape
    assert feats[0].shape == (2, 8 * width, 4, 4), feats[0].shape
    assert feats[1].shape == (2, 4 * width, 8, 8), feats[1].shape
    assert feats[2].shape == (2, width, 16, 16), feats[2].shape
    assert bool(jnp.all(jnp.isfinite(out)))

    print("KERNEL_OK")
</pallas_src>

<mosaic_0001>
module attributes {stable_mosaic.version = 11 : i64} {
  func.func @_conv_kernel(%arg0: i32, %arg1: memref<1x380x12xbf16, #tpu.memory_space<vmem>>, %arg2: memref<16x12x32xbf16, #tpu.memory_space<vmem>>, %arg3: memref<1x304x32xbf16, #tpu.memory_space<vmem>>) attributes {dimension_semantics = [#tpu.dimension_semantics<parallel>], iteration_bounds = array<i64: 2>, scalar_prefetch = 0 : i64, scratch_operands = 0 : i64, tpu.core_type = #tpu.core_type<tc>, window_params = [{transform_indices = @transform_0, window_bounds = array<i64: 1, 380, 12>}, {pipeline_mode = #tpu.pipeline_mode<synchronous>, transform_indices = @transform_1, window_bounds = array<i64: 16, 12, 32>}, {transform_indices = @transform_2, window_bounds = array<i64: 1, 304, 32>}]} {
    %c0 = arith.constant 0 : index
    %c0_0 = arith.constant 0 : index
    %c0_1 = arith.constant 0 : index
    %0 = vector.load %arg1[%c0, %c0_0, %c0_1] : memref<1x380x12xbf16, #tpu.memory_space<vmem>>, vector<1x304x12xbf16>
    %1 = vector.shape_cast %0 : vector<1x304x12xbf16> to vector<304x12xbf16>
    %c0_2 = arith.constant 0 : index
    %c0_3 = arith.constant 0 : index
    %c0_4 = arith.constant 0 : index
    %2 = vector.load %arg2[%c0_2, %c0_3, %c0_4] : memref<16x12x32xbf16, #tpu.memory_space<vmem>>, vector<1x12x32xbf16>
    %3 = vector.shape_cast %2 : vector<1x12x32xbf16> to vector<12x32xbf16>
    %cst = arith.constant dense<0.000000e+00> : vector<304x32xf32>
    %4 = tpu.matmul %1, %3, %cst {dimension_numbers = #tpu.dot_dimension_numbers<[1], [0], [0], [1], [0, 0, 1, 1], [], []>} : vector<304x12xbf16>, vector<12x32xbf16>, vector<304x32xf32> -> vector<304x32xf32>
    %c0_5 = arith.constant 0 : index
    %c1 = arith.constant 1 : index
    %c0_6 = arith.constant 0 : index
    %5 = vector.load %arg1[%c0_5, %c1, %c0_6] : memref<1x380x12xbf16, #tpu.memory_space<vmem>>, vector<1x304x12xbf16>
    %6 = vector.shape_cast %5 : vector<1x304x12xbf16> to vector<304x12xbf16>
    %c1_7 = arith.constant 1 : index
    %c0_8 = arith.constant 0 : index
    %c0_9 = arith.constant 0 : index
    %7 = vector.load %arg2[%c1_7, %c0_8, %c0_9] : memref<16x12x32xbf16, #tpu.memory_space<vmem>>, vector<1x12x32xbf16>
    %8 = vector.shape_cast %7 : vector<1x12x32xbf16> to vector<12x32xbf16>
    %cst_10 = arith.constant dense<0.000000e+00> : vector<304x32xf32>
    %9 = tpu.matmul %6, %8, %cst_10 {dimension_numbers = #tpu.dot_dimension_numbers<[1], [0], [0], [1], [0, 0, 1, 1], [], []>} : vector<304x12xbf16>, vector<12x32xbf16>, vector<304x32xf32> -> vector<304x32xf32>
    %10 = arith.addf %4, %9 : vector<304x32xf32>
    %c0_11 = arith.constant 0 : index
    %c2 = arith.constant 2 : index
    %c0_12 = arith.constant 0 : index
    %11 = vector.load %arg1[%c0_11, %c2, %c0_12] : memref<1x380x12xbf16, #tpu.memory_space<vmem>>, vector<1x304x12xbf16>
    %12 = vector.shape_cast %11 : vector<1x304x12xbf16> to vector<304x12xbf16>
    %c2_13 = arith.constant 2 : index
    %c0_14 = arith.constant 0 : index
    %c0_15 = arith.constant 0 : index
    %13 = vector.load %arg2[%c2_13, %c0_14, %c0_15] : memref<16x12x32xbf16, #tpu.memory_space<vmem>>, vector<1x12x32xbf16>
    %14 = vector.shape_cast %13 : vector<1x12x32xbf16> to vector<12x32xbf16>
    %cst_16 = arith.constant dense<0.000000e+00> : vector<304x32xf32>
    %15 = tpu.matmul %12, %14, %cst_16 {dimension_numbers = #tpu.dot_dimension_numbers<[1], [0], [0], [1], [0, 0, 1, 1], [], []>} : vector<304x12xbf16>, vector<12x32xbf16>, vector<304x32xf32> -> vector<304x32xf32>
    %16 = arith.addf %10, %15 : vector<304x32xf32>
    %c0_17 = arith.constant 0 : index
    %c3 = arith.constant 3 : index
    %c0_18 = arith.constant 0 : index
    %17 = vector.load %arg1[%c0_17, %c3, %c0_18] : memref<1x380x12xbf16, #tpu.memory_space<vmem>>, vector<1x304x12xbf16>
    %18 = vector.shape_cast %17 : vector<1x304x12xbf16> to vector<304x12xbf16>
    %c3_19 = arith.constant 3 : index
    %c0_20 = arith.constant 0 : index
    %c0_21 = arith.constant 0 : index
    %19 = vector.load %arg2[%c3_19, %c0_20, %c0_21] : memref<16x12x32xbf16, #tpu.memory_space<vmem>>, vector<1x12x32xbf16>
    %20 = vector.shape_cast %19 : vector<1x12x32xbf16> to vector<12x32xbf16>
    %cst_22 = arith.constant dense<0.000000e+00> : vector<304x32xf32>
    %21 = tpu.matmul %18, %20, %cst_22 {dimension_numbers = #tpu.dot_dimension_numbers<[1], [0], [0], [1], [0, 0, 1, 1], [], []>} : vector<304x12xbf16>, vector<12x32xbf16>, vector<304x32xf32> -> vector<304x32xf32>
    %22 = arith.addf %16, %21 : vector<304x32xf32>
    %c0_23 = arith.constant 0 : index
    %c19 = arith.constant 19 : index
    %c0_24 = arith.constant 0 : index
    %23 = vector.load %arg1[%c0_23, %c19, %c0_24] : memref<1x380x12xbf16, #tpu.memory_space<vmem>>, vector<1x304x12xbf16>
    %24 = vector.shape_cast %23 : vector<1x304x12xbf16> to vector<304x12xbf16>
    %c4 = arith.constant 4 : index
    %c0_25 = arith.constant 0 : index
    %c0_26 = arith.constant 0 : index
    %25 = vector.load %arg2[%c4, %c0_25, %c0_26] : memref<16x12x32xbf16, #tpu.memory_space<vmem>>, vector<1x12x32xbf16>
    %26 = vector.shape_cast %25 : vector<1x12x32xbf16> to vector<12x32xbf16>
    %cst_27 = arith.constant dense<0.000000e+00> : vector<304x32xf32>
    %27 = tpu.matmul %24, %26, %cst_27 {dimension_numbers = #tpu.dot_dimension_numbers<[1], [0], [0], [1], [0, 0, 1, 1], [], []>} : vector<304x12xbf16>, vector<12x32xbf16>, vector<304x32xf32> -> vector<304x32xf32>
    %28 = arith.addf %22, %27 : vector<304x32xf32>
    %c0_28 = arith.constant 0 : index
    %c20 = arith.constant 20 : index
    %c0_29 = arith.constant 0 : index
    %29 = vector.load %arg1[%c0_28, %c20, %c0_29] : memref<1x380x12xbf16, #tpu.memory_space<vmem>>, vector<1x304x12xbf16>
    %30 = vector.shape_cast %29 : vector<1x304x12xbf16> to vector<304x12xbf16>
    %c5 = arith.constant 5 : index
    %c0_30 = arith.constant 0 : index
    %c0_31 = arith.constant 0 : index
    %31 = vector.load %arg2[%c5, %c0_30, %c0_31] : memref<16x12x32xbf16, #tpu.memory_space<vmem>>, vector<1x12x32xbf16>
    %32 = vector.shape_cast %31 : vector<1x12x32xbf16> to vector<12x32xbf16>
    %cst_32 = arith.constant dense<0.000000e+00> : vector<304x32xf32>
    %33 = tpu.matmul %30, %32, %cst_32 {dimension_numbers = #tpu.dot_dimension_numbers<[1], [0], [0], [1], [0, 0, 1, 1], [], []>} : vector<304x12xbf16>, vector<12x32xbf16>, vector<304x32xf32> -> vector<304x32xf32>
    %34 = arith.addf %28, %33 : vector<304x32xf32>
    %c0_33 = arith.constant 0 : index
    %c21 = arith.constant 21 : index
    %c0_34 = arith.constant 0 : index
    %35 = vector.load %arg1[%c0_33, %c21, %c0_34] : memref<1x380x12xbf16, #tpu.memory_space<vmem>>, vector<1x304x12xbf16>
    %36 = vector.shape_cast %35 : vector<1x304x12xbf16> to vector<304x12xbf16>
    %c6 = arith.constant 6 : index
    %c0_35 = arith.constant 0 : index
    %c0_36 = arith.constant 0 : index
    %37 = vector.load %arg2[%c6, %c0_35, %c0_36] : memref<16x12x32xbf16, #tpu.memory_space<vmem>>, vector<1x12x32xbf16>
    %38 = vector.shape_cast %37 : vector<1x12x32xbf16> to vector<12x32xbf16>
    %cst_37 = arith.constant dense<0.000000e+00> : vector<304x32xf32>
    %39 = tpu.matmul %36, %38, %cst_37 {dimension_numbers = #tpu.dot_dimension_numbers<[1], [0], [0], [1], [0, 0, 1, 1], [], []>} : vector<304x12xbf16>, vector<12x32xbf16>, vector<304x32xf32> -> vector<304x32xf32>
    %40 = arith.addf %34, %39 : vector<304x32xf32>
    %c0_38 = arith.constant 0 : index
    %c22 = arith.constant 22 : index
    %c0_39 = arith.constant 0 : index
    %41 = vector.load %arg1[%c0_38, %c22, %c0_39] : memref<1x380x12xbf16, #tpu.memory_space<vmem>>, vector<1x304x12xbf16>
    %42 = vector.shape_cast %41 : vector<1x304x12xbf16> to vector<304x12xbf16>
    %c7 = arith.constant 7 : index
    %c0_40 = arith.constant 0 : index
    %c0_41 = arith.constant 0 : index
    %43 = vector.load %arg2[%c7, %c0_40, %c0_41] : memref<16x12x32xbf16, #tpu.memory_space<vmem>>, vector<1x12x32xbf16>
    %44 = vector.shape_cast %43 : vector<1x12x32xbf16> to vector<12x32xbf16>
    %cst_42 = arith.constant dense<0.000000e+00> : vector<304x32xf32>
    %45 = tpu.matmul %42, %44, %cst_42 {dimension_numbers = #tpu.dot_dimension_numbers<[1], [0], [0], [1], [0, 0, 1, 1], [], []>} : vector<304x12xbf16>, vector<12x32xbf16>, vector<304x32xf32> -> vector<304x32xf32>
    %46 = arith.addf %40, %45 : vector<304x32xf32>
    %c0_43 = arith.constant 0 : index
    %c38 = arith.constant 38 : index
    %c0_44 = arith.constant 0 : index
    %47 = vector.load %arg1[%c0_43, %c38, %c0_44] : memref<1x380x12xbf16, #tpu.memory_space<vmem>>, vector<1x304x12xbf16>
    %48 = vector.shape_cast %47 : vector<1x304x12xbf16> to vector<304x12xbf16>
    %c8 = arith.constant 8 : index
    %c0_45 = arith.constant 0 : index
    %c0_46 = arith.constant 0 : index
    %49 = vector.load %arg2[%c8, %c0_45, %c0_46] : memref<16x12x32xbf16, #tpu.memory_space<vmem>>, vector<1x12x32xbf16>
    %50 = vector.shape_cast %49 : vector<1x12x32xbf16> to vector<12x32xbf16>
    %cst_47 = arith.constant dense<0.000000e+00> : vector<304x32xf32>
    %51 = tpu.matmul %48, %50, %cst_47 {dimension_numbers = #tpu.dot_dimension_numbers<[1], [0], [0], [1], [0, 0, 1, 1], [], []>} : vector<304x12xbf16>, vector<12x32xbf16>, vector<304x32xf32> -> vector<304x32xf32>
    %52 = arith.addf %46, %51 : vector<304x32xf32>
    %c0_48 = arith.constant 0 : index
    %c39 = arith.constant 39 : index
    %c0_49 = arith.constant 0 : index
    %53 = vector.load %arg1[%c0_48, %c39, %c0_49] : memref<1x380x12xbf16, #tpu.memory_space<vmem>>, vector<1x304x12xbf16>
    %54 = vector.shape_cast %53 : vector<1x304x12xbf16> to vector<304x12xbf16>
    %c9 = arith.constant 9 : index
    %c0_50 = arith.constant 0 : index
    %c0_51 = arith.constant 0 : index
    %55 = vector.load %arg2[%c9, %c0_50, %c0_51] : memref<16x12x32xbf16, #tpu.memory_space<vmem>>, vector<1x12x32xbf16>
    %56 = vector.shape_cast %55 : vector<1x12x32xbf16> to vector<12x32xbf16>
    %cst_52 = arith.constant dense<0.000000e+00> : vector<304x32xf32>
    %57 = tpu.matmul %54, %56, %cst_52 {dimension_numbers = #tpu.dot_dimension_numbers<[1], [0], [0], [1], [0, 0, 1, 1], [], []>} : vector<304x12xbf16>, vector<12x32xbf16>, vector<304x32xf32> -> vector<304x32xf32>
    %58 = arith.addf %52, %57 : vector<304x32xf32>
    %c0_53 = arith.constant 0 : index
    %c40 = arith.constant 40 : index
    %c0_54 = arith.constant 0 : index
    %59 = vector.load %arg1[%c0_53, %c40, %c0_54] : memref<1x380x12xbf16, #tpu.memory_space<vmem>>, vector<1x304x12xbf16>
    %60 = vector.shape_cast %59 : vector<1x304x12xbf16> to vector<304x12xbf16>
    %c10 = arith.constant 10 : index
    %c0_55 = arith.constant 0 : index
    %c0_56 = arith.constant 0 : index
    %61 = vector.load %arg2[%c10, %c0_55, %c0_56] : memref<16x12x32xbf16, #tpu.memory_space<vmem>>, vector<1x12x32xbf16>
    %62 = vector.shape_cast %61 : vector<1x12x32xbf16> to vector<12x32xbf16>
    %cst_57 = arith.constant dense<0.000000e+00> : vector<304x32xf32>
    %63 = tpu.matmul %60, %62, %cst_57 {dimension_numbers = #tpu.dot_dimension_numbers<[1], [0], [0], [1], [0, 0, 1, 1], [], []>} : vector<304x12xbf16>, vector<12x32xbf16>, vector<304x32xf32> -> vector<304x32xf32>
    %64 = arith.addf %58, %63 : vector<304x32xf32>
    %c0_58 = arith.constant 0 : index
    %c41 = arith.constant 41 : index
    %c0_59 = arith.constant 0 : index
    %65 = vector.load %arg1[%c0_58, %c41, %c0_59] : memref<1x380x12xbf16, #tpu.memory_space<vmem>>, vector<1x304x12xbf16>
    %66 = vector.shape_cast %65 : vector<1x304x12xbf16> to vector<304x12xbf16>
    %c11 = arith.constant 11 : index
    %c0_60 = arith.constant 0 : index
    %c0_61 = arith.constant 0 : index
    %67 = vector.load %arg2[%c11, %c0_60, %c0_61] : memref<16x12x32xbf16, #tpu.memory_space<vmem>>, vector<1x12x32xbf16>
    %68 = vector.shape_cast %67 : vector<1x12x32xbf16> to vector<12x32xbf16>
    %cst_62 = arith.constant dense<0.000000e+00> : vector<304x32xf32>
    %69 = tpu.matmul %66, %68, %cst_62 {dimension_numbers = #tpu.dot_dimension_numbers<[1], [0], [0], [1], [0, 0, 1, 1], [], []>} : vector<304x12xbf16>, vector<12x32xbf16>, vector<304x32xf32> -> vector<304x32xf32>
    %70 = arith.addf %64, %69 : vector<304x32xf32>
    %c0_63 = arith.constant 0 : index
    %c57 = arith.constant 57 : index
    %c0_64 = arith.constant 0 : index
    %71 = vector.load %arg1[%c0_63, %c57, %c0_64] : memref<1x380x12xbf16, #tpu.memory_space<vmem>>, vector<1x304x12xbf16>
    %72 = vector.shape_cast %71 : vector<1x304x12xbf16> to vector<304x12xbf16>
    %c12 = arith.constant 12 : index
    %c0_65 = arith.constant 0 : index
    %c0_66 = arith.constant 0 : index
    %73 = vector.load %arg2[%c12, %c0_65, %c0_66] : memref<16x12x32xbf16, #tpu.memory_space<vmem>>, vector<1x12x32xbf16>
    %74 = vector.shape_cast %73 : vector<1x12x32xbf16> to vector<12x32xbf16>
    %cst_67 = arith.constant dense<0.000000e+00> : vector<304x32xf32>
    %75 = tpu.matmul %72, %74, %cst_67 {dimension_numbers = #tpu.dot_dimension_numbers<[1], [0], [0], [1], [0, 0, 1, 1], [], []>} : vector<304x12xbf16>, vector<12x32xbf16>, vector<304x32xf32> -> vector<304x32xf32>
    %76 = arith.addf %70, %75 : vector<304x32xf32>
    %c0_68 = arith.constant 0 : index
    %c58 = arith.constant 58 : index
    %c0_69 = arith.constant 0 : index
    %77 = vector.load %arg1[%c0_68, %c58, %c0_69] : memref<1x380x12xbf16, #tpu.memory_space<vmem>>, vector<1x304x12xbf16>
    %78 = vector.shape_cast %77 : vector<1x304x12xbf16> to vector<304x12xbf16>
    %c13 = arith.constant 13 : index
    %c0_70 = arith.constant 0 : index
    %c0_71 = arith.constant 0 : index
    %79 = vector.load %arg2[%c13, %c0_70, %c0_71] : memref<16x12x32xbf16, #tpu.memory_space<vmem>>, vector<1x12x32xbf16>
    %80 = vector.shape_cast %79 : vector<1x12x32xbf16> to vector<12x32xbf16>
    %cst_72 = arith.constant dense<0.000000e+00> : vector<304x32xf32>
    %81 = tpu.matmul %78, %80, %cst_72 {dimension_numbers = #tpu.dot_dimension_numbers<[1], [0], [0], [1], [0, 0, 1, 1], [], []>} : vector<304x12xbf16>, vector<12x32xbf16>, vector<304x32xf32> -> vector<304x32xf32>
    %82 = arith.addf %76, %81 : vector<304x32xf32>
    %c0_73 = arith.constant 0 : index
    %c59 = arith.constant 59 : index
    %c0_74 = arith.constant 0 : index
    %83 = vector.load %arg1[%c0_73, %c59, %c0_74] : memref<1x380x12xbf16, #tpu.memory_space<vmem>>, vector<1x304x12xbf16>
    %84 = vector.shape_cast %83 : vector<1x304x12xbf16> to vector<304x12xbf16>
    %c14 = arith.constant 14 : index
    %c0_75 = arith.constant 0 : index
    %c0_76 = arith.constant 0 : index
    %85 = vector.load %arg2[%c14, %c0_75, %c0_76] : memref<16x12x32xbf16, #tpu.memory_space<vmem>>, vector<1x12x32xbf16>
    %86 = vector.shape_cast %85 : vector<1x12x32xbf16> to vector<12x32xbf16>
    %cst_77 = arith.constant dense<0.000000e+00> : vector<304x32xf32>
    %87 = tpu.matmul %84, %86, %cst_77 {dimension_numbers = #tpu.dot_dimension_numbers<[1], [0], [0], [1], [0, 0, 1, 1], [], []>} : vector<304x12xbf16>, vector<12x32xbf16>, vector<304x32xf32> -> vector<304x32xf32>
    %88 = arith.addf %82, %87 : vector<304x32xf32>
    %c0_78 = arith.constant 0 : index
    %c60 = arith.constant 60 : index
    %c0_79 = arith.constant 0 : index
    %89 = vector.load %arg1[%c0_78, %c60, %c0_79] : memref<1x380x12xbf16, #tpu.memory_space<vmem>>, vector<1x304x12xbf16>
    %90 = vector.shape_cast %89 : vector<1x304x12xbf16> to vector<304x12xbf16>
    %c15 = arith.constant 15 : index
    %c0_80 = arith.constant 0 : index
    %c0_81 = arith.constant 0 : index
    %91 = vector.load %arg2[%c15, %c0_80, %c0_81] : memref<16x12x32xbf16, #tpu.memory_space<vmem>>, vector<1x12x32xbf16>
    %92 = vector.shape_cast %91 : vector<1x12x32xbf16> to vector<12x32xbf16>
    %cst_82 = arith.constant dense<0.000000e+00> : vector<304x32xf32>
    %93 = tpu.matmul %90, %92, %cst_82 {dimension_numbers = #tpu.dot_dimension_numbers<[1], [0], [0], [1], [0, 0, 1, 1], [], []>} : vector<304x12xbf16>, vector<12x32xbf16>, vector<304x32xf32> -> vector<304x32xf32>
    %94 = arith.addf %88, %93 : vector<304x32xf32>
    %95 = arith.truncf %94 : vector<304x32xf32> to vector<304x32xbf16>
    %c0_83 = arith.constant 0 : index
    %c0_84 = arith.constant 0 : index
    %c0_85 = arith.constant 0 : index
    %96 = vector.load %arg3[%c0_83, %c0_84, %c0_85] : memref<1x304x32xbf16, #tpu.memory_space<vmem>>, vector<1x304x32xbf16>
    %97 = vector.shape_cast %96 : vector<1x304x32xbf16> to vector<304x32xbf16>
    %98 = vector.shape_cast %95 : vector<304x32xbf16> to vector<1x304x32xbf16>
    tpu.vector_store %arg3[%c0_83, %c0_84, %c0_85], %98 {strides = array<i32>} : memref<1x304x32xbf16, #tpu.memory_space<vmem>>, vector<1x304x32xbf16>,
    return
  }
  func.func @transform_0(%arg0: i32) -> (i32, i32, i32) {
    %c0_i32 = arith.constant 0 : i32
    %c0_i32_0 = arith.constant 0 : i32
    %c0_i32_1 = arith.constant 0 : i32
    return %arg0, %c0_i32, %c0_i32_0 : i32, i32, i32
  }
  func.func @transform_1(%arg0: i32) -> (i32, i32, i32) {
    %c0_i32 = arith.constant 0 : i32
    %c0_i32_0 = arith.constant 0 : i32
    %c0_i32_1 = arith.constant 0 : i32
    %c0_i32_2 = arith.constant 0 : i32
    return %c0_i32, %c0_i32_0, %c0_i32_1 : i32, i32, i32
  }
  func.func @transform_2(%arg0: i32) -> (i32, i32, i32) {
    %c0_i32 = arith.constant 0 : i32
    %c0_i32_0 = arith.constant 0 : i32
    %c0_i32_1 = arith.constant 0 : i32
    return %arg0, %c0_i32, %c0_i32_0 : i32, i32, i32
  }
}

</mosaic_0001>

<bundles_post_ra>
// kernel: tpu_custom_call.1
= control target key start
LH: loop header
LB: loop body
LE: loop exit
PB: predicated region body
PF: predicated region fallthrough
CT: control target
= control target key end

     0   :  { %s10513_s9 = smov 0   ;;  %s13079_s0 = inlined_call_operand.vmem [shape: bf16[2,380,12], index: 0, kind: input, shape index: {}]   ;;  %s13080_s1 = inlined_call_operand.vmem [shape: bf16[16,12,32], index: 1, kind: input, shape index: {}]   ;;  %s13081_s2 = inlined_call_operand.vmem [shape: bf16[2,304,32], index: 2, kind: output, shape index: {}]  }
   0x1 LB: > { %s7027_s10 = sadd.s32 4294967295, %s10494_s9   ;;  %p7031_p0 = scmp.ge.s32.totalorder %s10494_s9, 1  ;;  %s10494_s9 = sphi %s10513_s9, %s12_s9  }
   0x2   : > { %p112_p1 = scmp.lt.s32.totalorder %s10494_s9, 3 }
   0x4   : > { %p113_p2 = pnand %p7031_p0, %p112_p1 }
   0x6   : > { %116 = sbr.rel (%p113_p2) target bundleno = 1457 (0x5b1), region = 28 }
   0xd   : > { %vm507_vm0 = vcmask 1045504   ;;  %v10496_v0 = vmov 0.0   ;;  %v10272_v1 = vld [vmem:[%s13080_s1 + $0x40] sm:$0x3f]   ;;  %p134_p3 = scmp.lt.s32.totalorder %s7027_s10, 1  ;;  %vm10497_vm1 = vmmov 0  }
   0xe   : > { %8534 = vmatprep.subr.bf16.mxu0 %v10496_v0  ;;  %7910 = vmatprep.subr.bf16.mxu1 %v10496_v0  ;;  %v10273_v2 = vld [vmem:[%s13080_s1 + $0x8] sm:$0x3f]   ;;  %v3551_v3 = vsel %vm507_vm0, %v10272_v1, 0  ;;  %vm449_vm2 = vcmask 97280   ;;  %vm2981_vm3 = vcmask 1044480   ;;  %vm934_vm6 = vcmask 1046528  }
   0xf   : > { %8536 = vmatprep.mubr.msk.bf16.mxu0 %vm10497_vm1, %v10496_v0  ;;  %7912 = vmatprep.mubr.msk.bf16.mxu1 %vm10497_vm1, %v10496_v0  ;;  %s13293_s10 = smov (!%p134_p3, %s7027_s10), 1  ;;  %v509_v4 = vsel %vm507_vm0, %v10273_v2, 0  ;;  %v10281_v5 = vld [vmem:[%s13080_s1 + $0x48] sm:$0x3f]   ;;  %v10280_v18 = vld [vmem:[%s13080_s1] sm:$0x3f]  }
  0x10   : > { %8535 = vmatpush3.bf16.msra.mxu0 %v3551_v3  ;;  %7911 = vmatpush3.bf16.msra.mxu1 %v509_v4  ;;  %s10260_s15 = smul.u32 192, %s13293_s10  ;;  %v4026_v26 = vsel %vm507_vm0, %v10281_v5, 0  ;;  %vm287_vm4 = vsmask.f32 7424  ;;  %v740_v31 = vsel %vm507_vm0, %v10280_v18, 0  ;;  %vm6933_vm9 = vcmask 257024  }
  0x11   : > { %8612 = vmatprep.subr.bf16.mxu0 %v10496_v0  ;;  %7988 = vmatprep.subr.bf16.mxu1 %v10496_v0  ;;  %vm3783_vm5 = vsmask.f32 4352  ;;  %vm1269_vm7 = vsmask.f32 6400  ;;  %vm2596_vm8 = vsmask.f32 5376 }
  0x12   : > { %s10543_s18 = scalar_lea.vmem %s13079_s0, %s10260_s15 }
  0x13   : > { %v3309_v6 = vld [vmem:[%s10543_s18 + $0x10] sm:$0x8]  ;;  %v10550_v7 = vld [vmem:[%s10543_s18 + $0x14] sm:$0xf]  ;;  %v10553_v8 = vld [vmem:[%s10543_s18 + $0x18] sm:$0xf] }
  0x14   : > { %v3312_v9 = vld [vmem:[%s10543_s18 + $0x1c] sm:$0xf]  ;;  %v10557_v10 = vcombine.low %v3309_v6, %v10550_v7  ;;  %v145_v12 = vld [vmem:[%s10543_s18] sm:$0xf]  ;;  %v146_v13 = vld [vmem:[%s10543_s18 + $0x4] sm:$0xf] }
  0x15   : > { %v10564_v14 = vcombine.low %v10553_v8, %v3312_v9  ;;  %v10566_v15 = vcombine.low %v145_v12, %v146_v13  ;;  %v10569_v16 = vld [vmem:[%s10543_s18 + $0x8] sm:$0xff]   ;;  %v3313_v19 = vld [vmem:[%s10543_s18 + $0x20] sm:$0xf]  ;;  %v10577_v20 = vld [vmem:[%s10543_s18 + $0x10] sm:$0xff]  }
  0x16   : > { %v3449_v17 = vrot.slane %v10557_v10, 3  ;;  %13185 = vst [vmem:[#allocation2_spill] sm:$0xff] %v10577_v20  ;;  %v13112_v24 = vshll.u32 %v10569_v16, 16  ;;  %v3314_v25 = vld [vmem:[%s10543_s18 + $0x24] sm:$0xf]  ;;  %v13111_v32 = vshrl.u32 %v10569_v16, 16 }
  0x17   : > { %v3450_v21 = vrot.slane %v10564_v14, 3  ;;  %v289_v22 = vshrl.u32 %v10566_v15, 16  ;;  %v291_v23 = vshll.u32 %v10566_v15, 16  ;;  %v10585_v27 = vcombine.low %v3313_v19, %v3314_v25  ;;  %v3315_v36 = vld [vmem:[%s10543_s18 + $0x28] sm:$0xf]  ;;  %v10612_v43 = vld [vmem:[%s10543_s18 + $0x18] sm:$0xff]  }
  0x18   : > { %v298_v30 = vrot.slane %v13112_v24, 1  ;;  %v13107_v35 = vshll.u32 %v10577_v20, 16  ;;  %v3316_v37 = vld [vmem:[%s10543_s18 + $0x2c] sm:$0xf]  ;;  %v13110_v46 = vshrl.u32 %v10577_v20, 16  ;;  %v13092_v47 = vshll.u32 %v10612_v43, 16 }
  0x19   : > { %v3451_v28 = vsel %vm2981_vm3, %v3449_v17, %v3450_v21  ;;  %v293_v29 = vrot.slane %v291_v23, 1  ;;  %v3452_v34 = vrot.slane %v10585_v27, 3  ;;  %v10609_v42 = vcombine.low %v3315_v36, %v3316_v37  ;;  %v3317_v48 = vld [vmem:[%s10543_s18 + $0x30] sm:$0xf]  ;;  %v3318_v49 = vld [vmem:[%s10543_s18 + $0x34] sm:$0xf] }
  0x1a   : > { %8537 = vmatmul.mubr.msk.bf16.vlgmr.msra.gmra.mrb[0].mxu0 %vm449_vm2, %v3451_v28  ;;  %v302_v40 = vor.u32 %v13111_v32, %v298_v30  ;;  %v306_v41 = vrot.slane %v13107_v35, 1  ;;  %v314_v52 = vrot.slane %v13092_v47, 1  ;;  %v10632_v53 = vcombine.low %v3317_v48, %v3318_v49  ;;  %v10635_v54 = vld [vmem:[%s10543_s18 + $0x20] sm:$0xff]   ;;  %v3319_v59 = vld [vmem:[%s10543_s18 + $0x38] sm:$0xf]  ;;  %v10657_v2 = vld [vmem:[%s10543_s18 + $0x28] sm:$0xff]  }
  0x1b   : > { %v294_v33 = vor.u32 %v293_v29, %v289_v22  ;;  %8613 = vmatpush3.bf16.msra.mxu0 %v4026_v26  ;;  %8540 = vmatprep.mubr.msk.bf16.mxu0 %vm10497_vm1, %v10496_v0  ;;  %v3453_v39 = vsel %vm2981_vm3, %v3450_v21, %v3452_v34  ;;  %v3454_v45 = vrot.slane %v10609_v42, 3  ;;  %v13093_v57 = vshrl.u32 %v10612_v43, 16  ;;  %v3320_v60 = vld [vmem:[%s10543_s18 + $0x3c] sm:$0xf]  ;;  %v3321_v3 = vld [vmem:[%s10543_s18 + $0x40] sm:$0xf] }
  0x1c   : > { %8690 = vmatprep.subr.bf16.mxu0 %v10496_v0  ;;  %v307_v44 = vsel %vm287_vm4, %v302_v40, %v306_v41  ;;  %v310_v51 = vor.u32 %v13110_v46, %v306_v41  ;;  %v3456_v56 = vrot.slane %v10632_v53, 3  ;;  %v13090_v58 = vshll.u32 %v10635_v54, 16  ;;  %v3322_v4 = vld [vmem:[%s10543_s18 + $0x44] sm:$0xf]  ;;  %v10669_v13 = vld [vmem:[%s10543_s18 + $0x30] sm:$0xff]   ;;  %v10674_v19 = vld [vmem:[%s10543_s18 + $0x38] sm:$0xff]  }
  0x1d   : > { %v299_v38 = vsel %vm287_vm4, %v294_v33, %v298_v30  ;;  %v3455_v50 = vsel %vm2981_vm3, %v3452_v34, %v3454_v45  ;;  %v318_v62 = vor.u32 %v13093_v57, %v314_v52  ;;  %v10654_v1 = vcombine.low %v3319_v59, %v3320_v60  ;;  %v3323_v17 = vld [vmem:[%s10543_s18 + $0x48] sm:$0xf]  ;;  %v3324_v18 = vld [vmem:[%s10543_s18 + $0x4c] sm:$0xf]  ;;  %v3325_v22 = vld [vmem:[%s10543_s18 + $0x50] sm:$0xf] }
  0x1e   : > { %7913 = vmatmul.mubr.msk.bf16.vlgmr.msra.gmra.mrb[0].mxu1 %vm449_vm2, %v299_v38  ;;  %v315_v55 = vsel %vm287_vm4, %v310_v51, %v314_v52  ;;  %v3457_v61 = vsel %vm2981_vm3, %v3454_v45, %v3456_v56  ;;  %v322_v63 = vrot.slane %v13090_v58, 1  ;;  %v13091_v9 = vshrl.u32 %v10635_v54, 16  ;;  %v3326_v23 = vld [vmem:[%s10543_s18 + $0x54] sm:$0xf]  ;;  %v10681_v25 = vld [vmem:[%s10543_s18 + $0x40] sm:$0xff]   ;;  %v10687_v29 = vld [vmem:[%s10543_s18 + $0x48] sm:$0xff]  }
  0x1f   : > { %7989 = vmatpush3.bf16.msra.mxu1 %v740_v31  ;;  %7916 = vmatprep.mubr.msk.bf16.mxu1 %vm10497_vm1, %v10496_v0  ;;  %v3458_v6 = vrot.slane %v10654_v1, 3  ;;  %v13086_v12 = vshll.u32 %v10657_v2, 16  ;;  %v10676_v21 = vcombine.low %v3321_v3, %v3322_v4  ;;  %v13088_v26 = vshrl.u32 %v10657_v2, 16  ;;  %v3327_v28 = vld [vmem:[%s10543_s18 + $0x58] sm:$0xf]  ;;  %v10698_v36 = vld [vmem:[%s10543_s18 + $0x50] sm:$0xff]  }
  0x20   : > { %8066 = vmatprep.subr.bf16.mxu1 %v10496_v0  ;;  %v323_v5 = vsel %vm287_vm4, %v318_v62, %v322_v63  ;;  %v326_v31 = vor.u32 %v13091_v9, %v322_v63  ;;  %v3328_v34 = vld [vmem:[%s10543_s18 + $0x5c] sm:$0xf]  ;;  %v3329_v37 = vld [vmem:[%s10543_s18 + $0x60] sm:$0xf]  ;;  %v3330_v38 = vld [vmem:[%s10543_s18 + $0x64] sm:$0xf]  ;;  %v10704_v41 = vcombine.low %v3323_v17, %v3324_v18  ;;  %v10709_v48 = vcombine.low %v3325_v22, %v3326_v23 }
  0x21   : > { %v3459_v30 = vsel %vm2981_vm3, %v3456_v56, %v3458_v6  ;;  %v330_v33 = vrot.slane %v13086_v12, 1  ;;  %v13085_v40 = vshll.u32 %v10669_v13, 16  ;;  %v13084_v45 = vshll.u32 %v10674_v19, 16  ;;  %v3331_v22 = vld [vmem:[%s10543_s18 + $0x68] sm:$0xf]  ;;  %v10742_v23 = vld [vmem:[%s10543_s18 + $0x58] sm:$0xff]  }
  0x22   : > { %8541 = vmatmul.mubr.msk.bf16.gmra.mrb[4].mxu0 %vm449_vm2, %v3453_v39  ;;  %v3460_v39 = vrot.slane %v10676_v21, 3  ;;  %v13082_v49 = vshll.u32 %v10681_v25, 16  ;;  %v10715_v51 = vcombine.low %v3327_v28, %v3328_v34  ;;  %v13083_v52 = vshll.u32 %v10687_v29, 16  ;;  %v11042_v35 = vld [vmem:[%s10543_s18 + $0x88] sm:$0xff]   ;;  %v11055_v46 = vld [vmem:[%s10543_s18 + $0xa4] sm:$0xf] }
  0x23   : > { %8544 = vmatprep.mubr.msk.bf16.mxu0 %vm10497_vm1, %v10496_v0  ;;  %v334_v56 = vor.u32 %v13088_v26, %v330_v33  ;;  %v13087_v59 = vshll.u32 %v10698_v36, 16  ;;  %v3785_v60 = vshrl.u32 %v10557_v10, 16  ;;  %v3462_v62 = vrot.slane %v10704_v41, 3  ;;  %13188 = vst [vmem:[#allocation5_spill] sm:$0xff] %v11055_v46  ;;  %v11070_v11 = vld [vmem:[%s10543_s18 + $0x90] sm:$0xff]  }
  0x24   : > { %v13106_v63 = vshrl.u32 %v10674_v19, 16  ;;  %v13105_v3 = vshrl.u32 %v10681_v25, 16  ;;  %v3461_v4 = vsel %vm2981_vm3, %v3458_v6, %v3460_v39  ;;  %v3464_v17 = vrot.slane %v10709_v48, 3 }
  0x25   : > { %v10738_v18 = vrot.slane %v13082_v49, 1  ;;  %v3466_v28 = vrot.slane %v10715_v51, 3  ;;  %v10749_v6 = vrot.slane %v13083_v52, 1  ;;  %v10756_v34 = vrot.slane %v13087_v59, 1 }
  0x26   : > { %7917 = vmatmul.mubr.msk.bf16.gmra.mrb[4].mxu1 %vm449_vm2, %v307_v44  ;;  %v13089_v44 = vshrl.u32 %v10669_v13, 16  ;;  %v3796_v12 = vshll.u32 %v10564_v14, 16  ;;  %v13099_v26 = vshll.u32 %v10742_v23, 16  ;;  %v3820_v47 = vshrl.u32 %v10632_v53, 16 }
  0x27   : > { %7920 = vmatprep.mubr.msk.bf16.mxu1 %vm10497_vm1, %v10496_v0  ;;  %v3823_v57 = vshll.u32 %v10632_v53, 16 }
  0x2a   : > { %8545 = vmatmul.mubr.msk.bf16.gmra.mrb[8].mxu0 %vm449_vm2, %v3455_v50  ;;  %v331_v50 = vsel %vm287_vm4, %v326_v31, %v330_v33  ;;  %v13104_v31 = vshrl.u32 %v10687_v29, 16  ;;  %v3332_v33 = vld [vmem:[%s10543_s18 + $0x6c] sm:$0xf] }
  0x2b   : > { %8548 = vmatprep.mubr.msk.bf16.mxu0 %vm10497_vm1, %v10496_v0  ;;  %v10769_v59 = vcombine.low %v3331_v22, %v3332_v33  ;;  %v3811_v22 = vshrl.u32 %v10609_v42, 16  ;;  %v3814_v33 = vshll.u32 %v10609_v42, 16 }
  0x2e   : > { %7921 = vmatmul.mubr.msk.bf16.gmra.mrb[8].mxu1 %vm449_vm2, %v315_v55  ;;  %v10718_v55 = vcombine.low %v3329_v37, %v3330_v38  ;;  %v13101_v37 = vshrl.u32 %v10698_v36, 16  ;;  %v3787_v38 = vrot.slane %v3785_v60, 3 }
  0x2f   : > { %7924 = vmatprep.mubr.msk.bf16.mxu1 %vm10497_vm1, %v10496_v0 }
  0x32   : > { %8549 = vmatmul.mubr.msk.bf16.gmra.mrb[12].mxu0 %vm449_vm2, %v3457_v61  ;;  %v338_v61 = vrot.slane %v13085_v40, 1  ;;  %v3793_v40 = vshrl.u32 %v10564_v14, 16  ;;  %v3463_v14 = vsel %vm2981_vm3, %v3460_v39, %v3462_v62 }
  0x33   : > { %8552 = vmatprep.mubr.msk.bf16.mxu0 %vm10497_vm1, %v10496_v0 }
  0x34   : > { %v339_v49 = vsel %vm287_vm4, %v334_v56, %v338_v61  ;;  %v342_v52 = vor.u32 %v13089_v44, %v338_v61  ;;  %v3798_v56 = vrot.slane %v3796_v12, 4  ;;  %v3802_v61 = vshrl.u32 %v10585_v27, 16 }
  0x35   : > { %v3805_v44 = vshll.u32 %v10585_v27, 16  ;;  %v3470_v12 = vrot.slane %v10769_v59, 3  ;;  %v3816_v27 = vrot.slane %v3814_v33, 4 }
  0x36   : > { %7925 = vmatmul.mubr.msk.bf16.gmra.mrb[12].mxu1 %vm449_vm2, %v323_v5  ;;  %v10733_v5 = vrot.slane %v13084_v45, 1  ;;  %v10764_v45 = vld [vmem:[%s10543_s18 + $0x60] sm:$0xff]  }
  0x37   : > { %7928 = vmatprep.mubr.msk.bf16.mxu1 %vm10497_vm1, %v10496_v0  ;;  %v3807_v9 = vrot.slane %v3805_v44, 4  ;;  %v13095_v39 = vshll.u32 %v10764_v45, 16  ;;  %v3822_v44 = vrot.slane %v3820_v47, 3  ;;  %v3829_v47 = vshrl.u32 %v10654_v1, 16 }
  0x3a   : > { %8553 = vmatmul.mubr.msk.bf16.gmra.mrb[16].mxu0 %vm449_vm2, %v3459_v30  ;;  %v3468_v30 = vrot.slane %v10718_v55, 3 }
  0x3b   : > { %8556 = vmatprep.mubr.msk.bf16.mxu0 %vm10497_vm1, %v10496_v0 }
  0x3e   : > { %7929 = vmatmul.mubr.msk.bf16.gmra.mrb[16].mxu1 %vm449_vm2, %v331_v50  ;;  %v3788_v50 = vshll.u32 %v10557_v10, 16  ;;  %v3795_v10 = vrot.slane %v3793_v40, 3  ;;  %v3813_v40 = vrot.slane %v3811_v22, 3 }
  0x3f   : > { %7932 = vmatprep.mubr.msk.bf16.mxu1 %vm10497_vm1, %v10496_v0 }
  0x40   : > { %v3790_v60 = vrot.slane %v3788_v50, 4  ;;  %v3799_v58 = vor.u32 %v3798_v56, %v3795_v10  ;;  %v3804_v50 = vrot.slane %v3802_v61, 3  ;;  %v3825_v10 = vrot.slane %v3823_v57, 4 }
  0x42   : > { %8557 = vmatmul.mubr.msk.bf16.gmra.mrb[20].mxu0 %vm449_vm2, %v3461_v4  ;;  %v3791_v4 = vor.u32 %v3790_v60, %v3787_v38  ;;  %v3808_v38 = vor.u32 %v3807_v9, %v3804_v50  ;;  %v10793_v60 = vrot.slane %v13099_v26, 1  ;;  %v3826_v61 = vor.u32 %v3825_v10, %v3822_v44 }
  0x43   : > { %8560 = vmatprep.mubr.msk.bf16.mxu0 %vm10497_vm1, %v10496_v0  ;;  %v3832_v9 = vshll.u32 %v10654_v1, 16  ;;  %v350_v1 = vor.u32 %v13106_v63, %v10733_v5  ;;  %v358_v44 = vor.u32 %v13105_v3, %v10738_v18 }
  0x44   : > { %v10789_v42 = vsel %vm3783_vm5, %v3791_v4, %v3799_v58  ;;  %v10796_v56 = vsel %vm3783_vm5, %v3799_v58, %v3808_v38  ;;  %v347_v4 = vsel %vm287_vm4, %v342_v52, %v10733_v5  ;;  %v3831_v58 = vrot.slane %v3829_v47, 3 }
  0x45   : > { %v3834_v22 = vrot.slane %v3832_v9, 4  ;;  %v3465_v52 = vsel %vm2981_vm3, %v3462_v62, %v3464_v17  ;;  %v355_v50 = vsel %vm287_vm4, %v350_v1, %v10738_v18  ;;  %v3838_v62 = vshrl.u32 %v10676_v21, 16 }
  0x46   : > { %7933 = vmatmul.mubr.msk.bf16.gmra.mrb[20].mxu1 %vm449_vm2, %v339_v49  ;;  %v3817_v49 = vor.u32 %v3816_v27, %v3813_v40  ;;  %v3841_v40 = vshll.u32 %v10676_v21, 16  ;;  %v3467_v5 = vsel %vm2981_vm3, %v3464_v17, %v3466_v28  ;;  %v363_v10 = vsel %vm287_vm4, %v358_v44, %v10749_v6 }
  0x47   : > { %7936 = vmatprep.mubr.msk.bf16.mxu1 %vm10497_vm1, %v10496_v0  ;;  %v3840_v27 = vrot.slane %v3838_v62, 3  ;;  %v3847_v17 = vshrl.u32 %v10704_v41, 16  ;;  %v3469_v47 = vsel %vm2981_vm3, %v3466_v28, %v3468_v30  ;;  %v366_v9 = vor.u32 %v13104_v31, %v10749_v6  ;;  %v11027_v31 = vld [vmem:[%s10543_s18 + $0x9c] sm:$0xf] }
  0x48   : > { %v10800_v53 = vsel %vm3783_vm5, %v3808_v38, %v3817_v49  ;;  %v10809_v57 = vsel %vm3783_vm5, %v3817_v49, %v3826_v61  ;;  %v3843_v38 = vrot.slane %v3841_v40, 4  ;;  %v3856_v6 = vshrl.u32 %v10709_v48, 16  ;;  %13186 = vst [vmem:[#allocation3_spill] sm:$0xff] %v11027_v31 }
  0x49   : > { %v371_v28 = vsel %vm287_vm4, %v366_v9, %v10756_v34  ;;  %v3859_v1 = vshll.u32 %v10709_v48, 16  ;;  %v3471_v62 = vsel %vm2981_vm3, %v3468_v30, %v3470_v12  ;;  %v374_v40 = vor.u32 %v13101_v37, %v10756_v34  ;;  %v10903_v30 = vld [vmem:[%s10543_s18 + $0x78] sm:$0xf]  ;;  %v10935_v9 = vld [vmem:[%s10543_s18 + $0x80] sm:$0xf] }
  0x4a   : > { %8561 = vmatmul.mubr.msk.bf16.gmra.mrb[24].mxu0 %vm449_vm2, %v3463_v14  ;;  %v3835_v14 = vor.u32 %v3834_v22, %v3831_v58  ;;  %v3844_v49 = vor.u32 %v3843_v38, %v3840_v27  ;;  %v10869_v22 = vld [vmem:[%s10543_s18 + $0x70] sm:$0xf]  ;;  %v11014_v37 = vld [vmem:[%s10543_s18 + $0x80] sm:$0xff]  }
  0x4b   : > { %8564 = vmatprep.mubr.msk.bf16.mxu0 %vm10497_vm1, %v10496_v0  ;;  %v379_v34 = vsel %vm287_vm4, %v374_v40, %v10793_v60 }
  0x4c   : > { %v10823_v33 = vsel %vm3783_vm5, %v3826_v61, %v3835_v14  ;;  %v10844_v21 = vsel %vm3783_vm5, %v3835_v14, %v3844_v49  ;;  %v3850_v61 = vshll.u32 %v10704_v41, 16  ;;  %v3858_v14 = vrot.slane %v3856_v6, 3 }
  0x4e   : > { %7937 = vmatmul.mubr.msk.bf16.gmra.mrb[24].mxu1 %vm449_vm2, %v347_v4  ;;  %v3849_v4 = vrot.slane %v3847_v17, 3  ;;  %v3852_v18 = vrot.slane %v3850_v61, 4  ;;  %v10917_v17 = vld [vmem:[%s10543_s18 + $0x68] sm:$0xff]   ;;  %v13098_v61 = vshrl.u32 %v10764_v45, 16 }
  0x4f   : > { %7940 = vmatprep.mubr.msk.bf16.mxu1 %vm10497_vm1, %v10496_v0 }
  0x50   : > { %v3853_v58 = vor.u32 %v3852_v18, %v3849_v4 }
  0x52   : > { %8565 = vmatmul.mubr.msk.bf16.gmra.mrb[28].mxu0 %vm449_vm2, %v3465_v52  ;;  %v10865_v41 = vsel %vm3783_vm5, %v3844_v49, %v3853_v58  ;;  %v10872_v52 = vld [vmem:[%s10543_s18 + $0x74] sm:$0xf]  ;;  %v13100_v49 = vshrl.u32 %v10742_v23, 16 }
  0x53   : > { %8568 = vmatprep.mubr.msk.bf16.mxu0 %vm10497_vm1, %v10496_v0  ;;  %v10893_v48 = vcombine.low %v10869_v22, %v10872_v52 }
  0x54   : > { %v382_v18 = vor.u32 %v13100_v49, %v10793_v60  ;;  %v13094_v60 = vshll.u32 %v10917_v17, 16 }
  0x55   : > { %v3472_v44 = vrot.slane %v10893_v48, 3 }
  0x56   : > { %7941 = vmatmul.mubr.msk.bf16.gmra.mrb[28].mxu1 %vm449_vm2, %v355_v50  ;;  %v3861_v50 = vrot.slane %v3859_v1, 4 }
  0x57   : > { %7944 = vmatprep.mubr.msk.bf16.mxu1 %vm10497_vm1, %v10496_v0  ;;  %v3473_v4 = vsel %vm2981_vm3, %v3470_v12, %v3472_v44 }
  0x58   : > { %v10895_v27 = vor.u32 %v3861_v50, %v3858_v14  ;;  %v394_v14 = vrot.slane %v13094_v60, 1 }
  0x5a   : > { %8569 = vmatmul.mubr.msk.bf16.gmra.mrb[32].mxu0 %vm449_vm2, %v3467_v5  ;;  %v10899_v38 = vsel %vm3783_vm5, %v3853_v58, %v10895_v27  ;;  %v10906_v5 = vld [vmem:[%s10543_s18 + $0x7c] sm:$0xf]  ;;  %v10938_v58 = vld [vmem:[%s10543_s18 + $0x84] sm:$0xf] }
  0x5b   : > { %8572 = vmatprep.mubr.msk.bf16.mxu0 %vm10497_vm1, %v10496_v0  ;;  %v10955_v50 = vcombine.low %v10935_v9, %v10938_v58 }
  0x5e   : > { %7945 = vmatmul.mubr.msk.bf16.gmra.mrb[32].mxu1 %vm449_vm2, %v363_v10  ;;  %v386_v10 = vrot.slane %v13095_v39, 1  ;;  %v10986_v39 = vld [vmem:[%s10543_s18 + $0x78] sm:$0xff]  }
  0x5f   : > { %7948 = vmatprep.mubr.msk.bf16.mxu1 %vm10497_vm1, %v10496_v0 }
  0x60   : > { %v387_v12 = vsel %vm287_vm4, %v382_v18, %v386_v10  ;;  %v390_v1 = vor.u32 %v13098_v61, %v386_v10  ;;  %v10971_v18 = vld [vmem:[%s10543_s18 + $0x8c] sm:$0xf]  ;;  %v10999_v61 = vld [vmem:[%s10543_s18 + $0x94] sm:$0xf] }
  0x62   : > { %8573 = vmatmul.mubr.msk.bf16.gmra.mrb[36].mxu0 %vm449_vm2, %v3469_v47  ;;  %v10931_v47 = vcombine.low %v10903_v30, %v10906_v5  ;;  %v395_v40 = vsel %vm287_vm4, %v390_v1, %v394_v14 }
  0x63   : > { %8576 = vmatprep.mubr.msk.bf16.mxu0 %vm10497_vm1, %v10496_v0 }
  0x66   : > { %7949 = vmatmul.mubr.msk.bf16.gmra.mrb[36].mxu1 %vm449_vm2, %v371_v28  ;;  %v3474_v28 = vrot.slane %v10931_v47, 3 }
  0x67   : > { %7952 = vmatprep.mubr.msk.bf16.mxu1 %vm10497_vm1, %v10496_v0 }
  0x68   : > { %v3475_v6 = vsel %vm2981_vm3, %v3472_v44, %v3474_v28  ;;  %v13097_v44 = vshrl.u32 %v10917_v17, 16 }
  0x6a   : > { %8577 = vmatmul.mubr.msk.bf16.gmra.mrb[40].mxu0 %vm449_vm2, %v3471_v62  ;;  %v10958_v62 = vld [vmem:[%s10543_s18 + $0x70] sm:$0xff]  }
  0x6b   : > { %8580 = vmatprep.mubr.msk.bf16.mxu0 %vm10497_vm1, %v10496_v0  ;;  %v13096_v10 = vshll.u32 %v10958_v62, 16 }
  0x6d   : > { %v402_v1 = vrot.slane %v13096_v10, 1  ;;  %v13102_v10 = vshll.u32 %v10986_v39, 16 }
  0x6e   : > { %7953 = vmatmul.mubr.msk.bf16.gmra.mrb[40].mxu1 %vm449_vm2, %v379_v34  ;;  %v3476_v34 = vrot.slane %v10955_v50, 3 }
  0x6f   : > { %7956 = vmatprep.mubr.msk.bf16.mxu1 %vm10497_vm1, %v10496_v0  ;;  %v410_v26 = vrot.slane %v13102_v10, 1  ;;  %v13108_v10 = vshll.u32 %v11014_v37, 16 }
  0x71   : > { %v418_v3 = vrot.slane %v13108_v10, 1  ;;  %v13114_v10 = vshll.u32 %v11042_v35, 16 }
  0x72   : > { %8581 = vmatmul.mubr.msk.bf16.gmra.mrb[44].mxu0 %vm449_vm2, %v3473_v4  ;;  %v10968_v4 = vld [vmem:[%s10543_s18 + $0x88] sm:$0xf] }
  0x73   : > { %8584 = vmatprep.mubr.msk.bf16.mxu0 %vm10497_vm1, %v10496_v0  ;;  %v10983_v60 = vcombine.low %v10968_v4, %v10971_v18  ;;  %v426_v32 = vrot.slane %v13114_v10, 1  ;;  %v10316_v10 = vld [vmem:[%s10543_s18 + $0xa8] ss:$0 sps:$4 sm:$0x77]  }
  0x76   : > { %7957 = vmatmul.mubr.msk.bf16.gmra.mrb[44].mxu1 %vm449_vm2, %v387_v12  ;;  %v3477_v12 = vsel %vm2981_vm3, %v3474_v28, %v3476_v34 }
  0x77   : > { %7960 = vmatprep.mubr.msk.bf16.mxu1 %vm10497_vm1, %v10496_v0 }
  0x7a   : > { %8585 = vmatmul.mubr.msk.bf16.gmra.mrb[48].mxu0 %vm449_vm2, %v3475_v6  ;;  %v398_v6 = vor.u32 %v13097_v44, %v394_v14  ;;  %v13103_v14 = vshrl.u32 %v10958_v62, 16  ;;  %v10996_v44 = vld [vmem:[%s10543_s18 + $0x90] sm:$0xf] }
  0x7b   : > { %8588 = vmatprep.mubr.msk.bf16.mxu0 %vm10497_vm1, %v10496_v0  ;;  %v11011_v49 = vcombine.low %v10996_v44, %v10999_v61 }
  0x7c   : > { %v403_v28 = vsel %vm287_vm4, %v398_v6, %v402_v1  ;;  %v406_v6 = vor.u32 %v13103_v14, %v402_v1  ;;  %v13109_v1 = vshrl.u32 %v10986_v39, 16  ;;  %v11024_v14 = vld [vmem:[%s10543_s18 + $0x98] sm:$0xf] }
  0x7d   : > { %v11039_v63 = vcombine.low %v11024_v14, %v11027_v31 }
  0x7e   : > { %7961 = vmatmul.mubr.msk.bf16.gmra.mrb[48].mxu1 %vm449_vm2, %v395_v40  ;;  %v3478_v40 = vrot.slane %v10983_v60, 3 }
  0x7f   : > { %7964 = vmatprep.mubr.msk.bf16.mxu1 %vm10497_vm1, %v10496_v0 }
  0x82   : > { %8589 = vmatmul.mubr.msk.bf16.gmra.mrb[52].mxu0 %vm449_vm2, %v3477_v12  ;;  %v3479_v12 = vsel %vm2981_vm3, %v3476_v34, %v3478_v40  ;;  %v411_v34 = vsel %vm287_vm4, %v406_v6, %v410_v26  ;;  %v414_v6 = vor.u32 %v13109_v1, %v410_v26  ;;  %v13113_v26 = vshrl.u32 %v11014_v37, 16  ;;  %v11052_v1 = vld [vmem:[%s10543_s18 + $0xa0] sm:$0xf] }
  0x83   : > { %8592 = vmatprep.mubr.msk.bf16.mxu0 %vm10497_vm1, %v10496_v0  ;;  %13187 = vst [vmem:[#allocation4_spill] sm:$0xff] %v11052_v1  ;;  %v11067_v24 = vcombine.low %v11052_v1, %v11055_v46  ;;  %v11089_v46 = vld [vmem:[%s10543_s18 + $0x98] ss:$0 sps:$4 sm:$0x11]  }
  0x84   : > { %v440_v1 = vshll.u32 %v11089_v46, 16 }
  0x86   : > { %7965 = vmatmul.mubr.msk.bf16.gmra.mrb[52].mxu1 %vm449_vm2, %v403_v28  ;;  %v3480_v28 = vrot.slane %v11011_v49, 3 }
  0x87   : > { %7968 = vmatprep.mubr.msk.bf16.mxu1 %vm10497_vm1, %v10496_v0 }
  0x8a   : > { %8593 = vmatmul.mubr.msk.bf16.gmra.mrb[56].mxu0 %vm449_vm2, %v3479_v12  ;;  %v3481_v12 = vsel %vm2981_vm3, %v3478_v40, %v3480_v28  ;;  %v419_v40 = vsel %vm287_vm4, %v414_v6, %v418_v3  ;;  %v422_v6 = vor.u32 %v13113_v26, %v418_v3  ;;  %v428_v3 = vshrl.u32 %v11042_v35, 16 }
  0x8b   : > { %8596 = vmatprep.mubr.msk.bf16.mxu0 %vm10497_vm1, %v10496_v0  ;;  %v13120_v26 = vshll.u32 %v11070_v11, 16 }
  0x8e   : > { %7969 = vmatmul.mubr.msk.bf16.gmra.mrb[56].mxu1 %vm449_vm2, %v411_v34  ;;  %v3482_v34 = vrot.slane %v11039_v63, 3 }
  0x8f   : > { %7972 = vmatprep.mubr.msk.bf16.mxu1 %vm10497_vm1, %v10496_v0 }
  0x92   : > { %8597 = vmatmul.mubr.msk.bf16.gmra.mrb[60].mxu0 %vm449_vm2, %v3481_v12  ;;  %v3483_v12 = vsel %vm2981_vm3, %v3480_v28, %v3482_v34  ;;  %v427_v28 = vsel %vm287_vm4, %v422_v6, %v426_v32  ;;  %v434_v6 = vrot.slane %v13120_v26, 1  ;;  %v442_v26 = vrot.slane %v440_v1, 1 }
  0x93   : > { %8600 = vmatprep.mubr.msk.bf16.mxu0 %vm10497_vm1, %v10496_v0 }
  0x96   : > { %7973 = vmatmul.mubr.msk.bf16.gmra.mrb[60].mxu1 %vm449_vm2, %v419_v40  ;;  %v3484_v40 = vrot.slane %v11067_v24, 3 }
  0x97   : > { %7976 = vmatprep.mubr.msk.bf16.mxu1 %vm10497_vm1, %v10496_v0 }
  0x98   : > { %v3485_v20 = vsel %vm2981_vm3, %v3482_v34, %v3484_v40  ;;  %v436_v34 = vshrl.u32 %v11070_v11, 16 }
  0x9a   : > { %8601 = vmatmul.mubr.msk.bf16.gmra.mrb[64].mxu0 %vm449_vm2, %v3483_v12  ;;  %v430_v12 = vor.u32 %v428_v3, %v426_v32 }
  0x9b   : > { %8604 = vmatprep.mubr.msk.bf16.mxu0 %vm10497_vm1, %v10496_v0 }
  0x9c   : > { %v435_v31 = vsel %vm287_vm4, %v430_v12, %v434_v6 }
  0x9e   : > { %7977 = vmatmul.mubr.msk.bf16.gmra.mrb[64].mxu1 %vm449_vm2, %v427_v28  ;;  %v3486_v28 = vrot.slane %v10316_v10, 3  ;;  %v10318_v10 = vld [vmem:[%s13080_s1 + $0x10] sm:$0x3f]  }
  0x9f   : > { %7980 = vmatprep.mubr.msk.bf16.mxu1 %vm10497_vm1, %v10496_v0 }
  0xa0   : > { %v3487_v32 = vsel %vm2981_vm3, %v3484_v40, %v3486_v28  ;;  %v3877_v40 = vshll.u32 %v10718_v55, 16 }
  0xa2   : > { %8605 = vmatmul.mubr.msk.bf16.gmra.mrb[68].mxu0 %vm449_vm2, %v3485_v20  ;;  %v438_v20 = vor.u32 %v436_v34, %v434_v6  ;;  %v3879_v28 = vrot.slane %v3877_v40, 4 }
  0xa3   : > { %8608 = vmatprep.mubr.msk.bf16.mxu0 %vm10497_vm1, %v10496_v0 }
  0xa4   : > { %v443_v12 = vsel %vm287_vm4, %v438_v20, %v442_v26  ;;  %v1037_v26 = vsel %vm507_vm0, %v10318_v10, 0  ;;  %v3892_v10 = vshrl.u32 %v10893_v48, 16 }
  0xa6   : > { %7981 = vmatmul.mubr.msk.bf16.gmra.mrb[68].mxu1 %vm449_vm2, %v435_v31  ;;  %v10319_v31 = vld [vmem:[%s13080_s1 + $0x50] sm:$0x3f]  }
  0xa7   : > { %7984 = vmatprep.mubr.msk.bf16.mxu1 %vm10497_vm1, %v10496_v0  ;;  %v4336_v1 = vsel %vm507_vm0, %v10319_v31, 0 }
  0xaa   : > { %8609 = vmatmul.mubr.msk.bf16.gmra.mrb[72].mxu0 %vm449_vm2, %v3487_v32  ;;  %v3883_v32 = vshrl.u32 %v10769_v59, 16 }
  0xab   : > { %8614 = vmatprep.mubr.msk.bf16.mxu0 %vm10497_vm1, %v10496_v0 }
  0xac   : > { %v3885_v20 = vrot.slane %v3883_v32, 3 }
  0xae   : > { %7985 = vmatmul.mubr.msk.bf16.gmra.mrb[72].mxu1 %vm449_vm2, %v443_v12 }
  0xaf   : > { %7990 = vmatprep.mubr.msk.bf16.mxu1 %vm10497_vm1, %v10496_v0 }
  0xb2   : > { %8615 = vmatmul.mubr.msk.bf16.vlgmr.msra.gmra.mrb[0].mxu0 %vm449_vm2, %v10789_v42  ;;  %v11133_v42 = vld [vmem:[%s10543_s18 + $0x8] sm:$0xff]  }
  0xb3   : > { %8691 = vmatpush3.bf16.msra.mxu0 %v4336_v1  ;;  %8618 = vmatprep.mubr.msk.bf16.mxu0 %vm10497_vm1, %v10496_v0 }
  0xb4   : > { %8768 = vmatprep.subr.bf16.mxu0 %v10496_v0 }
  0xb6   : > { %7991 = vmatmul.mubr.msk.bf16.vlgmr.msra.gmra.mrb[0].mxu1 %vm449_vm2, %v10566_v15  ;;  %v11144_v15 = vld [vmem:[%s10543_s18 + $0x10] sm:$0xff]  }
  0xb7   : > { %8067 = vmatpush3.bf16.msra.mxu1 %v1037_v26  ;;  %7994 = vmatprep.mubr.msk.bf16.mxu1 %vm10497_vm1, %v10496_v0  ;;  %v3894_v26 = vrot.slane %v3892_v10, 3  ;;  %v3928_v10 = vshrl.u32 %v11011_v49, 16 }
  0xb8   : > { %8144 = vmatprep.subr.bf16.mxu1 %v10496_v0 }
  0xba   : > { %8619 = vmatmul.mubr.msk.bf16.gmra.mrb[4].mxu0 %vm449_vm2, %v10796_v56  ;;  %v3865_v56 = vshrl.u32 %v10715_v51, 16 }
  0xbb   : > { %8622 = vmatprep.mubr.msk.bf16.mxu0 %vm10497_vm1, %v10496_v0 }
  0xbe   : > { %7995 = vmatmul.mubr.msk.bf16.gmra.mrb[4].mxu1 %vm449_vm2, %v11133_v42 }
  0xbf   : > { %7998 = vmatprep.mubr.msk.bf16.mxu1 %vm10497_vm1, %v10496_v0 }
  0xc2   : > { %8623 = vmatmul.mubr.msk.bf16.gmra.mrb[8].mxu0 %vm449_vm2, %v10800_v53  ;;  %v3868_v53 = vshll.u32 %v10715_v51, 16 }
  0xc3   : > { %8626 = vmatprep.mubr.msk.bf16.mxu0 %vm10497_vm1, %v10496_v0 }
  0xc6   : > { %7999 = vmatmul.mubr.msk.bf16.gmra.mrb[8].mxu1 %vm449_vm2, %v11144_v15 }
  0xc7   : > { %8002 = vmatprep.mubr.msk.bf16.mxu1 %vm10497_vm1, %v10496_v0 }
  0xca   : > { %8627 = vmatmul.mubr.msk.bf16.gmra.mrb[12].mxu0 %vm449_vm2, %v10809_v57  ;;  %v3867_v57 = vrot.slane %v3865_v56, 3 }
  0xcb   : > { %8630 = vmatprep.mubr.msk.bf16.mxu0 %vm10497_vm1, %v10496_v0 }
  0xce   : > { %8003 = vmatmul.mubr.msk.bf16.gmra.mrb[12].mxu1 %vm449_vm2, %v10612_v43 }
  0xcf   : > { %8006 = vmatprep.mubr.msk.bf16.mxu1 %vm10497_vm1, %v10496_v0 }
  0xd2   : > { %8631 = vmatmul.mubr.msk.bf16.gmra.mrb[16].mxu0 %vm449_vm2, %v10823_v33  ;;  %v3870_v33 = vrot.slane %v3868_v53, 4 }
  0xd3   : > { %8634 = vmatprep.mubr.msk.bf16.mxu0 %vm10497_vm1, %v10496_v0 }
  0xd6   : > { %8007 = vmatmul.mubr.msk.bf16.gmra.mrb[16].mxu1 %vm449_vm2, %v10635_v54 }
  0xd7   : > { %8010 = vmatprep.mubr.msk.bf16.mxu1 %vm10497_vm1, %v10496_v0 }
  0xda   : > { %8635 = vmatmul.mubr.msk.bf16.gmra.mrb[20].mxu0 %vm449_vm2, %v10844_v21  ;;  %v3871_v21 = vor.u32 %v3870_v33, %v3867_v57  ;;  %v3901_v57 = vshrl.u32 %v10931_v47, 16 }
  0xdb   : > { %8638 = vmatprep.mubr.msk.bf16.mxu0 %vm10497_vm1, %v10496_v0 }
  0xdc   : > { %v3872_v51 = vsel %vm3783_vm5, %v10895_v27, %v3871_v21 }
  0xde   : > { %8011 = vmatmul.mubr.msk.bf16.gmra.mrb[20].mxu1 %vm449_vm2, %v10657_v2 }
  0xdf   : > { %8014 = vmatprep.mubr.msk.bf16.mxu1 %vm10497_vm1, %v10496_v0 }
  0xe2   : > { %8639 = vmatmul.mubr.msk.bf16.gmra.mrb[24].mxu0 %vm449_vm2, %v10865_v41  ;;  %v3874_v41 = vshrl.u32 %v10718_v55, 16  ;;  %v3886_v55 = vshll.u32 %v10769_v59, 16  ;;  %v3895_v59 = vshll.u32 %v10893_v48, 16  ;;  %v3904_v48 = vshll.u32 %v10931_v47, 16 }
  0xe3   : > { %8642 = vmatprep.mubr.msk.bf16.mxu0 %vm10497_vm1, %v10496_v0  ;;  %v3913_v47 = vshll.u32 %v10955_v50, 16 }
  0xe4   : > { %v3876_v6 = vrot.slane %v3874_v41, 3  ;;  %v3888_v12 = vrot.slane %v3886_v55, 4  ;;  %v3897_v56 = vrot.slane %v3895_v59, 4  ;;  %v3906_v41 = vrot.slane %v3904_v48, 4 }
  0xe5   : > { %v3919_v55 = vshrl.u32 %v10983_v60, 16 }
  0xe6   : > { %8015 = vmatmul.mubr.msk.bf16.gmra.mrb[24].mxu1 %vm449_vm2, %v10669_v13  ;;  %v3889_v31 = vor.u32 %v3888_v12, %v3885_v20  ;;  %v3898_v53 = vor.u32 %v3897_v56, %v3894_v26 }
  0xe7   : > { %8018 = vmatprep.mubr.msk.bf16.mxu1 %vm10497_vm1, %v10496_v0  ;;  %v3921_v20 = vrot.slane %v3919_v55, 3 }
  0xe8   : > { %v3899_v33 = vsel %vm3783_vm5, %v3889_v31, %v3898_v53 }
  0xea   : > { %8643 = vmatmul.mubr.msk.bf16.gmra.mrb[28].mxu0 %vm449_vm2, %v10899_v38  ;;  %v3880_v38 = vor.u32 %v3879_v28, %v3876_v6 }
  0xeb   : > { %8646 = vmatprep.mubr.msk.bf16.mxu0 %vm10497_vm1, %v10496_v0 }
  0xec   : > { %v3881_v27 = vsel %vm3783_vm5, %v3871_v21, %v3880_v38  ;;  %v3890_v1 = vsel %vm3783_vm5, %v3880_v38, %v3889_v31  ;;  %v3903_v21 = vrot.slane %v3901_v57, 3  ;;  %v3915_v38 = vrot.slane %v3913_v47, 4 }
  0xee   : > { %8019 = vmatmul.mubr.msk.bf16.gmra.mrb[28].mxu1 %vm449_vm2, %v10674_v19  ;;  %v3907_v40 = vor.u32 %v3906_v41, %v3903_v21  ;;  %v3946_v41 = vshrl.u32 %v11067_v24, 16 }
  0xef   : > { %8022 = vmatprep.mubr.msk.bf16.mxu1 %vm10497_vm1, %v10496_v0 }
  0xf0   : > { %v3908_v6 = vsel %vm3783_vm5, %v3898_v53, %v3907_v40  ;;  %v3937_v53 = vshrl.u32 %v11039_v63, 16  ;;  %v3948_v47 = vrot.slane %v3946_v41, 3  ;;  %v10421_v41 = vld [vmem:[%s10543_s18 + $0x24] sm:$0xf] }
  0xf2   : > { %8647 = vmatmul.mubr.msk.bf16.gmra.mrb[32].mxu0 %vm449_vm2, %v3872_v51  ;;  %v3910_v51 = vshrl.u32 %v10955_v50, 16  ;;  %v3922_v50 = vshll.u32 %v10983_v60, 16  ;;  %v3931_v60 = vshll.u32 %v11011_v49, 16  ;;  %v3940_v49 = vshll.u32 %v11039_v63, 16 }
  0xf3   : > { %8650 = vmatprep.mubr.msk.bf16.mxu0 %vm10497_vm1, %v10496_v0  ;;  %v3939_v48 = vrot.slane %v3937_v53, 3  ;;  %v3949_v63 = vshll.u32 %v11067_v24, 16 }
  0xf4   : > { %v3912_v28 = vrot.slane %v3910_v51, 3  ;;  %v3924_v12 = vrot.slane %v3922_v50, 4  ;;  %v3933_v26 = vrot.slane %v3931_v60, 4 }
  0xf6   : > { %8023 = vmatmul.mubr.msk.bf16.gmra.mrb[32].mxu1 %vm449_vm2, %v10681_v25  ;;  %v3916_v32 = vor.u32 %v3915_v38, %v3912_v28  ;;  %v3925_v31 = vor.u32 %v3924_v12, %v3921_v20 }
  0xf7   : > { %8026 = vmatprep.mubr.msk.bf16.mxu1 %vm10497_vm1, %v10496_v0 }
  0xf8   : > { %v3926_v59 = vsel %vm3783_vm5, %v3916_v32, %v3925_v31 }
  0xfa   : > { %8651 = vmatmul.mubr.msk.bf16.gmra.mrb[36].mxu0 %vm449_vm2, %v3881_v27  ;;  %v3917_v27 = vsel %vm3783_vm5, %v3907_v40, %v3916_v32  ;;  %v11272_v40 = vld [vmem:[%s10543_s18 + $0xa8] sm:$0xf] }
  0xfb   : > { %8654 = vmatprep.mubr.msk.bf16.mxu0 %vm10497_vm1, %v10496_v0  ;;  %v7297_v28 = vcombine.low %v11272_v40, %v11272_v40 }
  0xfd   : > { %v3955_v38 = vshrl.u32 %v7297_v28, 16  ;;  %v3958_v32 = vshll.u32 %v7297_v28, 16  ;;  %v13190_v28 = vshll.u32 %v10569_v16, 16 }
  0xfe   : > { %8027 = vmatmul.mubr.msk.bf16.gmra.mrb[36].mxu1 %vm449_vm2, %v10687_v29 }
  0xff   : > { %8030 = vmatprep.mubr.msk.bf16.mxu1 %vm10497_vm1, %v10496_v0  ;;  %v3957_v50 = vrot.slane %v3955_v38, 3  ;;  %v13191_v38 = vshrl.u32 %v10569_v16, 16 }
 0x102   : > { %8655 = vmatmul.mubr.msk.bf16.gmra.mrb[40].mxu0 %vm449_vm2, %v3890_v1  ;;  %v3930_v1 = vrot.slane %v3928_v10, 3  ;;  %v10418_v10 = vld [vmem:[%s10543_s18 + $0x4] sm:$0xf] }
 0x103   : > { %8658 = vmatprep.mubr.msk.bf16.mxu0 %vm10497_vm1, %v10496_v0 }
 0x104   : > { %v3934_v56 = vor.u32 %v3933_v26, %v3930_v1  ;;  %v936_v26 = vrot.slane %v11133_v42, 1 }
 0x106   : > { %8031 = vmatmul.mubr.msk.bf16.gmra.mrb[40].mxu1 %vm449_vm2, %v10698_v36  ;;  %v3935_v57 = vsel %vm3783_vm5, %v3925_v31, %v3934_v56  ;;  %v927_v31 = vld [vmem:[%s10543_s18] sm:$0xe] }
 0x107   : > { %8034 = vmatprep.mubr.msk.bf16.mxu1 %vm10497_vm1, %v10496_v0  ;;  %v11300_v60 = vcombine.low %v927_v31, %v10418_v10  ;;  %v10427_v10 = vld [vmem:[%s10543_s18 + $0x34] sm:$0xf] }
 0x109   : > { %v935_v1 = vrot.slane %v11300_v60, 1 }
 0x10a   : > { %8659 = vmatmul.mubr.msk.bf16.gmra.mrb[44].mxu0 %vm449_vm2, %v3899_v33  ;;  %v3942_v33 = vrot.slane %v3940_v49, 4  ;;  %v13189_v49 = vcombine.low %v10550_v7, %v10553_v8  ;;  %v938_v8 = vrot.slane %v11144_v15, 1  ;;  %v10423_v15 = vld [vmem:[%s10543_s18 + $0x18] sm:$0xff]  }
 0x10b   : > { %8662 = vmatprep.mubr.msk.bf16.mxu0 %vm10497_vm1, %v10496_v0 }
 0x10c   : > { %v3943_v21 = vor.u32 %v3942_v33, %v3939_v48  ;;  %v10419_v48 = vld [vmem:[%s10543_s18 + $0x1c] sm:$0xf]  ;;  %v10420_v33 = vld [vmem:[%s10543_s18 + $0x20] sm:$0xf] }
 0x10d   : > { %v7321_v7 = vcombine.low %v10419_v48, %v10420_v33  ;;  %v10432_v48 = vld [vmem:[%s10543_s18 + $0x30] sm:$0xff]  }
 0x10e   : > { %8035 = vmatmul.mubr.msk.bf16.gmra.mrb[44].mxu1 %vm449_vm2, %v10742_v23  ;;  %v3944_v51 = vsel %vm3783_vm5, %v3934_v56, %v3943_v21  ;;  %v10321_v56 = vld [vmem:[%s13080_s1 + $0x18] sm:$0x3f]   ;;  %v946_v33 = vrot.slane %v10432_v48, 1 }
 0x10f   : > { %8038 = vmatprep.mubr.msk.bf16.mxu1 %vm10497_vm1, %v10496_v0  ;;  %v1422_v42 = vsel %vm507_vm0, %v10321_v56, 0  ;;  %v10447_v48 = vld [vmem:[%s10543_s18 + $0x58] sm:$0xff]  }
 0x112   : > { %8663 = vmatmul.mubr.msk.bf16.gmra.mrb[48].mxu0 %vm449_vm2, %v3908_v6  ;;  %v3951_v6 = vrot.slane %v3949_v63, 4  ;;  %v10422_v63 = vld [vmem:[%s10543_s18 + $0x28] sm:$0xf] }
 0x113   : > { %8666 = vmatprep.mubr.msk.bf16.mxu0 %vm10497_vm1, %v10496_v0 }
 0x114   : > { %v3952_v24 = vor.u32 %v3951_v6, %v3948_v47  ;;  %v940_v47 = vrot.slane %v10423_v15, 1 }
 0x116   : > { %8039 = vmatmul.mubr.msk.bf16.gmra.mrb[48].mxu1 %vm449_vm2, %v10764_v45  ;;  %v3953_v55 = vsel %vm3783_vm5, %v3943_v21, %v3952_v24  ;;  %v939_v21 = vsel %vm934_vm6, %v936_v26, %v938_v8  ;;  %v941_v6 = vsel %vm934_vm6, %v938_v8, %v940_v47  ;;  %v10433_v8 = vld [vmem:[%s10543_s18 + $0x44] sm:$0xf] }
 0x117   : > { %8042 = vmatprep.mubr.msk.bf16.mxu1 %vm10497_vm1, %v10496_v0 }
 0x11a   : > { %8667 = vmatmul.mubr.msk.bf16.gmra.mrb[52].mxu0 %vm449_vm2, %v3917_v27  ;;  %v3960_v27 = vrot.slane %v3958_v32, 4  ;;  %v1278_v32 = vrot.slane %v13191_v38, 1 }
 0x11b   : > { %8670 = vmatprep.mubr.msk.bf16.mxu0 %vm10497_vm1, %v10496_v0 }
 0x11c   : > { %v3961_v20 = vor.u32 %v3960_v27, %v3957_v50  ;;  %v10425_v50 = vld [vmem:[%s10543_s18 + $0x30] sm:$0xf] }
 0x11e   : > { %8043 = vmatmul.mubr.msk.bf16.gmra.mrb[52].mxu1 %vm449_vm2, %v10917_v17  ;;  %v3962_v12 = vsel %vm3783_vm5, %v3952_v24, %v3961_v20  ;;  %v1279_v24 = vrot.slane %v13190_v28, 2  ;;  %v10426_v20 = vld [vmem:[%s10543_s18 + $0x20] sm:$0xff]  }
 0x11f   : > { %8046 = vmatprep.mubr.msk.bf16.mxu1 %vm10497_vm1, %v10496_v0 }
 0x120   : > { %v11358_v31 = vor.u32 %v1279_v24, %v1278_v32  ;;  %v10438_v24 = vld [vmem:[%s10543_s18 + $0x40] sm:$0xff]  }
 0x121   : > { %v950_v38 = vrot.slane %v10438_v24, 1  ;;  %v7335_v24 = vcombine.low %v10971_v18, %v10996_v44  ;;  %v968_v44 = vrot.slane %v11042_v35, 1 }
 0x122   : > { %8671 = vmatmul.mubr.msk.bf16.gmra.mrb[56].mxu0 %vm449_vm2, %v3926_v59  ;;  %v10322_v59 = vld [vmem:[%s13080_s1 + $0x58] sm:$0x3f]  }
 0x123   : > { %8674 = vmatprep.mubr.msk.bf16.mxu0 %vm10497_vm1, %v10496_v0  ;;  %v4920_v53 = vsel %vm507_vm0, %v10322_v59, 0  ;;  %v10428_v59 = vld [vmem:[%s10543_s18 + $0x38] sm:$0xf] }
 0x126   : > { %8047 = vmatmul.mubr.msk.bf16.gmra.mrb[56].mxu1 %vm449_vm2, %v10958_v62 }
 0x127   : > { %8050 = vmatprep.mubr.msk.bf16.mxu1 %vm10497_vm1, %v10496_v0 }
 0x12a   : > { %8675 = vmatmul.mubr.msk.bf16.gmra.mrb[60].mxu0 %vm449_vm2, %v3935_v57  ;;  %v937_v57 = vsel %vm934_vm6, %v935_v1, %v936_v26  ;;  %v7324_v1 = vcombine.low %v10427_v10, %v10428_v59  ;;  %v10429_v26 = vld [vmem:[%s10543_s18 + $0x28] sm:$0xff]   ;;  %v10442_v10 = vld [vmem:[%s10543_s18 + $0x5c] sm:$0xf]  ;;  %v10443_v59 = vld [vmem:[%s10543_s18 + $0x60] sm:$0xf] }
 0x12b   : > { %8678 = vmatprep.mubr.msk.bf16.mxu0 %vm10497_vm1, %v10496_v0  ;;  %v944_v56 = vrot.slane %v10429_v26, 1  ;;  %v10444_v26 = vld [vmem:[%s10543_s18 + $0x50] sm:$0xff]  }
 0x12e   : > { %8051 = vmatmul.mubr.msk.bf16.gmra.mrb[60].mxu1 %vm449_vm2, %v10986_v39 }
 0x12f   : > { %8054 = vmatprep.mubr.msk.bf16.mxu1 %vm10497_vm1, %v10496_v0 }
 0x132   : > { %8679 = vmatmul.mubr.msk.bf16.gmra.mrb[64].mxu0 %vm449_vm2, %v3944_v51  ;;  %v7322_v51 = vcombine.low %v10421_v41, %v10422_v63  ;;  %v10435_v63 = vld [vmem:[%s10543_s18 + $0x38] sm:$0xff]  }
 0x133   : > { %8682 = vmatprep.mubr.msk.bf16.mxu0 %vm10497_vm1, %v10496_v0 }
 0x136   : > { %8055 = vmatmul.mubr.msk.bf16.gmra.mrb[64].mxu1 %vm449_vm2, %v11014_v37 }
 0x137   : > { %8058 = vmatprep.mubr.msk.bf16.mxu1 %vm10497_vm1, %v10496_v0 }
 0x13a   : > { %8683 = vmatmul.mubr.msk.bf16.gmra.mrb[68].mxu0 %vm449_vm2, %v3953_v55  ;;  %v10424_v55 = vld [vmem:[%s10543_s18 + $0x2c] sm:$0xf] }
 0x13b   : > { %8686 = vmatprep.mubr.msk.bf16.mxu0 %vm10497_vm1, %v10496_v0  ;;  %v7323_v27 = vcombine.low %v10424_v55, %v10425_v50  ;;  %v10439_v55 = vld [vmem:[%s10543_s18 + $0x54] sm:$0xf]  ;;  %v10440_v50 = vld [vmem:[%s10543_s18 + $0x58] sm:$0xf] }
 0x13e   : > { %8059 = vmatmul.mubr.msk.bf16.gmra.mrb[68].mxu1 %vm449_vm2, %v11042_v35 }
 0x13f   : > { %8062 = vmatprep.mubr.msk.bf16.mxu1 %vm10497_vm1, %v10496_v0 }
 0x142   : > { %8687 = vmatmul.mubr.msk.bf16.gmra.mrb[72].mxu0 %vm449_vm2, %v3962_v12  ;;  %v942_v12 = vrot.slane %v10426_v20, 1  ;;  %v10441_v20 = vld [vmem:[%s10543_s18 + $0x48] sm:$0xff]  }
 0x143   : > { %8692 = vmatprep.mubr.msk.bf16.mxu0 %vm10497_vm1, %v10496_v0 }
 0x144   : > { %v943_v16 = vsel %vm934_vm6, %v940_v47, %v942_v12  ;;  %v10436_v47 = vld [vmem:[%s10543_s18 + $0x4c] sm:$0xf] }
 0x146   : > { %8063 = vmatmul.mubr.msk.bf16.gmra.mrb[72].mxu1 %vm449_vm2, %v11070_v11 }
 0x147   : > { %8068 = vmatprep.mubr.msk.bf16.mxu1 %vm10497_vm1, %v10496_v0 }
 0x14a   : > { %8693 = vmatmul.mubr.msk.bf16.vlgmr.msra.gmra.mrb[0].mxu0 %vm449_vm2, %v13189_v49  ;;  %v10430_v49 = vld [vmem:[%s10543_s18 + $0x3c] sm:$0xf] }
 0x14b   : > { %8769 = vmatpush3.bf16.msra.mxu0 %v4920_v53  ;;  %8696 = vmatprep.mubr.msk.bf16.mxu0 %vm10497_vm1, %v10496_v0  ;;  %v945_v53 = vsel %vm934_vm6, %v942_v12, %v944_v56  ;;  %v952_v12 = vrot.slane %v10441_v20, 1  ;;  %v10342_v20 = vld [vmem:[%s10543_s18 + $0x1c] sm:$0xff]  }
 0x14c   : > { %8846 = vmatprep.subr.bf16.mxu0 %v10496_v0 }
 0x14e   : > { %8069 = vmatmul.mubr.msk.bf16.vlgmr.msra.gmra.mrb[0].mxu1 %vm449_vm2, %v937_v57  ;;  %v10431_v57 = vld [vmem:[%s10543_s18 + $0x40] sm:$0xf] }
 0x14f   : > { %8145 = vmatpush3.bf16.msra.mxu1 %v1422_v42  ;;  %8072 = vmatprep.mubr.msk.bf16.mxu1 %vm10497_vm1, %v10496_v0  ;;  %v7325_v42 = vcombine.low %v10430_v49, %v10431_v57  ;;  %v10445_v49 = vld [vmem:[%s10543_s18 + $0x64] sm:$0xf]  ;;  %v10446_v57 = vld [vmem:[%s10543_s18 + $0x68] sm:$0xf] }
 0x150   : > { %8222 = vmatprep.subr.bf16.mxu1 %v10496_v0 }
 0x152   : > { %8697 = vmatmul.mubr.msk.bf16.gmra.mrb[4].mxu0 %vm449_vm2, %v7321_v7  ;;  %v947_v7 = vsel %vm934_vm6, %v944_v56, %v946_v33  ;;  %v954_v56 = vrot.slane %v10444_v26, 1 }
 0x153   : > { %8700 = vmatprep.mubr.msk.bf16.mxu0 %vm10497_vm1, %v10496_v0 }
 0x156   : > { %8073 = vmatmul.mubr.msk.bf16.gmra.mrb[4].mxu1 %vm449_vm2, %v939_v21  ;;  %v10434_v21 = vld [vmem:[%s10543_s18 + $0x48] sm:$0xf] }
 0x157   : > { %8076 = vmatprep.mubr.msk.bf16.mxu1 %vm10497_vm1, %v10496_v0  ;;  %v7326_v41 = vcombine.low %v10433_v8, %v10434_v21  ;;  %v10448_v8 = vld [vmem:[%s10543_s18 + $0x6c] sm:$0xf] }
 0x158   : > { %v7331_v21 = vcombine.low %v10448_v8, %v10869_v22  ;;  %v960_v22 = vrot.slane %v10917_v17, 1 }
 0x15a   : > { %8701 = vmatmul.mubr.msk.bf16.gmra.mrb[8].mxu0 %vm449_vm2, %v7322_v51  ;;  %v948_v51 = vrot.slane %v10435_v63, 1 }
 0x15b   : > { %8704 = vmatprep.mubr.msk.bf16.mxu0 %vm10497_vm1, %v10496_v0 }
 0x15c   : > { %v949_v15 = vsel %vm934_vm6, %v946_v33, %v948_v51  ;;  %v951_v32 = vsel %vm934_vm6, %v948_v51, %v950_v38  ;;  %v956_v33 = vrot.slane %v10447_v48, 1 }
 0x15e   : > { %8077 = vmatmul.mubr.msk.bf16.gmra.mrb[8].mxu1 %vm449_vm2, %v941_v6  ;;  %v10437_v6 = vld [vmem:[%s10543_s18 + $0x50] sm:$0xf] }
 0x15f   : > { %8080 = vmatprep.mubr.msk.bf16.mxu1 %vm10497_vm1, %v10496_v0  ;;  %v7327_v28 = vcombine.low %v10436_v47, %v10437_v6  ;;  %v7333_v6 = vcombine.low %v10906_v5, %v10935_v9  ;;  %v964_v5 = vrot.slane %v10986_v39, 1 }
 0x162   : > { %8705 = vmatmul.mubr.msk.bf16.gmra.mrb[12].mxu0 %vm449_vm2, %v7323_v27  ;;  %v7328_v27 = vcombine.low %v10439_v55, %v10440_v50  ;;  %v13193_v55 = vld [vmem:[#allocation3_spill] sm:$0xff] }
 0x163   : > { %8708 = vmatprep.mubr.msk.bf16.mxu0 %vm10497_vm1, %v10496_v0 }
 0x166   : > { %8081 = vmatmul.mubr.msk.bf16.gmra.mrb[12].mxu1 %vm449_vm2, %v943_v16  ;;  %v953_v16 = vsel %vm934_vm6, %v950_v38, %v952_v12  ;;  %v7336_v38 = vcombine.low %v10999_v61, %v11024_v14  ;;  %v970_v61 = vrot.slane %v11070_v11, 1  ;;  %v10341_v14 = vld [vmem:[%s10543_s18 + $0x14] sm:$0xff]  }
 0x167   : > { %8084 = vmatprep.mubr.msk.bf16.mxu1 %vm10497_vm1, %v10496_v0 }
 0x16a   : > { %8709 = vmatmul.mubr.msk.bf16.gmra.mrb[16].mxu0 %vm449_vm2, %v7324_v1  ;;  %v7329_v1 = vcombine.low %v10442_v10, %v10443_v59  ;;  %v972_v59 = vrot.slane %v11089_v46, 1 }
 0x16b   : > { %8712 = vmatprep.mubr.msk.bf16.mxu0 %vm10497_vm1, %v10496_v0 }
 0x16e   : > { %8085 = vmatmul.mubr.msk.bf16.gmra.mrb[16].mxu1 %vm449_vm2, %v945_v53  ;;  %v955_v53 = vsel %vm934_vm6, %v952_v12, %v954_v56  ;;  %v4704_v12 = vshll.u32 %v10341_v14, 16 }
 0x16f   : > { %8088 = vmatprep.mubr.msk.bf16.mxu1 %vm10497_vm1, %v10496_v0 }
 0x170   : > { %v4706_v26 = vrot.slane %v4704_v12, 1 }
 0x172   : > { %8713 = vmatmul.mubr.msk.bf16.gmra.mrb[20].mxu0 %vm449_vm2, %v7325_v42  ;;  %v7330_v42 = vcombine.low %v10445_v49, %v10446_v57  ;;  %v1274_v49 = vshll.u32 %v11300_v60, 16  ;;  %v973_v57 = vsel %vm934_vm6, %v970_v61, %v972_v59  ;;  %v13200_v59 = vshrl.u32 %v10635_v54, 16 }
 0x173   : > { %8716 = vmatprep.mubr.msk.bf16.mxu0 %vm10497_vm1, %v10496_v0 }
 0x174   : > { %v1276_v48 = vrot.slane %v1274_v49, 2 }
 0x176   : > { %8089 = vmatmul.mubr.msk.bf16.gmra.mrb[20].mxu1 %vm449_vm2, %v947_v7  ;;  %v957_v7 = vsel %vm934_vm6, %v954_v56, %v956_v33  ;;  %v4709_v56 = vshll.u32 %v10342_v20, 16 }
 0x177   : > { %8092 = vmatprep.mubr.msk.bf16.mxu1 %vm10497_vm1, %v10496_v0 }
 0x17a   : > { %8717 = vmatmul.mubr.msk.bf16.gmra.mrb[24].mxu0 %vm449_vm2, %v7326_v41  ;;  %v10449_v41 = vld [vmem:[%s10543_s18 + $0x60] sm:$0xff]  }
 0x17b   : > { %8720 = vmatprep.mubr.msk.bf16.mxu0 %vm10497_vm1, %v10496_v0  ;;  %v958_v63 = vrot.slane %v10449_v41, 1 }
 0x17d   : > { %v959_v51 = vsel %vm934_vm6, %v956_v33, %v958_v63  ;;  %v961_v47 = vsel %vm934_vm6, %v958_v63, %v960_v22  ;;  %v10345_v33 = vld [vmem:[%s10543_s18 + $0x24] sm:$0xff]  }
 0x17e   : > { %8093 = vmatmul.mubr.msk.bf16.gmra.mrb[24].mxu1 %vm449_vm2, %v949_v15  ;;  %v7332_v15 = vcombine.low %v10872_v52, %v10903_v30  ;;  %v962_v52 = vrot.slane %v10958_v62, 1  ;;  %v4717_v41 = vshll.u32 %v10345_v33, 16  ;;  %v10343_v63 = vld [vmem:[%s13080_s1 + $0x20] sm:$0x3f]  }
 0x17f   : > { %8096 = vmatprep.mubr.msk.bf16.mxu1 %vm10497_vm1, %v10496_v0 }
 0x180   : > { %v963_v30 = vsel %vm934_vm6, %v960_v22, %v962_v52  ;;  %v965_v9 = vsel %vm934_vm6, %v962_v52, %v964_v5 }
 0x182   : > { %8721 = vmatmul.mubr.msk.bf16.gmra.mrb[28].mxu0 %vm449_vm2, %v7327_v28  ;;  %v7334_v28 = vcombine.low %v10938_v58, %v10968_v4  ;;  %v966_v58 = vrot.slane %v11014_v37, 1 }
 0x183   : > { %8724 = vmatprep.mubr.msk.bf16.mxu0 %vm10497_vm1, %v10496_v0 }
 0x184   : > { %v967_v4 = vsel %vm934_vm6, %v964_v5, %v966_v58  ;;  %v969_v18 = vsel %vm934_vm6, %v966_v58, %v968_v44  ;;  %v4719_v5 = vrot.slane %v4717_v41, 1 }
 0x186   : > { %8097 = vmatmul.mubr.msk.bf16.gmra.mrb[28].mxu1 %vm449_vm2, %v951_v32  ;;  %v13192_v32 = vld [vmem:[#allocation4_spill] sm:$0xff] }
 0x187   : > { %8100 = vmatprep.mubr.msk.bf16.mxu1 %vm10497_vm1, %v10496_v0  ;;  %v7337_v50 = vcombine.low %v13193_v55, %v13192_v32 }
 0x18a   : > { %8725 = vmatmul.mubr.msk.bf16.gmra.mrb[32].mxu0 %vm449_vm2, %v7328_v27  ;;  %v971_v27 = vsel %vm934_vm6, %v968_v44, %v970_v61 }
 0x18b   : > { %8728 = vmatprep.mubr.msk.bf16.mxu0 %vm10497_vm1, %v10496_v0 }
 0x18e   : > { %8101 = vmatmul.mubr.msk.bf16.gmra.mrb[32].mxu1 %vm449_vm2, %v953_v16  ;;  %v13194_v16 = vld [vmem:[#allocation5_spill] sm:$0xff] }
 0x18f   : > { %8104 = vmatprep.mubr.msk.bf16.mxu1 %vm10497_vm1, %v10496_v0  ;;  %v7338_v10 = vcombine.low %v13194_v16, %v11272_v40 }
 0x192   : > { %8729 = vmatmul.mubr.msk.bf16.gmra.mrb[36].mxu0 %vm449_vm2, %v7329_v1  ;;  %v4702_v1 = vshrl.u32 %v10341_v14, 16  ;;  %v13199_v14 = vshll.u32 %v10612_v43, 16 }
 0x193   : > { %8732 = vmatprep.mubr.msk.bf16.mxu0 %vm10497_vm1, %v10496_v0 }
 0x194   : > { %v4707_v40 = vor.u32 %v4706_v26, %v4702_v1  ;;  %v1290_v1 = vrot.slane %v13200_v59, 1 }
 0x196   : > { %8105 = vmatmul.mubr.msk.bf16.gmra.mrb[36].mxu1 %vm449_vm2, %v955_v53  ;;  %v1271_v53 = vshrl.u32 %v11300_v60, 16 }
 0x197   : > { %8108 = vmatprep.mubr.msk.bf16.mxu1 %vm10497_vm1, %v10496_v0 }
 0x198   : > { %v1273_v46 = vrot.slane %v1271_v53, 1 }
 0x19a   : > { %8733 = vmatmul.mubr.msk.bf16.gmra.mrb[40].mxu0 %vm449_vm2, %v7330_v42  ;;  %v4711_v42 = vrot.slane %v4709_v56, 1  ;;  %v1277_v8 = vor.u32 %v1276_v48, %v1273_v46 }
 0x19b   : > { %8736 = vmatprep.mubr.msk.bf16.mxu0 %vm10497_vm1, %v10496_v0 }
 0x19c   : > { %v4712_v60 = vsel %vm287_vm4, %v4707_v40, %v4711_v42 }
 0x19e   : > { %8109 = vmatmul.mubr.msk.bf16.gmra.mrb[40].mxu1 %vm449_vm2, %v957_v7  ;;  %v10344_v7 = vld [vmem:[%s13080_s1 + $0x60] sm:$0x3f]  }
 0x19f   : > { %8112 = vmatprep.mubr.msk.bf16.mxu1 %vm10497_vm1, %v10496_v0 }
 0x1a2   : > { %8737 = vmatmul.mubr.msk.bf16.gmra.mrb[44].mxu0 %vm449_vm2, %v7331_v21  ;;  %v4713_v21 = vshrl.u32 %v10342_v20, 16  ;;  %v10347_v20 = vld [vmem:[%s10543_s18 + $0x34] sm:$0xff]  }
 0x1a3   : > { %8740 = vmatprep.mubr.msk.bf16.mxu0 %vm10497_vm1, %v10496_v0  ;;  %v4737_v46 = vshrl.u32 %v10347_v20, 16 }
 0x1a6   : > { %8113 = vmatmul.mubr.msk.bf16.gmra.mrb[44].mxu1 %vm449_vm2, %v959_v51  ;;  %v5504_v51 = vsel %vm507_vm0, %v10344_v7, 0 }
 0x1a7   : > { %8116 = vmatprep.mubr.msk.bf16.mxu1 %vm10497_vm1, %v10496_v0 }
 0x1aa   : > { %8741 = vmatmul.mubr.msk.bf16.gmra.mrb[48].mxu0 %vm449_vm2, %v7332_v15  ;;  %v13195_v15 = vld [vmem:[#allocation2_spill] sm:$0xff] }
 0x1ab   : > { %8744 = vmatprep.mubr.msk.bf16.mxu0 %vm10497_vm1, %v10496_v0  ;;  %v13196_v22 = vshrl.u32 %v13195_v15, 16 }
 0x1ae   : > { %8117 = vmatmul.mubr.msk.bf16.gmra.mrb[48].mxu1 %vm449_vm2, %v961_v47  ;;  %v1282_v47 = vrot.slane %v13196_v22, 1 }
 0x1af   : > { %8120 = vmatprep.mubr.msk.bf16.mxu1 %vm10497_vm1, %v10496_v0 }
 0x1b2   : > { %8745 = vmatmul.mubr.msk.bf16.gmra.mrb[52].mxu0 %vm449_vm2, %v7333_v6  ;;  %v13197_v6 = vshll.u32 %v13195_v15, 16 }
 0x1b3   : > { %8748 = vmatprep.mubr.msk.bf16.mxu0 %vm10497_vm1, %v10496_v0 }
 0x1b4   : > { %v1283_v52 = vrot.slane %v13197_v6, 2  ;;  %v13204_v6 = vshrl.u32 %v10669_v13, 16 }
 0x1b6   : > { %8121 = vmatmul.mubr.msk.bf16.gmra.mrb[52].mxu1 %vm449_vm2, %v963_v30  ;;  %v1281_v30 = vsel %vm1269_vm7, %v1277_v8, %v11358_v31  ;;  %v1284_v58 = vor.u32 %v1283_v52, %v1282_v47  ;;  %v1298_v52 = vrot.slane %v13204_v6, 1 }
 0x1b7   : > { %8124 = vmatprep.mubr.msk.bf16.mxu1 %vm10497_vm1, %v10496_v0 }
 0x1ba   : > { %8749 = vmatmul.mubr.msk.bf16.gmra.mrb[56].mxu0 %vm449_vm2, %v7334_v28  ;;  %v4715_v28 = vor.u32 %v4713_v21, %v4711_v42  ;;  %v13203_v21 = vshll.u32 %v10657_v2, 16 }
 0x1bb   : > { %8752 = vmatprep.mubr.msk.bf16.mxu0 %vm10497_vm1, %v10496_v0 }
 0x1bc   : > { %v1295_v41 = vrot.slane %v13203_v21, 2 }
 0x1be   : > { %8125 = vmatmul.mubr.msk.bf16.gmra.mrb[56].mxu1 %vm449_vm2, %v965_v9  ;;  %v10346_v9 = vld [vmem:[%s10543_s18 + $0x2c] sm:$0xff]  }
 0x1bf   : > { %8128 = vmatprep.mubr.msk.bf16.mxu1 %vm10497_vm1, %v10496_v0  ;;  %v4725_v44 = vshll.u32 %v10346_v9, 16  ;;  %v4729_v16 = vshrl.u32 %v10346_v9, 16 }
 0x1c1   : > { %v4727_v55 = vrot.slane %v4725_v44, 1 }
 0x1c2   : > { %8753 = vmatmul.mubr.msk.bf16.gmra.mrb[60].mxu0 %vm449_vm2, %v7335_v24  ;;  %v2029_v24 = vsel %vm507_vm0, %v10343_v63, 0  ;;  %v10349_v63 = vld [vmem:[%s10543_s18 + $0x44] sm:$0xff]  }
 0x1c3   : > { %8756 = vmatprep.mubr.msk.bf16.mxu0 %vm10497_vm1, %v10496_v0  ;;  %v4731_v53 = vor.u32 %v4729_v16, %v4727_v55  ;;  %v4749_v47 = vshll.u32 %v10349_v63, 16 }
 0x1c5   : > { %v4751_v9 = vrot.slane %v4749_v47, 1 }
 0x1c6   : > { %8129 = vmatmul.mubr.msk.bf16.gmra.mrb[60].mxu1 %vm449_vm2, %v967_v4  ;;  %v4720_v4 = vsel %vm287_vm4, %v4715_v28, %v4719_v5 }
 0x1c7   : > { %8132 = vmatprep.mubr.msk.bf16.mxu1 %vm10497_vm1, %v10496_v0 }
 0x1ca   : > { %8757 = vmatmul.mubr.msk.bf16.gmra.mrb[64].mxu0 %vm449_vm2, %v7336_v38  ;;  %v4721_v38 = vshrl.u32 %v10345_v33, 16 }
 0x1cb   : > { %8760 = vmatprep.mubr.msk.bf16.mxu0 %vm10497_vm1, %v10496_v0 }
 0x1cc   : > { %v4723_v32 = vor.u32 %v4721_v38, %v4719_v5  ;;  %v4753_v38 = vshrl.u32 %v10349_v63, 16 }
 0x1ce   : > { %8133 = vmatmul.mubr.msk.bf16.gmra.mrb[64].mxu1 %vm449_vm2, %v969_v18  ;;  %v1285_v18 = vsel %vm1269_vm7, %v11358_v31, %v1284_v58  ;;  %v4728_v12 = vsel %vm287_vm4, %v4723_v32, %v4727_v55  ;;  %v13206_v55 = vshrl.u32 %v10674_v19, 16 }
 0x1cf   : > { %8136 = vmatprep.mubr.msk.bf16.mxu1 %vm10497_vm1, %v10496_v0 }
 0x1d2   : > { %8761 = vmatmul.mubr.msk.bf16.gmra.mrb[68].mxu0 %vm449_vm2, %v7337_v50  ;;  %v13198_v50 = vshrl.u32 %v10612_v43, 16  ;;  %v13201_v43 = vshll.u32 %v10635_v54, 16 }
 0x1d3   : > { %8764 = vmatprep.mubr.msk.bf16.mxu0 %vm10497_vm1, %v10496_v0 }
 0x1d4   : > { %v1286_v61 = vrot.slane %v13198_v50, 1  ;;  %v1291_v26 = vrot.slane %v13201_v43, 2  ;;  %v1302_v50 = vrot.slane %v13206_v55, 1 }
 0x1d6   : > { %8137 = vmatmul.mubr.msk.bf16.gmra.mrb[68].mxu1 %vm449_vm2, %v971_v27  ;;  %v1287_v27 = vrot.slane %v13199_v14, 2  ;;  %v1292_v40 = vor.u32 %v1291_v26, %v1290_v1 }
 0x1d7   : > { %8140 = vmatprep.mubr.msk.bf16.mxu1 %vm10497_vm1, %v10496_v0 }
 0x1d8   : > { %v1288_v31 = vor.u32 %v1287_v27, %v1286_v61  ;;  %v13207_v61 = vshll.u32 %v10674_v19, 16  ;;  %v10351_v27 = vld [vmem:[%s10543_s18 + $0x54] sm:$0xff]   ;;  %v13209_v19 = vshll.u32 %v10681_v25, 16 }
 0x1d9   : > { %v4765_v16 = vshll.u32 %v10351_v27, 16 }
 0x1da   : > { %8765 = vmatmul.mubr.msk.bf16.gmra.mrb[72].mxu0 %vm449_vm2, %v7338_v10  ;;  %v4733_v10 = vshll.u32 %v10347_v20, 16  ;;  %v1289_v56 = vsel %vm1269_vm7, %v1284_v58, %v1288_v31  ;;  %v1293_v48 = vsel %vm1269_vm7, %v1288_v31, %v1292_v40  ;;  %v1303_v14 = vrot.slane %v13207_v61, 2 }
 0x1db   : > { %8770 = vmatprep.mubr.msk.bf16.mxu0 %vm10497_vm1, %v10496_v0  ;;  %v1307_v1 = vrot.slane %v13209_v19, 2 }
 0x1dc   : > { %v4735_v49 = vrot.slane %v4733_v10, 1  ;;  %v13208_v10 = vshrl.u32 %v10681_v25, 16 }
 0x1de   : > { %8141 = vmatmul.mubr.msk.bf16.gmra.mrb[72].mxu1 %vm449_vm2, %v973_v57  ;;  %v10348_v57 = vld [vmem:[%s10543_s18 + $0x3c] sm:$0xff]   ;;  %v4736_v42 = vsel %vm287_vm4, %v4731_v53, %v4735_v49  ;;  %v4739_v33 = vor.u32 %v4737_v46, %v4735_v49  ;;  %v1306_v59 = vrot.slane %v13208_v10, 1 }
 0x1df   : > { %8146 = vmatprep.mubr.msk.bf16.mxu1 %vm10497_vm1, %v10496_v0  ;;  %v4741_v54 = vshll.u32 %v10348_v57, 16  ;;  %v4745_v22 = vshrl.u32 %v10348_v57, 16  ;;  %v10352_v53 = vld [vmem:[%s10543_s18 + $0x5c] sm:$0xff]  }
 0x1e0   : > { %v1308_v49 = vor.u32 %v1307_v1, %v1306_v59  ;;  %v4773_v25 = vshll.u32 %v10352_v53, 16  ;;  %v4777_v63 = vshrl.u32 %v10352_v53, 16  ;;  %v10356_v59 = vld [vmem:[%s10543_s18 + $0x7c] sm:$0xff]  }
 0x1e1   : > { %v4743_v7 = vrot.slane %v4741_v54, 1 }
 0x1e2   : > { %8771 = vmatmul.mubr.msk.bf16.vlgmr.msra.gmra.mrb[0].mxu0 %vm449_vm2, %v4712_v60  ;;  %v13202_v60 = vshrl.u32 %v10657_v2, 16  ;;  %v13205_v2 = vshll.u32 %v10669_v13, 16  ;;  %v4775_v54 = vrot.slane %v4773_v25, 1 }
 0x1e3   : > { %8847 = vmatpush3.bf16.msra.mxu0 %v5504_v51  ;;  %8774 = vmatprep.mubr.msk.bf16.mxu0 %vm10497_vm1, %v10496_v0  ;;  %v4744_v51 = vsel %vm287_vm4, %v4739_v33, %v4743_v7  ;;  %v4747_v5 = vor.u32 %v4745_v22, %v4743_v7  ;;  %v13211_v7 = vshll.u32 %v10687_v29, 16 }
 0x1e4   : > { %8924 = vmatprep.subr.bf16.mxu0 %v10496_v0  ;;  %v1294_v8 = vrot.slane %v13202_v60, 1 }
 0x1e5   : > { %v1311_v60 = vrot.slane %v13211_v7, 2  ;;  %v13220_v7 = vshrl.u32 %v10958_v62, 16 }
 0x1e6   : > { %8147 = vmatmul.mubr.msk.bf16.vlgmr.msra.gmra.mrb[0].mxu1 %vm449_vm2, %v1281_v30  ;;  %v1296_v15 = vor.u32 %v1295_v41, %v1294_v8  ;;  %v1299_v30 = vrot.slane %v13205_v2, 2  ;;  %v10353_v8 = vld [vmem:[%s10543_s18 + $0x64] sm:$0xff]  }
 0x1e7   : > { %8223 = vmatpush3.bf16.msra.mxu1 %v2029_v24  ;;  %8150 = vmatprep.mubr.msk.bf16.mxu1 %vm10497_vm1, %v10496_v0  ;;  %v10350_v24 = vld [vmem:[%s10543_s18 + $0x4c] sm:$0xff]  }
 0x1e8   : > { %8300 = vmatprep.subr.bf16.mxu1 %v10496_v0  ;;  %v1297_v28 = vsel %vm1269_vm7, %v1292_v40, %v1296_v15  ;;  %v1300_v58 = vor.u32 %v1299_v30, %v1298_v52  ;;  %v4757_v13 = vshll.u32 %v10350_v24, 16  ;;  %v4761_v31 = vshrl.u32 %v10350_v24, 16  ;;  %v10354_v30 = vld [vmem:[%s10543_s18 + $0x6c] sm:$0xff]  }
 0x1e9   : > { %v4769_v40 = vshrl.u32 %v10351_v27, 16  ;;  %v4779_v52 = vor.u32 %v4777_v63, %v4775_v54  ;;  %v4793_v61 = vshrl.u32 %v10354_v30, 16  ;;  %v13216_v27 = vshrl.u32 %v10764_v45, 16 }
 0x1ea   : > { %8775 = vmatmul.mubr.msk.bf16.gmra.mrb[4].mxu0 %vm449_vm2, %v4720_v4  ;;  %v4752_v4 = vsel %vm287_vm4, %v4747_v5, %v4751_v9  ;;  %v1301_v44 = vsel %vm1269_vm7, %v1296_v15, %v1300_v58  ;;  %v4759_v32 = vrot.slane %v4757_v13, 1  ;;  %v13212_v15 = vshrl.u32 %v10698_v36, 16 }
 0x1eb   : > { %8778 = vmatprep.mubr.msk.bf16.mxu0 %vm10497_vm1, %v10496_v0 }
 0x1ec   : > { %v4763_v26 = vor.u32 %v4761_v31, %v4759_v32  ;;  %v1314_v22 = vrot.slane %v13212_v15, 1 }
 0x1ee   : > { %8151 = vmatmul.mubr.msk.bf16.gmra.mrb[4].mxu1 %vm449_vm2, %v1285_v18  ;;  %v4755_v18 = vor.u32 %v4753_v38, %v4751_v9  ;;  %v4785_v9 = vshrl.u32 %v10353_v8, 16  ;;  %v13214_v38 = vshrl.u32 %v10742_v23, 16 }
 0x1ef   : > { %8154 = vmatprep.mubr.msk.bf16.mxu1 %vm10497_vm1, %v10496_v0 }
 0x1f0   : > { %v4760_v20 = vsel %vm287_vm4, %v4755_v18, %v4759_v32  ;;  %v1318_v13 = vrot.slane %v13214_v38, 1  ;;  %v10355_v32 = vld [vmem:[%s10543_s18 + $0x74] sm:$0xff]   ;;  %v13224_v38 = vshrl.u32 %v11014_v37, 16 }
 0x1f2   : > { %8779 = vmatmul.mubr.msk.bf16.gmra.mrb[8].mxu0 %vm449_vm2, %v4728_v12  ;;  %v1304_v12 = vor.u32 %v1303_v14, %v1302_v50  ;;  %v4797_v14 = vshll.u32 %v10355_v32, 16 }
 0x1f3   : > { %8782 = vmatprep.mubr.msk.bf16.mxu0 %vm10497_vm1, %v10496_v0 }
 0x1f4   : > { %v1305_v43 = vsel %vm1269_vm7, %v1300_v58, %v1304_v12  ;;  %v4799_v10 = vrot.slane %v4797_v14, 1 }
 0x1f6   : > { %8155 = vmatmul.mubr.msk.bf16.gmra.mrb[8].mxu1 %vm449_vm2, %v1289_v56  ;;  %v4767_v56 = vrot.slane %v4765_v16, 1 }
 0x1f7   : > { %8158 = vmatprep.mubr.msk.bf16.mxu1 %vm10497_vm1, %v10496_v0 }
 0x1f8   : > { %v4768_v57 = vsel %vm287_vm4, %v4763_v26, %v4767_v56  ;;  %v4771_v46 = vor.u32 %v4769_v40, %v4767_v56  ;;  %v13219_v40 = vshll.u32 %v10917_v17, 16 }
 0x1fa   : > { %8783 = vmatmul.mubr.msk.bf16.gmra.mrb[12].mxu0 %vm449_vm2, %v4736_v42  ;;  %v1309_v42 = vsel %vm1269_vm7, %v1304_v12, %v1308_v49  ;;  %v4776_v21 = vsel %vm287_vm4, %v4771_v46, %v4775_v54  ;;  %v1327_v25 = vrot.slane %v13219_v40, 2 }
 0x1fb   : > { %8786 = vmatprep.mubr.msk.bf16.mxu0 %vm10497_vm1, %v10496_v0 }
 0x1fe   : > { %8159 = vmatmul.mubr.msk.bf16.gmra.mrb[12].mxu1 %vm449_vm2, %v1293_v48  ;;  %v13210_v48 = vshrl.u32 %v10687_v29, 16  ;;  %v13213_v29 = vshll.u32 %v10698_v36, 16  ;;  %v4789_v36 = vshll.u32 %v10354_v30, 16 }
 0x1ff   : > { %8162 = vmatprep.mubr.msk.bf16.mxu1 %vm10497_vm1, %v10496_v0 }
 0x200   : > { %v1310_v33 = vrot.slane %v13210_v48, 1  ;;  %v1315_v47 = vrot.slane %v13213_v29, 2  ;;  %v4809_v48 = vshrl.u32 %v10356_v59, 16 }
 0x202   : > { %8787 = vmatmul.mubr.msk.bf16.gmra.mrb[16].mxu0 %vm449_vm2, %v4744_v51  ;;  %v1312_v41 = vor.u32 %v1311_v60, %v1310_v33  ;;  %v4781_v51 = vshll.u32 %v10353_v8, 16  ;;  %v1330_v60 = vrot.slane %v13220_v7, 1 }
 0x203   : > { %8790 = vmatprep.mubr.msk.bf16.mxu0 %vm10497_vm1, %v10496_v0 }
 0x204   : > { %v1313_v6 = vsel %vm1269_vm7, %v1308_v49, %v1312_v41  ;;  %v4783_v2 = vrot.slane %v4781_v51, 1  ;;  %v13218_v49 = vshrl.u32 %v10917_v17, 16  ;;  %v13221_v17 = vshll.u32 %v10958_v62, 16  ;;  %v10358_v51 = vld [vmem:[%s10543_s18 + $0x8c] sm:$0xff]  }
 0x205   : > { %v4821_v62 = vshll.u32 %v10358_v51, 16 }
 0x206   : > { %8163 = vmatmul.mubr.msk.bf16.gmra.mrb[16].mxu1 %vm449_vm2, %v1297_v28  ;;  %v1316_v28 = vor.u32 %v1315_v47, %v1314_v22  ;;  %v4784_v5 = vsel %vm287_vm4, %v4779_v52, %v4783_v2  ;;  %v4787_v58 = vor.u32 %v4785_v9, %v4783_v2  ;;  %v1331_v8 = vrot.slane %v13221_v17, 2  ;;  %v10359_v9 = vld [vmem:[%s10543_s18 + $0x94] sm:$0xff]   ;;  %v11763_v17 = vld [vmem:[%s10543_s18 + $0xc] sm:$0xf] }
 0x207   : > { %8166 = vmatprep.mubr.msk.bf16.mxu1 %vm10497_vm1, %v10496_v0  ;;  %v4823_v52 = vrot.slane %v4821_v62, 1  ;;  %v13222_v2 = vshrl.u32 %v10986_v39, 16  ;;  %v11774_v62 = vld [vmem:[%s10543_s18 + $0x10] sm:$0xff]  }
 0x208   : > { %v1317_v24 = vsel %vm1269_vm7, %v1312_v41, %v1316_v28  ;;  %v1332_v15 = vor.u32 %v1331_v8, %v1330_v60 }
 0x209   : > { %v1334_v30 = vrot.slane %v13222_v2, 1 }
 0x20a   : > { %8791 = vmatmul.mubr.msk.bf16.gmra.mrb[20].mxu0 %vm449_vm2, %v4752_v4  ;;  %v4791_v4 = vrot.slane %v4789_v36, 1 }
 0x20b   : > { %8794 = vmatprep.mubr.msk.bf16.mxu0 %vm10497_vm1, %v10496_v0 }
 0x20c   : > { %v4792_v55 = vsel %vm287_vm4, %v4787_v58, %v4791_v4  ;;  %v4795_v16 = vor.u32 %v4793_v61, %v4791_v4  ;;  %v4825_v58 = vshrl.u32 %v10358_v51, 16  ;;  %v4829_v4 = vshll.u32 %v10359_v9, 16  ;;  %v11767_v51 = vld [vmem:[%s10543_s18 + $0x24] sm:$0xff]  }
 0x20e   : > { %8167 = vmatmul.mubr.msk.bf16.gmra.mrb[20].mxu1 %vm449_vm2, %v1301_v44  ;;  %v13215_v44 = vshll.u32 %v10742_v23, 16  ;;  %v13217_v23 = vshll.u32 %v10764_v45, 16  ;;  %v4800_v1 = vsel %vm287_vm4, %v4795_v16, %v4799_v10  ;;  %v4805_v45 = vshll.u32 %v10356_v59, 16 }
 0x20f   : > { %8170 = vmatprep.mubr.msk.bf16.mxu1 %vm10497_vm1, %v10496_v0  ;;  %v1342_v16 = vrot.slane %v428_v3, 1  ;;  %v10363_v3 = vld [vmem:[%s10543_s18 + $0x98] ss:$0 sps:$4 sm:$0x33]  }
 0x210   : > { %v1319_v18 = vrot.slane %v13215_v44, 2  ;;  %v1323_v12 = vrot.slane %v13217_v23, 2  ;;  %v4807_v53 = vrot.slane %v4805_v45, 1  ;;  %v10361_v23 = vld [vmem:[%s10543_s18 + $0xa4] sm:$0xff]  }
 0x212   : > { %8795 = vmatmul.mubr.msk.bf16.gmra.mrb[24].mxu0 %vm449_vm2, %v4760_v20  ;;  %v1320_v50 = vor.u32 %v1319_v18, %v1318_v13  ;;  %v1322_v20 = vrot.slane %v13216_v27, 1  ;;  %v4811_v41 = vor.u32 %v4809_v48, %v4807_v53  ;;  %v1338_v13 = vrot.slane %v13224_v38, 1  ;;  %v11788_v38 = vld [vmem:[%s10543_s18 + $0x2c] sm:$0xff]  }
 0x213   : > { %8798 = vmatprep.mubr.msk.bf16.mxu0 %vm10497_vm1, %v10496_v0  ;;  %v4833_v27 = vshrl.u32 %v10359_v9, 16  ;;  %v1351_v48 = vshrl.u32 %v10363_v3, 16  ;;  %v1796_v9 = vshrl.u32 %v11774_v62, 16 }
 0x214   : > { %v1321_v31 = vsel %vm1269_vm7, %v1316_v28, %v1320_v50  ;;  %v1324_v19 = vor.u32 %v1323_v12, %v1322_v20  ;;  %v13223_v28 = vshll.u32 %v10986_v39, 16  ;;  %v13225_v39 = vshll.u32 %v11014_v37, 16 }
 0x216   : > { %8171 = vmatmul.mubr.msk.bf16.gmra.mrb[24].mxu1 %vm449_vm2, %v1305_v43  ;;  %v4801_v43 = vshrl.u32 %v10355_v32, 16  ;;  %v1325_v26 = vsel %vm1269_vm7, %v1320_v50, %v1324_v19  ;;  %v1339_v44 = vrot.slane %v13225_v39, 2  ;;  %v4827_v32 = vor.u32 %v4825_v58, %v4823_v52  ;;  %v10360_v50 = vld [vmem:[%s10543_s18 + $0x9c] sm:$0xff]  }
 0x217   : > { %8174 = vmatprep.mubr.msk.bf16.mxu1 %vm10497_vm1, %v10496_v0  ;;  %v4837_v37 = vshll.u32 %v10360_v50, 16  ;;  %v4841_v45 = vshrl.u32 %v10360_v50, 16  ;;  %v5297_v50 = vshrl.u32 %v11767_v51, 16 }
 0x218   : > { %v4803_v56 = vor.u32 %v4801_v43, %v4799_v10  ;;  %v1340_v61 = vor.u32 %v1339_v44, %v1338_v13  ;;  %v13226_v10 = vshll.u32 %v11042_v35, 16  ;;  %v11791_v13 = vld [vmem:[%s10543_s18 + $0x18] sm:$0xff]  }
 0x21a   : > { %8799 = vmatmul.mubr.msk.bf16.gmra.mrb[28].mxu0 %vm449_vm2, %v4768_v57  ;;  %v1326_v57 = vrot.slane %v13218_v49, 1  ;;  %v4808_v46 = vsel %vm287_vm4, %v4803_v56, %v4807_v53  ;;  %v1343_v59 = vrot.slane %v13226_v10, 2  ;;  %v1346_v49 = vrot.slane %v436_v34, 1  ;;  %v1647_v34 = vld [vmem:[%s10543_s18 + $0x8] sm:$0xe] }
 0x21b   : > { %8802 = vmatprep.mubr.msk.bf16.mxu0 %vm10497_vm1, %v10496_v0 }
 0x21c   : > { %v1328_v54 = vor.u32 %v1327_v25, %v1326_v57  ;;  %v1344_v43 = vor.u32 %v1343_v59, %v1342_v16  ;;  %v13227_v57 = vshll.u32 %v11070_v11, 16  ;;  %v5145_v25 = vld [vmem:[%s10543_s18 + $0x1c] sm:$0xf] }
 0x21e   : > { %8175 = vmatmul.mubr.msk.bf16.gmra.mrb[28].mxu1 %vm449_vm2, %v1309_v42  ;;  %v10357_v42 = vld [vmem:[%s10543_s18 + $0x84] sm:$0xff]   ;;  %v1333_v47 = vsel %vm1269_vm7, %v1328_v54, %v1332_v15  ;;  %v1345_v35 = vsel %vm1269_vm7, %v1340_v61, %v1344_v43  ;;  %v1347_v40 = vrot.slane %v13227_v57, 2 }
 0x21f   : > { %8178 = vmatprep.mubr.msk.bf16.mxu1 %vm10497_vm1, %v10496_v0  ;;  %v4813_v33 = vshll.u32 %v10357_v42, 16  ;;  %v4817_v29 = vshrl.u32 %v10357_v42, 16  ;;  %v11754_v42 = vld [vmem:[%s10543_s18 + $0x20] sm:$0xf] }
 0x220   : > { %v7403_v7 = vcombine.low %v5145_v25, %v11754_v42  ;;  %v1348_v11 = vor.u32 %v1347_v40, %v1346_v49  ;;  %v11846_v25 = vld [vmem:[%s10543_s18 + $0x3c] sm:$0xff]  }
 0x221   : > { %v4815_v63 = vrot.slane %v4813_v33, 1  ;;  %v1354_v33 = vshll.u32 %v10363_v3, 16 }
 0x222   : > { %8803 = vmatmul.mubr.msk.bf16.gmra.mrb[32].mxu0 %vm449_vm2, %v4776_v21  ;;  %v1329_v21 = vsel %vm1269_vm7, %v1324_v19, %v1328_v54  ;;  %v4845_v19 = vshll.u32 %v10361_v23, 16 }
 0x223   : > { %8806 = vmatprep.mubr.msk.bf16.mxu0 %vm10497_vm1, %v10496_v0  ;;  %v4816_v22 = vsel %vm287_vm4, %v4811_v41, %v4815_v63  ;;  %v1353_v41 = vrot.slane %v1351_v48, 1 }
 0x224   : > { %v4847_v56 = vrot.slane %v4845_v19, 1 }
 0x226   : > { %8179 = vmatmul.mubr.msk.bf16.gmra.mrb[32].mxu1 %vm449_vm2, %v1313_v6  ;;  %v4819_v6 = vor.u32 %v4817_v29, %v4815_v63  ;;  %v1356_v63 = vrot.slane %v1354_v33, 2  ;;  %v7144_v29 = vcombine.low %v1647_v34, %v11763_v17 }
 0x227   : > { %8182 = vmatprep.mubr.msk.bf16.mxu1 %vm10497_vm1, %v10496_v0 }
 0x228   : > { %v4824_v36 = vsel %vm287_vm4, %v4819_v6, %v4823_v52  ;;  %v1357_v6 = vor.u32 %v1356_v63, %v1353_v41  ;;  %v5286_v52 = vshrl.u32 %v7403_v7, 16 }
 0x22a   : > { %8807 = vmatmul.mubr.msk.bf16.gmra.mrb[36].mxu0 %vm449_vm2, %v4784_v5  ;;  %v1335_v5 = vrot.slane %v13223_v28, 2  ;;  %v1788_v28 = vshrl.u32 %v7144_v29, 16 }
 0x22b   : > { %8810 = vmatprep.mubr.msk.bf16.mxu0 %vm10497_vm1, %v10496_v0 }
 0x22c   : > { %v1790_v39 = vrot.slane %v1788_v28, 1 }
 0x22e   : > { %8183 = vmatmul.mubr.msk.bf16.gmra.mrb[36].mxu1 %vm449_vm2, %v1317_v24  ;;  %v1336_v24 = vor.u32 %v1335_v5, %v1334_v30  ;;  %v5293_v30 = vshll.u32 %v11767_v51, 16  ;;  %v1791_v5 = vshll.u32 %v7144_v29, 16 }
 0x22f   : > { %8186 = vmatprep.mubr.msk.bf16.mxu1 %vm10497_vm1, %v10496_v0 }
 0x230   : > { %v1337_v18 = vsel %vm1269_vm7, %v1332_v15, %v1336_v24  ;;  %v1341_v20 = vsel %vm1269_vm7, %v1336_v24, %v1340_v61  ;;  %v5288_v15 = vshll.u32 %v7403_v7, 16  ;;  %v1358_v24 = vsel %vm1269_vm7, %v1348_v11, %v1357_v6  ;;  %v11882_v6 = vld [vmem:[%s10543_s18 + $0x44] sm:$0xff]  }
 0x231   : > { %v1793_v44 = vrot.slane %v1791_v5, 2  ;;  %v5301_v61 = vshll.u32 %v11788_v38, 16  ;;  %v13171_v5 = vshrl.u32 %v11846_v25, 16 }
 0x232   : > { %8811 = vmatmul.mubr.msk.bf16.gmra.mrb[40].mxu0 %vm449_vm2, %v4792_v55  ;;  %v4831_v55 = vrot.slane %v4829_v4, 1  ;;  %v5290_v2 = vrot.slane %v5288_v15, 1  ;;  %v5295_v4 = vrot.slane %v5293_v30, 1 }
 0x233   : > { %8814 = vmatprep.mubr.msk.bf16.mxu0 %vm10497_vm1, %v10496_v0  ;;  %v5303_v10 = vrot.slane %v5301_v61, 1 }
 0x234   : > { %v4832_v14 = vsel %vm287_vm4, %v4827_v32, %v4831_v55  ;;  %v4835_v12 = vor.u32 %v4833_v27, %v4831_v55  ;;  %v5291_v58 = vor.u32 %v5290_v2, %v5286_v52  ;;  %v10369_v55 = vld [vmem:[%s13080_s1 + $0x68] sm:$0x3f]   ;;  %v13184_v27 = vshll.u32 %v11791_v13, 16  ;;  %v11885_v52 = vld [vmem:[%s10543_s18 + $0x30] sm:$0xff]  }
 0x235   : > { %v5299_v16 = vor.u32 %v5297_v50, %v5295_v4 }
 0x236   : > { %8187 = vmatmul.mubr.msk.bf16.gmra.mrb[40].mxu1 %vm449_vm2, %v1321_v31  ;;  %v4839_v31 = vrot.slane %v4837_v37, 1  ;;  %v5296_v37 = vsel %vm287_vm4, %v5291_v58, %v5295_v4  ;;  %v1810_v19 = vrot.slane %v13184_v27, 2  ;;  %v13153_v58 = vshrl.u32 %v11885_v52, 16  ;;  %v2254_v27 = vld [vmem:[%s10543_s18 + $0x8] sm:$0xc] }
 0x237   : > { %8190 = vmatprep.mubr.msk.bf16.mxu1 %vm10497_vm1, %v10496_v0  ;;  %v13148_v4 = vshll.u32 %v11885_v52, 16 }
 0x238   : > { %v4843_v53 = vor.u32 %v4841_v45, %v4839_v31  ;;  %v11830_v45 = vld [vmem:[%s10543_s18 + $0x20] sm:$0xff]  }
 0x239   : > { %v13177_v49 = vshrl.u32 %v11830_v45, 16  ;;  %v13172_v57 = vshll.u32 %v11830_v45, 16 }
 0x23a   : > { %8815 = vmatmul.mubr.msk.bf16.gmra.mrb[44].mxu0 %vm449_vm2, %v4800_v1  ;;  %v4840_v1 = vsel %vm287_vm4, %v4835_v12, %v4839_v31  ;;  %v4848_v60 = vsel %vm287_vm4, %v4843_v53, %v4847_v56  ;;  %v10368_v12 = vld [vmem:[%s13080_s1 + $0x28] sm:$0x3f]   ;;  %v5838_v31 = vsel %vm507_vm0, %v10369_v55, 0 }
 0x23b   : > { %8818 = vmatprep.mubr.msk.bf16.mxu0 %vm10497_vm1, %v10496_v0  ;;  %v1816_v33 = vrot.slane %v13177_v49, 1  ;;  %v1819_v7 = vrot.slane %v13172_v57, 2 }
 0x23d   : > { %v1820_v41 = vor.u32 %v1819_v7, %v1816_v33 }
 0x23e   : > { %8191 = vmatmul.mubr.msk.bf16.gmra.mrb[44].mxu1 %vm449_vm2, %v1325_v26  ;;  %v10362_v26 = vld [vmem:[%s10543_s18 + $0xac] ss:$0 sps:$4 sm:$0x11]  }
 0x23f   : > { %8194 = vmatprep.mubr.msk.bf16.mxu1 %vm10497_vm1, %v10496_v0  ;;  %v4853_v54 = vshll.u32 %v10362_v26, 16  ;;  %v2364_v26 = vsel %vm507_vm0, %v10368_v12, 0 }
 0x242   : > { %8819 = vmatmul.mubr.msk.bf16.gmra.mrb[48].mxu0 %vm449_vm2, %v4808_v46  ;;  %v4849_v46 = vshrl.u32 %v10361_v23, 16 }
 0x243   : > { %8822 = vmatprep.mubr.msk.bf16.mxu0 %vm10497_vm1, %v10496_v0 }
 0x244   : > { %v4851_v8 = vor.u32 %v4849_v46, %v4847_v56  ;;  %v5304_v56 = vsel %vm287_vm4, %v5299_v16, %v5303_v10  ;;  %v11849_v46 = vld [vmem:[%s10543_s18 + $0x28] sm:$0xff]  }
 0x245   : > { %v13165_v34 = vshrl.u32 %v11849_v46, 16 }
 0x246   : > { %8195 = vmatmul.mubr.msk.bf16.gmra.mrb[48].mxu1 %vm449_vm2, %v1329_v21  ;;  %v4855_v21 = vrot.slane %v4853_v54, 1 }
 0x247   : > { %8198 = vmatprep.mubr.msk.bf16.mxu1 %vm10497_vm1, %v10496_v0 }
 0x24a   : > { %8823 = vmatmul.mubr.msk.bf16.gmra.mrb[52].mxu0 %vm449_vm2, %v4816_v22  ;;  %v1349_v22 = vsel %vm1269_vm7, %v1344_v43, %v1348_v11  ;;  %v11827_v43 = vld [vmem:[%s10543_s18 + $0x34] sm:$0xff]   ;;  %v13170_v11 = vshll.u32 %v11846_v25, 16 }
 0x24b   : > { %8826 = vmatprep.mubr.msk.bf16.mxu0 %vm10497_vm1, %v10496_v0  ;;  %v13182_v53 = vshll.u32 %v11827_v43, 16 }
 0x24c   : > { %v5319_v15 = vrot.slane %v13170_v11, 1  ;;  %v12210_v11 = vld [vmem:[%s10543_s18 + $0xac] sm:$0xff]  }
 0x24d   : > { %v5311_v48 = vrot.slane %v13182_v53, 1  ;;  %v5729_v53 = vld [vmem:[%s10543_s18 + $0x1c] sm:$0xe] }
 0x24e   : > { %8199 = vmatmul.mubr.msk.bf16.gmra.mrb[52].mxu1 %vm449_vm2, %v1333_v47  ;;  %v4856_v47 = vsel %vm287_vm4, %v4851_v8, %v4855_v21  ;;  %v13160_v8 = vshll.u32 %v11849_v46, 16 }
 0x24f   : > { %8202 = vmatprep.mubr.msk.bf16.mxu1 %vm10497_vm1, %v10496_v0 }
 0x250   : > { %v1828_v29 = vrot.slane %v13160_v8, 2 }
 0x252   : > { %8827 = vmatmul.mubr.msk.bf16.gmra.mrb[56].mxu0 %vm449_vm2, %v4824_v36  ;;  %v1799_v36 = vshll.u32 %v11774_v62, 16 }
 0x253   : > { %8830 = vmatprep.mubr.msk.bf16.mxu0 %vm10497_vm1, %v10496_v0 }
 0x254   : > { %v1801_v32 = vrot.slane %v1799_v36, 2 }
 0x256   : > { %8203 = vmatmul.mubr.msk.bf16.gmra.mrb[56].mxu1 %vm449_vm2, %v1337_v18  ;;  %v1798_v18 = vrot.slane %v1796_v9, 1 }
 0x257   : > { %8206 = vmatprep.mubr.msk.bf16.mxu1 %vm10497_vm1, %v10496_v0 }
 0x258   : > { %v1802_v23 = vor.u32 %v1801_v32, %v1798_v18  ;;  %v11901_v18 = vld [vmem:[%s10543_s18 + $0x38] sm:$0xff]   ;;  %v5323_v32 = vor.u32 %v13171_v5, %v5319_v15  ;;  %v13180_v5 = vshll.u32 %v12210_v11, 16 }
 0x259   : > { %v13136_v16 = vshll.u32 %v11901_v18, 16 }
 0x25a   : > { %8831 = vmatmul.mubr.msk.bf16.gmra.mrb[60].mxu0 %vm449_vm2, %v4832_v14  ;;  %v1805_v14 = vshrl.u32 %v11791_v13, 16 }
 0x25b   : > { %8834 = vmatprep.mubr.msk.bf16.mxu0 %vm10497_vm1, %v10496_v0 }
 0x25c   : > { %v1807_v59 = vrot.slane %v1805_v14, 1 }
 0x25e   : > { %8207 = vmatmul.mubr.msk.bf16.gmra.mrb[60].mxu1 %vm449_vm2, %v1341_v20  ;;  %v1794_v20 = vor.u32 %v1793_v44, %v1790_v39  ;;  %v1811_v3 = vor.u32 %v1810_v19, %v1807_v59  ;;  %v11898_v44 = vld [vmem:[%s10543_s18 + $0x4c] sm:$0xff]  }
 0x25f   : > { %8210 = vmatprep.mubr.msk.bf16.mxu1 %vm10497_vm1, %v10496_v0  ;;  %v13146_v12 = vshll.u32 %v11898_v44, 16  ;;  %v13147_v7 = vshrl.u32 %v11898_v44, 16 }
 0x260   : > { %v1812_v40 = vsel %vm1269_vm7, %v1802_v23, %v1811_v3 }
 0x262   : > { %8835 = vmatmul.mubr.msk.bf16.gmra.mrb[64].mxu0 %vm449_vm2, %v4840_v1  ;;  %v1803_v1 = vsel %vm1269_vm7, %v1794_v20, %v1802_v23  ;;  %v1837_v20 = vrot.slane %v13148_v4, 2  ;;  %v13159_v23 = vshrl.u32 %v11882_v6, 16 }
 0x263   : > { %8838 = vmatprep.mubr.msk.bf16.mxu0 %vm10497_vm1, %v10496_v0 }
 0x266   : > { %8211 = vmatmul.mubr.msk.bf16.gmra.mrb[64].mxu1 %vm449_vm2, %v1345_v35  ;;  %v5305_v35 = vshrl.u32 %v11788_v38, 16 }
 0x267   : > { %8214 = vmatprep.mubr.msk.bf16.mxu1 %vm10497_vm1, %v10496_v0 }
 0x268   : > { %v5307_v54 = vor.u32 %v5305_v35, %v5303_v10 }
 0x26a   : > { %8839 = vmatmul.mubr.msk.bf16.gmra.mrb[68].mxu0 %vm449_vm2, %v4848_v60  ;;  %v13183_v60 = vshrl.u32 %v11827_v43, 16  ;;  %v5312_v21 = vsel %vm287_vm4, %v5307_v54, %v5311_v48  ;;  %v11937_v54 = vld [vmem:[%s10543_s18 + $0x40] sm:$0xff]  }
 0x26b   : > { %8842 = vmatprep.mubr.msk.bf16.mxu0 %vm10497_vm1, %v10496_v0 }
 0x26c   : > { %v5315_v63 = vor.u32 %v13183_v60, %v5311_v48 }
 0x26e   : > { %8215 = vmatmul.mubr.msk.bf16.gmra.mrb[68].mxu1 %vm449_vm2, %v1349_v22  ;;  %v1825_v22 = vrot.slane %v13165_v34, 1  ;;  %v5320_v2 = vsel %vm287_vm4, %v5315_v63, %v5319_v15  ;;  %v13124_v63 = vshll.u32 %v11937_v54, 16 }
 0x26f   : > { %8218 = vmatprep.mubr.msk.bf16.mxu1 %vm10497_vm1, %v10496_v0 }
 0x270   : > { %v1829_v28 = vor.u32 %v1828_v29, %v1825_v22  ;;  %v11950_v22 = vld [vmem:[%s10543_s18 + $0x5c] sm:$0xff]   ;;  %v11953_v29 = vld [vmem:[%s10543_s18 + $0x48] sm:$0xff]  }
 0x272   : > { %8843 = vmatmul.mubr.msk.bf16.gmra.mrb[72].mxu0 %vm449_vm2, %v4856_v47  ;;  %v1821_v47 = vsel %vm1269_vm7, %v1811_v3, %v1820_v41  ;;  %v1830_v39 = vsel %vm1269_vm7, %v1820_v41, %v1829_v28  ;;  %v13129_v41 = vshrl.u32 %v11937_v54, 16 }
 0x273   : > { %8848 = vmatprep.mubr.msk.bf16.mxu0 %vm10497_vm1, %v10496_v0 }
 0x276   : > { %8219 = vmatmul.mubr.msk.bf16.gmra.mrb[72].mxu1 %vm449_vm2, %v1358_v24  ;;  %v13158_v24 = vshll.u32 %v11882_v6, 16 }
 0x277   : > { %8224 = vmatprep.mubr.msk.bf16.mxu1 %vm10497_vm1, %v10496_v0 }
 0x278   : > { %v5327_v55 = vrot.slane %v13158_v24, 1  ;;  %v12158_v24 = vld [vmem:[%s10543_s18 + $0x9c] sm:$0xff]  }
 0x27a   : > { %8849 = vmatmul.mubr.msk.bf16.vlgmr.msra.gmra.mrb[0].mxu0 %vm449_vm2, %v5296_v37  ;;  %v1834_v37 = vrot.slane %v13153_v58, 1  ;;  %v5328_v10 = vsel %vm287_vm4, %v5323_v32, %v5327_v55  ;;  %v5331_v19 = vor.u32 %v13159_v23, %v5327_v55  ;;  %v13123_v55 = vshll.u32 %v11950_v22, 16 }
 0x27b   : > { %8925 = vmatpush3.bf16.msra.mxu0 %v5838_v31  ;;  %8852 = vmatprep.mubr.msk.bf16.mxu0 %vm10497_vm1, %v10496_v0  ;;  %v13141_v31 = vshrl.u32 %v11901_v18, 16  ;;  %v13168_v23 = vshll.u32 %v12158_v24, 16 }
 0x27c   : > { %9002 = vmatprep.subr.bf16.mxu0 %v10496_v0  ;;  %v1838_v59 = vor.u32 %v1837_v20, %v1834_v37  ;;  %v13122_v37 = vshrl.u32 %v11953_v29, 16  ;;  %v13121_v20 = vshll.u32 %v11953_v29, 16 }
 0x27e   : > { %8225 = vmatmul.mubr.msk.bf16.vlgmr.msra.gmra.mrb[0].mxu1 %vm449_vm2, %v1803_v1  ;;  %v5335_v1 = vrot.slane %v13146_v12, 1  ;;  %v1839_v3 = vsel %vm1269_vm7, %v1829_v28, %v1838_v59  ;;  %v1852_v28 = vrot.slane %v13129_v41, 1  ;;  %v12106_v12 = vld [vmem:[%s10543_s18 + $0x8c] sm:$0xff]  }
 0x27f   : > { %8301 = vmatpush3.bf16.msra.mxu1 %v2364_v26  ;;  %8228 = vmatprep.mubr.msk.bf16.mxu1 %vm10497_vm1, %v10496_v0  ;;  %v1843_v26 = vrot.slane %v13141_v31, 1 }
 0x280   : > { %8378 = vmatprep.subr.bf16.mxu1 %v10496_v0  ;;  %v5336_v48 = vsel %vm287_vm4, %v5331_v19, %v5335_v1 }
 0x282   : > { %8853 = vmatmul.mubr.msk.bf16.gmra.mrb[4].mxu0 %vm449_vm2, %v5304_v56  ;;  %v1846_v56 = vrot.slane %v13136_v16, 2 }
 0x283   : > { %8856 = vmatprep.mubr.msk.bf16.mxu0 %vm10497_vm1, %v10496_v0 }
 0x284   : > { %v1847_v33 = vor.u32 %v1846_v56, %v1843_v26  ;;  %v1861_v26 = vrot.slane %v13122_v37, 1  ;;  %v1864_v56 = vrot.slane %v13121_v20, 2  ;;  %v12002_v37 = vld [vmem:[%s10543_s18 + $0x6c] sm:$0xff]  }
 0x286   : > { %8229 = vmatmul.mubr.msk.bf16.gmra.mrb[4].mxu1 %vm449_vm2, %v1812_v40  ;;  %v11934_v40 = vld [vmem:[%s10543_s18 + $0x54] sm:$0xff]   ;;  %v1848_v15 = vsel %vm1269_vm7, %v1838_v59, %v1847_v33 }
 0x287   : > { %8232 = vmatprep.mubr.msk.bf16.mxu1 %vm10497_vm1, %v10496_v0  ;;  %v13135_v32 = vshrl.u32 %v11934_v40, 16 }
 0x28a   : > { %8857 = vmatmul.mubr.msk.bf16.gmra.mrb[8].mxu0 %vm449_vm2, %v5312_v21  ;;  %v13134_v21 = vshll.u32 %v11934_v40, 16 }
 0x28b   : > { %8860 = vmatprep.mubr.msk.bf16.mxu0 %vm10497_vm1, %v10496_v0 }
 0x28e   : > { %8233 = vmatmul.mubr.msk.bf16.gmra.mrb[8].mxu1 %vm449_vm2, %v1821_v47  ;;  %v5339_v47 = vor.u32 %v13147_v7, %v5335_v1  ;;  %v5351_v1 = vrot.slane %v13123_v55, 1  ;;  %v13132_v55 = vshll.u32 %v12002_v37, 16  ;;  %v13156_v7 = vshll.u32 %v12106_v12, 16 }
 0x28f   : > { %8236 = vmatprep.mubr.msk.bf16.mxu1 %vm10497_vm1, %v10496_v0 }
 0x292   : > { %8861 = vmatmul.mubr.msk.bf16.gmra.mrb[12].mxu0 %vm449_vm2, %v5320_v2  ;;  %v5343_v2 = vrot.slane %v13134_v21, 1  ;;  %v12054_v21 = vld [vmem:[%s10543_s18 + $0x7c] sm:$0xff]  }
 0x293   : > { %8864 = vmatprep.mubr.msk.bf16.mxu0 %vm10497_vm1, %v10496_v0 }
 0x294   : > { %v5347_v19 = vor.u32 %v13135_v32, %v5343_v2  ;;  %v13144_v32 = vshll.u32 %v12054_v21, 16 }
 0x296   : > { %8237 = vmatmul.mubr.msk.bf16.gmra.mrb[12].mxu1 %vm449_vm2, %v1830_v39  ;;  %v1855_v39 = vrot.slane %v13124_v63, 2 }
 0x297   : > { %8240 = vmatprep.mubr.msk.bf16.mxu1 %vm10497_vm1, %v10496_v0 }
 0x298   : > { %v1856_v59 = vor.u32 %v1855_v39, %v1852_v28  ;;  %v13128_v28 = vshrl.u32 %v11950_v22, 16 }
 0x29a   : > { %8865 = vmatmul.mubr.msk.bf16.gmra.mrb[16].mxu0 %vm449_vm2, %v5328_v10  ;;  %v5344_v10 = vsel %vm287_vm4, %v5339_v47, %v5343_v2  ;;  %v5352_v47 = vsel %vm287_vm4, %v5347_v19, %v5351_v1  ;;  %v1865_v2 = vor.u32 %v1864_v56, %v1861_v26  ;;  %v5355_v19 = vor.u32 %v13128_v28, %v5351_v1 }
 0x29b   : > { %8868 = vmatprep.mubr.msk.bf16.mxu0 %vm10497_vm1, %v10496_v0 }
 0x29c   : > { %v1866_v20 = vsel %vm1269_vm7, %v1856_v59, %v1865_v2 }
 0x29e   : > { %8241 = vmatmul.mubr.msk.bf16.gmra.mrb[16].mxu1 %vm449_vm2, %v1839_v3  ;;  %v1857_v3 = vsel %vm1269_vm7, %v1847_v33, %v1856_v59 }
 0x29f   : > { %8244 = vmatprep.mubr.msk.bf16.mxu1 %vm10497_vm1, %v10496_v0 }
 0x2a2   : > { %8869 = vmatmul.mubr.msk.bf16.gmra.mrb[20].mxu0 %vm449_vm2, %v5336_v48  ;;  %v11986_v48 = vld [vmem:[%s10543_s18 + $0x64] sm:$0xff]  }
 0x2a3   : > { %8872 = vmatprep.mubr.msk.bf16.mxu0 %vm10497_vm1, %v10496_v0  ;;  %v13125_v39 = vshll.u32 %v11986_v48, 16  ;;  %v13133_v59 = vshrl.u32 %v11986_v48, 16 }
 0x2a5   : > { %v5359_v26 = vrot.slane %v13125_v39, 1 }
 0x2a6   : > { %8245 = vmatmul.mubr.msk.bf16.gmra.mrb[20].mxu1 %vm449_vm2, %v1848_v15  ;;  %v11989_v15 = vld [vmem:[%s10543_s18 + $0x50] sm:$0xff]  }
 0x2a7   : > { %8248 = vmatprep.mubr.msk.bf16.mxu1 %vm10497_vm1, %v10496_v0  ;;  %v13126_v33 = vshrl.u32 %v11989_v15, 16  ;;  %v5360_v39 = vsel %vm287_vm4, %v5355_v19, %v5359_v26 }
 0x2a9   : > { %v1870_v56 = vrot.slane %v13126_v33, 1 }
 0x2aa   : > { %8873 = vmatmul.mubr.msk.bf16.gmra.mrb[24].mxu0 %vm449_vm2, %v5344_v10  ;;  %v13127_v10 = vshll.u32 %v11989_v15, 16 }
 0x2ab   : > { %8876 = vmatprep.mubr.msk.bf16.mxu0 %vm10497_vm1, %v10496_v0 }
 0x2ae   : > { %8249 = vmatmul.mubr.msk.bf16.gmra.mrb[24].mxu1 %vm449_vm2, %v1857_v3  ;;  %v12005_v3 = vld [vmem:[%s10543_s18 + $0x58] sm:$0xff]  }
 0x2af   : > { %8252 = vmatprep.mubr.msk.bf16.mxu1 %vm10497_vm1, %v10496_v0  ;;  %v13131_v63 = vshrl.u32 %v12005_v3, 16  ;;  %v13130_v1 = vshll.u32 %v12005_v3, 16 }
 0x2b1   : > { %v1879_v28 = vrot.slane %v13131_v63, 1  ;;  %v1882_v41 = vrot.slane %v13130_v1, 2  ;;  %v13140_v1 = vshrl.u32 %v12002_v37, 16 }
 0x2b2   : > { %8877 = vmatmul.mubr.msk.bf16.gmra.mrb[28].mxu0 %vm449_vm2, %v5352_v47  ;;  %v1873_v47 = vrot.slane %v13127_v10, 2  ;;  %v5367_v10 = vrot.slane %v13132_v55, 1 }
 0x2b3   : > { %8880 = vmatprep.mubr.msk.bf16.mxu0 %vm10497_vm1, %v10496_v0 }
 0x2b4   : > { %v1874_v33 = vor.u32 %v1873_v47, %v1870_v56  ;;  %v12041_v56 = vld [vmem:[%s10543_s18 + $0x60] sm:$0xff]   ;;  %v1883_v47 = vor.u32 %v1882_v41, %v1879_v28  ;;  %v5371_v41 = vor.u32 %v13140_v1, %v5367_v10 }
 0x2b5   : > { %v13139_v55 = vshll.u32 %v12041_v56, 16 }
 0x2b6   : > { %8253 = vmatmul.mubr.msk.bf16.gmra.mrb[28].mxu1 %vm449_vm2, %v1866_v20  ;;  %v5363_v20 = vor.u32 %v13133_v59, %v5359_v26  ;;  %v1875_v19 = vsel %vm1269_vm7, %v1865_v2, %v1874_v33  ;;  %v13138_v2 = vshrl.u32 %v12041_v56, 16  ;;  %v1884_v59 = vsel %vm1269_vm7, %v1874_v33, %v1883_v47 }
 0x2b7   : > { %8256 = vmatprep.mubr.msk.bf16.mxu1 %vm10497_vm1, %v10496_v0 }
 0x2b8   : > { %v5368_v26 = vsel %vm287_vm4, %v5363_v20, %v5367_v10  ;;  %v1888_v20 = vrot.slane %v13138_v2, 1 }
 0x2ba   : > { %8881 = vmatmul.mubr.msk.bf16.gmra.mrb[32].mxu0 %vm449_vm2, %v5360_v39  ;;  %v12038_v39 = vld [vmem:[%s10543_s18 + $0x74] sm:$0xff]  }
 0x2bb   : > { %8884 = vmatprep.mubr.msk.bf16.mxu0 %vm10497_vm1, %v10496_v0  ;;  %v13137_v63 = vshll.u32 %v12038_v39, 16  ;;  %v13145_v33 = vshrl.u32 %v12038_v39, 16 }
 0x2bd   : > { %v5375_v28 = vrot.slane %v13137_v63, 1 }
 0x2be   : > { %8257 = vmatmul.mubr.msk.bf16.gmra.mrb[32].mxu1 %vm449_vm2, %v1875_v19  ;;  %v12057_v19 = vld [vmem:[%s10543_s18 + $0x68] sm:$0xff]  }
 0x2bf   : > { %8260 = vmatprep.mubr.msk.bf16.mxu1 %vm10497_vm1, %v10496_v0  ;;  %v13143_v16 = vshrl.u32 %v12057_v19, 16  ;;  %v13142_v10 = vshll.u32 %v12057_v19, 16  ;;  %v5376_v63 = vsel %vm287_vm4, %v5371_v41, %v5375_v28 }
 0x2c1   : > { %v1897_v1 = vrot.slane %v13143_v16, 1  ;;  %v1900_v31 = vrot.slane %v13142_v10, 2  ;;  %v13152_v10 = vshrl.u32 %v12054_v21, 16 }
 0x2c2   : > { %8885 = vmatmul.mubr.msk.bf16.gmra.mrb[36].mxu0 %vm449_vm2, %v5368_v26  ;;  %v1891_v26 = vrot.slane %v13139_v55, 2  ;;  %v5383_v55 = vrot.slane %v13144_v32, 1 }
 0x2c3   : > { %8888 = vmatprep.mubr.msk.bf16.mxu0 %vm10497_vm1, %v10496_v0 }
 0x2c4   : > { %v1892_v2 = vor.u32 %v1891_v26, %v1888_v20  ;;  %v12093_v20 = vld [vmem:[%s10543_s18 + $0x70] sm:$0xff]   ;;  %v1901_v26 = vor.u32 %v1900_v31, %v1897_v1  ;;  %v5387_v31 = vor.u32 %v13152_v10, %v5383_v55 }
 0x2c5   : > { %v13151_v32 = vshll.u32 %v12093_v20, 16 }
 0x2c6   : > { %8261 = vmatmul.mubr.msk.bf16.gmra.mrb[36].mxu1 %vm449_vm2, %v1884_v59  ;;  %v5379_v59 = vor.u32 %v13145_v33, %v5375_v28  ;;  %v1893_v41 = vsel %vm1269_vm7, %v1883_v47, %v1892_v2  ;;  %v13150_v47 = vshrl.u32 %v12093_v20, 16  ;;  %v1902_v33 = vsel %vm1269_vm7, %v1892_v2, %v1901_v26 }
 0x2c7   : > { %8264 = vmatprep.mubr.msk.bf16.mxu1 %vm10497_vm1, %v10496_v0 }
 0x2c8   : > { %v5384_v28 = vsel %vm287_vm4, %v5379_v59, %v5383_v55  ;;  %v1906_v59 = vrot.slane %v13150_v47, 1 }
 0x2ca   : > { %8889 = vmatmul.mubr.msk.bf16.gmra.mrb[40].mxu0 %vm449_vm2, %v5376_v63  ;;  %v12090_v63 = vld [vmem:[%s10543_s18 + $0x84] sm:$0xff]  }
 0x2cb   : > { %8892 = vmatprep.mubr.msk.bf16.mxu0 %vm10497_vm1, %v10496_v0  ;;  %v13149_v16 = vshll.u32 %v12090_v63, 16  ;;  %v13157_v2 = vshrl.u32 %v12090_v63, 16 }
 0x2cd   : > { %v5391_v1 = vrot.slane %v13149_v16, 1 }
 0x2ce   : > { %8265 = vmatmul.mubr.msk.bf16.gmra.mrb[40].mxu1 %vm449_vm2, %v1893_v41  ;;  %v12109_v41 = vld [vmem:[%s10543_s18 + $0x78] sm:$0xff]  }
 0x2cf   : > { %8268 = vmatprep.mubr.msk.bf16.mxu1 %vm10497_vm1, %v10496_v0  ;;  %v13155_v4 = vshrl.u32 %v12109_v41, 16  ;;  %v13154_v55 = vshll.u32 %v12109_v41, 16  ;;  %v5392_v16 = vsel %vm287_vm4, %v5387_v31, %v5391_v1 }
 0x2d1   : > { %v1915_v10 = vrot.slane %v13155_v4, 1  ;;  %v1918_v58 = vrot.slane %v13154_v55, 2  ;;  %v13164_v55 = vshrl.u32 %v12106_v12, 16 }
 0x2d2   : > { %8893 = vmatmul.mubr.msk.bf16.gmra.mrb[44].mxu0 %vm449_vm2, %v5384_v28  ;;  %v1909_v28 = vrot.slane %v13151_v32, 2  ;;  %v5399_v32 = vrot.slane %v13156_v7, 1 }
 0x2d3   : > { %8896 = vmatprep.mubr.msk.bf16.mxu0 %vm10497_vm1, %v10496_v0 }
 0x2d4   : > { %v1910_v47 = vor.u32 %v1909_v28, %v1906_v59  ;;  %v12145_v59 = vld [vmem:[%s10543_s18 + $0x80] sm:$0xff]   ;;  %v1919_v28 = vor.u32 %v1918_v58, %v1915_v10  ;;  %v5403_v58 = vor.u32 %v13164_v55, %v5399_v32 }
 0x2d5   : > { %v13163_v7 = vshll.u32 %v12145_v59, 16 }
 0x2d6   : > { %8269 = vmatmul.mubr.msk.bf16.gmra.mrb[44].mxu1 %vm449_vm2, %v1902_v33  ;;  %v5395_v33 = vor.u32 %v13157_v2, %v5391_v1  ;;  %v1911_v31 = vsel %vm1269_vm7, %v1901_v26, %v1910_v47  ;;  %v13162_v26 = vshrl.u32 %v12145_v59, 16  ;;  %v1920_v2 = vsel %vm1269_vm7, %v1910_v47, %v1919_v28 }
 0x2d7   : > { %8272 = vmatprep.mubr.msk.bf16.mxu1 %vm10497_vm1, %v10496_v0 }
 0x2d8   : > { %v5400_v1 = vsel %vm287_vm4, %v5395_v33, %v5399_v32  ;;  %v1924_v33 = vrot.slane %v13162_v26, 1 }
 0x2da   : > { %8897 = vmatmul.mubr.msk.bf16.gmra.mrb[48].mxu0 %vm449_vm2, %v5392_v16  ;;  %v12142_v16 = vld [vmem:[%s10543_s18 + $0x94] sm:$0xff]  }
 0x2db   : > { %8900 = vmatprep.mubr.msk.bf16.mxu0 %vm10497_vm1, %v10496_v0  ;;  %v13161_v4 = vshll.u32 %v12142_v16, 16  ;;  %v13169_v47 = vshrl.u32 %v12142_v16, 16 }
 0x2dd   : > { %v5407_v10 = vrot.slane %v13161_v4, 1 }
 0x2de   : > { %8273 = vmatmul.mubr.msk.bf16.gmra.mrb[48].mxu1 %vm449_vm2, %v1911_v31  ;;  %v12161_v31 = vld [vmem:[%s10543_s18 + $0x88] sm:$0xff]  }
 0x2df   : > { %8276 = vmatprep.mubr.msk.bf16.mxu1 %vm10497_vm1, %v10496_v0  ;;  %v13167_v8 = vshrl.u32 %v12161_v31, 16  ;;  %v13166_v32 = vshll.u32 %v12161_v31, 16  ;;  %v5408_v4 = vsel %vm287_vm4, %v5403_v58, %v5407_v10 }
 0x2e1   : > { %v1933_v55 = vrot.slane %v13167_v8, 1  ;;  %v1936_v34 = vrot.slane %v13166_v32, 2  ;;  %v13176_v32 = vshrl.u32 %v12158_v24, 16 }
 0x2e2   : > { %8901 = vmatmul.mubr.msk.bf16.gmra.mrb[52].mxu0 %vm449_vm2, %v5400_v1  ;;  %v1927_v1 = vrot.slane %v13163_v7, 2  ;;  %v5415_v7 = vrot.slane %v13168_v23, 1 }
 0x2e3   : > { %8904 = vmatprep.mubr.msk.bf16.mxu0 %vm10497_vm1, %v10496_v0 }
 0x2e4   : > { %v1928_v26 = vor.u32 %v1927_v1, %v1924_v33  ;;  %v12197_v33 = vld [vmem:[%s10543_s18 + $0x90] sm:$0xff]   ;;  %v1937_v1 = vor.u32 %v1936_v34, %v1933_v55  ;;  %v5419_v34 = vor.u32 %v13176_v32, %v5415_v7 }
 0x2e5   : > { %v13175_v23 = vshll.u32 %v12197_v33, 16 }
 0x2e6   : > { %8277 = vmatmul.mubr.msk.bf16.gmra.mrb[52].mxu1 %vm449_vm2, %v1920_v2  ;;  %v5411_v2 = vor.u32 %v13169_v47, %v5407_v10  ;;  %v1929_v58 = vsel %vm1269_vm7, %v1919_v28, %v1928_v26  ;;  %v13174_v28 = vshrl.u32 %v12197_v33, 16  ;;  %v1938_v47 = vsel %vm1269_vm7, %v1928_v26, %v1937_v1 }
 0x2e7   : > { %8280 = vmatprep.mubr.msk.bf16.mxu1 %vm10497_vm1, %v10496_v0 }
 0x2e8   : > { %v5416_v10 = vsel %vm287_vm4, %v5411_v2, %v5415_v7  ;;  %v1942_v2 = vrot.slane %v13174_v28, 1 }
 0x2ea   : > { %8905 = vmatmul.mubr.msk.bf16.gmra.mrb[56].mxu0 %vm449_vm2, %v5408_v4  ;;  %v12194_v4 = vld [vmem:[%s10543_s18 + $0xa4] sm:$0xff]  }
 0x2eb   : > { %8908 = vmatprep.mubr.msk.bf16.mxu0 %vm10497_vm1, %v10496_v0  ;;  %v13173_v8 = vshll.u32 %v12194_v4, 16  ;;  %v13181_v26 = vshrl.u32 %v12194_v4, 16 }
 0x2ed   : > { %v5423_v55 = vrot.slane %v13173_v8, 1 }
 0x2ee   : > { %8281 = vmatmul.mubr.msk.bf16.gmra.mrb[56].mxu1 %vm449_vm2, %v1929_v58  ;;  %v12213_v58 = vld [vmem:[%s10543_s18 + $0x98] sm:$0xff]  }
 0x2ef   : > { %8284 = vmatprep.mubr.msk.bf16.mxu1 %vm10497_vm1, %v10496_v0  ;;  %v13179_v57 = vshrl.u32 %v12213_v58, 16  ;;  %v13178_v7 = vshll.u32 %v12213_v58, 16  ;;  %v5424_v8 = vsel %vm287_vm4, %v5419_v34, %v5423_v55 }
 0x2f1   : > { %v1951_v32 = vrot.slane %v13179_v57, 1  ;;  %v1954_v49 = vrot.slane %v13178_v7, 2  ;;  %v5433_v7 = vshrl.u32 %v12210_v11, 16 }
 0x2f2   : > { %8909 = vmatmul.mubr.msk.bf16.gmra.mrb[60].mxu0 %vm449_vm2, %v5416_v10  ;;  %v1945_v10 = vrot.slane %v13175_v23, 2  ;;  %v5431_v23 = vrot.slane %v13180_v5, 1 }
 0x2f3   : > { %8912 = vmatprep.mubr.msk.bf16.mxu0 %vm10497_vm1, %v10496_v0 }
 0x2f4   : > { %v1946_v28 = vor.u32 %v1945_v10, %v1942_v2  ;;  %v12246_v2 = vld [vmem:[%s10543_s18 + $0xb4] ss:$0 sps:$4 sm:$0x11]   ;;  %v1955_v10 = vor.u32 %v1954_v49, %v1951_v32  ;;  %v5435_v49 = vor.u32 %v5433_v7, %v5431_v23 }
 0x2f6   : > { %8285 = vmatmul.mubr.msk.bf16.gmra.mrb[60].mxu1 %vm449_vm2, %v1938_v47  ;;  %v5427_v47 = vor.u32 %v13181_v26, %v5423_v55  ;;  %v1947_v34 = vsel %vm1269_vm7, %v1937_v1, %v1946_v28  ;;  %v5437_v1 = vshll.u32 %v12246_v2, 16  ;;  %v1956_v26 = vsel %vm1269_vm7, %v1946_v28, %v1955_v10 }
 0x2f7   : > { %8288 = vmatprep.mubr.msk.bf16.mxu1 %vm10497_vm1, %v10496_v0  ;;  %v12271_v28 = vcombine.low %v5729_v53, %v11754_v42  ;;  %v10409_v42 = vld [vmem:[%s13080_s1 + $0x70] sm:$0x3f]  }
 0x2f8   : > { %v5432_v55 = vsel %vm287_vm4, %v5427_v47, %v5431_v23  ;;  %v5439_v32 = vrot.slane %v5437_v1, 1 }
 0x2fa   : > { %8913 = vmatmul.mubr.msk.bf16.gmra.mrb[64].mxu0 %vm449_vm2, %v5424_v8  ;;  %v12249_v8 = vld [vmem:[%s10543_s18 + $0xa0] ss:$0 sps:$4 sm:$0x33]   ;;  %v5440_v60 = vsel %vm287_vm4, %v5435_v49, %v5439_v32  ;;  %v5739_v49 = vrot.slane %v11788_v38, 1  ;;  %v2609_v38 = vrot.slane %v1805_v14, 2 }
 0x2fb   : > { %8916 = vmatprep.mubr.msk.bf16.mxu0 %vm10497_vm1, %v10496_v0  ;;  %v1958_v57 = vshrl.u32 %v12249_v8, 16  ;;  %v1961_v5 = vshll.u32 %v12249_v8, 16 }
 0x2fd   : > { %v1960_v47 = vrot.slane %v1958_v57, 1  ;;  %v5736_v57 = vrot.slane %v12271_v28, 1 }
 0x2fe   : > { %8289 = vmatmul.mubr.msk.bf16.gmra.mrb[64].mxu1 %vm449_vm2, %v1947_v34  ;;  %v1963_v34 = vrot.slane %v1961_v5, 2  ;;  %v5737_v5 = vrot.slane %v11767_v51, 1 }
 0x2ff   : > { %8292 = vmatprep.mubr.msk.bf16.mxu1 %vm10497_vm1, %v10496_v0 }
 0x300   : > { %v5738_v53 = vsel %vm934_vm6, %v5736_v57, %v5737_v5 }
 0x302   : > { %8917 = vmatmul.mubr.msk.bf16.gmra.mrb[68].mxu0 %vm449_vm2, %v5432_v55  ;;  %v1964_v55 = vor.u32 %v1963_v34, %v1960_v47  ;;  %v5740_v47 = vsel %vm934_vm6, %v5737_v5, %v5739_v49  ;;  %v2265_v34 = vrot.slane %v11791_v13, 2  ;;  %v2267_v5 = vrot.slane %v11830_v45, 2 }
 0x303   : > { %8920 = vmatprep.mubr.msk.bf16.mxu0 %vm10497_vm1, %v10496_v0 }
 0x304   : > { %v1965_v23 = vsel %vm1269_vm7, %v1955_v10, %v1964_v55  ;;  %v2263_v10 = vrot.slane %v11774_v62, 2  ;;  %v6083_v62 = vrot.slane %v5301_v61, 2  ;;  %v13228_v61 = vshll.u32 %v11791_v13, 16 }
 0x306   : > { %8293 = vmatmul.mubr.msk.bf16.gmra.mrb[68].mxu1 %vm449_vm2, %v1956_v26  ;;  %v12281_v26 = vcombine.low %v2254_v27, %v11763_v17  ;;  %v10408_v17 = vld [vmem:[%s13080_s1 + $0x30] sm:$0x3f]   ;;  %v6222_v27 = vsel %vm507_vm0, %v10409_v42, 0  ;;  %v2266_v55 = vsel %vm507_vm0, %v2263_v10, %v2265_v34  ;;  %v2268_v42 = vsel %vm507_vm0, %v2265_v34, %v2267_v5 }
 0x307   : > { %8296 = vmatprep.mubr.msk.bf16.mxu1 %vm10497_vm1, %v10496_v0  ;;  %v2749_v32 = vsel %vm507_vm0, %v10408_v17, 0 }
 0x30a   : > { %8921 = vmatmul.mubr.msk.bf16.gmra.mrb[72].mxu0 %vm449_vm2, %v5440_v60  ;;  %v2262_v60 = vrot.slane %v12281_v26, 2 }
 0x30b   : > { %8926 = vmatprep.mubr.msk.bf16.mxu0 %vm10497_vm1, %v10496_v0 }
 0x30c   : > { %v2264_v1 = vsel %vm507_vm0, %v2262_v60, %v2263_v10  ;;  %v2269_v10 = vrot.slane %v11849_v46, 2 }
 0x30e   : > { %8297 = vmatmul.mubr.msk.bf16.gmra.mrb[72].mxu1 %vm449_vm2, %v1965_v23  ;;  %v5741_v23 = vrot.slane %v11827_v43, 1  ;;  %v2270_v17 = vsel %vm507_vm0, %v2267_v5, %v2269_v10 }
 0x30f   : > { %8302 = vmatprep.mubr.msk.bf16.mxu1 %vm10497_vm1, %v10496_v0 }
 0x310   : > { %v5742_v57 = vsel %vm934_vm6, %v5739_v49, %v5741_v23  ;;  %v2271_v49 = vrot.slane %v11885_v52, 2 }
 0x312   : > { %8927 = vmatmul.mubr.msk.bf16.vlgmr.msra.gmra.mrb[0].mxu0 %vm449_vm2, %v5738_v53  ;;  %v5743_v53 = vrot.slane %v11846_v25, 1 }
 0x313   : > { %9003 = vmatpush3.bf16.msra.mxu0 %v6222_v27  ;;  %8930 = vmatprep.mubr.msk.bf16.mxu0 %vm10497_vm1, %v10496_v0  ;;  %v5745_v27 = vrot.slane %v11882_v6, 1 }
 0x314   : > { %9080 = vmatprep.subr.bf16.mxu0 %v10496_v0  ;;  %v5744_v60 = vsel %vm934_vm6, %v5741_v23, %v5743_v53 }
 0x316   : > { %8303 = vmatmul.mubr.msk.bf16.vlgmr.msra.gmra.mrb[0].mxu1 %vm449_vm2, %v2264_v1  ;;  %v5746_v1 = vsel %vm934_vm6, %v5743_v53, %v5745_v27 }
 0x317   : > { %8379 = vmatpush3.bf16.msra.mxu1 %v2749_v32  ;;  %8306 = vmatprep.mubr.msk.bf16.mxu1 %vm10497_vm1, %v10496_v0  ;;  %v2272_v32 = vsel %vm507_vm0, %v2269_v10, %v2271_v49 }
 0x318   : > { %8456 = vmatprep.subr.bf16.mxu1 %v10496_v0 }
 0x31a   : > { %8931 = vmatmul.mubr.msk.bf16.gmra.mrb[4].mxu0 %vm449_vm2, %v5740_v47  ;;  %v5747_v47 = vrot.slane %v11898_v44, 1 }
 0x31b   : > { %8934 = vmatprep.mubr.msk.bf16.mxu0 %vm10497_vm1, %v10496_v0 }
 0x31c   : > { %v5748_v34 = vsel %vm934_vm6, %v5745_v27, %v5747_v47 }
 0x31e   : > { %8307 = vmatmul.mubr.msk.bf16.gmra.mrb[4].mxu1 %vm449_vm2, %v2266_v55  ;;  %v2273_v55 = vrot.slane %v11901_v18, 2 }
 0x31f   : > { %8310 = vmatprep.mubr.msk.bf16.mxu1 %vm10497_vm1, %v10496_v0 }
 0x320   : > { %v2274_v23 = vsel %vm507_vm0, %v2271_v49, %v2273_v55 }
 0x322   : > { %8935 = vmatmul.mubr.msk.bf16.gmra.mrb[8].mxu0 %vm449_vm2, %v5742_v57  ;;  %v5749_v57 = vrot.slane %v11934_v40, 1 }
 0x323   : > { %8938 = vmatprep.mubr.msk.bf16.mxu0 %vm10497_vm1, %v10496_v0 }
 0x324   : > { %v5750_v5 = vsel %vm934_vm6, %v5747_v47, %v5749_v57 }
 0x326   : > { %8311 = vmatmul.mubr.msk.bf16.gmra.mrb[8].mxu1 %vm449_vm2, %v2268_v42  ;;  %v2275_v42 = vrot.slane %v11937_v54, 2 }
 0x327   : > { %8314 = vmatprep.mubr.msk.bf16.mxu1 %vm10497_vm1, %v10496_v0 }
 0x328   : > { %v2276_v53 = vsel %vm507_vm0, %v2273_v55, %v2275_v42 }
 0x32a   : > { %8939 = vmatmul.mubr.msk.bf16.gmra.mrb[12].mxu0 %vm449_vm2, %v5744_v60  ;;  %v5751_v60 = vrot.slane %v11950_v22, 1 }
 0x32b   : > { %8942 = vmatprep.mubr.msk.bf16.mxu0 %vm10497_vm1, %v10496_v0 }
 0x32c   : > { %v5752_v10 = vsel %vm934_vm6, %v5749_v57, %v5751_v60 }
 0x32e   : > { %8315 = vmatmul.mubr.msk.bf16.gmra.mrb[12].mxu1 %vm449_vm2, %v2270_v17  ;;  %v2277_v17 = vrot.slane %v11953_v29, 2 }
 0x32f   : > { %8318 = vmatprep.mubr.msk.bf16.mxu1 %vm10497_vm1, %v10496_v0 }
 0x330   : > { %v2278_v27 = vsel %vm507_vm0, %v2275_v42, %v2277_v17 }
 0x332   : > { %8943 = vmatmul.mubr.msk.bf16.gmra.mrb[16].mxu0 %vm449_vm2, %v5746_v1  ;;  %v5753_v1 = vrot.slane %v11986_v48, 1 }
 0x333   : > { %8946 = vmatprep.mubr.msk.bf16.mxu0 %vm10497_vm1, %v10496_v0 }
 0x334   : > { %v5754_v49 = vsel %vm934_vm6, %v5751_v60, %v5753_v1 }
 0x336   : > { %8319 = vmatmul.mubr.msk.bf16.gmra.mrb[16].mxu1 %vm449_vm2, %v2272_v32  ;;  %v2279_v32 = vrot.slane %v11989_v15, 2 }
 0x337   : > { %8322 = vmatprep.mubr.msk.bf16.mxu1 %vm10497_vm1, %v10496_v0 }
 0x338   : > { %v2280_v47 = vsel %vm507_vm0, %v2277_v17, %v2279_v32 }
 0x33a   : > { %8947 = vmatmul.mubr.msk.bf16.gmra.mrb[20].mxu0 %vm449_vm2, %v5748_v34  ;;  %v5755_v34 = vrot.slane %v12002_v37, 1 }
 0x33b   : > { %8950 = vmatprep.mubr.msk.bf16.mxu0 %vm10497_vm1, %v10496_v0 }
 0x33c   : > { %v5756_v55 = vsel %vm934_vm6, %v5753_v1, %v5755_v34 }
 0x33e   : > { %8323 = vmatmul.mubr.msk.bf16.gmra.mrb[20].mxu1 %vm449_vm2, %v2274_v23  ;;  %v2281_v23 = vrot.slane %v12005_v3, 2 }
 0x33f   : > { %8326 = vmatprep.mubr.msk.bf16.mxu1 %vm10497_vm1, %v10496_v0 }
 0x340   : > { %v2282_v57 = vsel %vm507_vm0, %v2279_v32, %v2281_v23 }
 0x342   : > { %8951 = vmatmul.mubr.msk.bf16.gmra.mrb[24].mxu0 %vm449_vm2, %v5750_v5  ;;  %v5757_v5 = vrot.slane %v12038_v39, 1 }
 0x343   : > { %8954 = vmatprep.mubr.msk.bf16.mxu0 %vm10497_vm1, %v10496_v0 }
 0x344   : > { %v5758_v42 = vsel %vm934_vm6, %v5755_v34, %v5757_v5 }
 0x346   : > { %8327 = vmatmul.mubr.msk.bf16.gmra.mrb[24].mxu1 %vm449_vm2, %v2276_v53  ;;  %v2283_v53 = vrot.slane %v12041_v56, 2 }
 0x347   : > { %8330 = vmatprep.mubr.msk.bf16.mxu1 %vm10497_vm1, %v10496_v0 }
 0x348   : > { %v2284_v60 = vsel %vm507_vm0, %v2281_v23, %v2283_v53 }
 0x34a   : > { %8955 = vmatmul.mubr.msk.bf16.gmra.mrb[28].mxu0 %vm449_vm2, %v5752_v10  ;;  %v5759_v10 = vrot.slane %v12054_v21, 1 }
 0x34b   : > { %8958 = vmatprep.mubr.msk.bf16.mxu0 %vm10497_vm1, %v10496_v0 }
 0x34c   : > { %v5760_v17 = vsel %vm934_vm6, %v5757_v5, %v5759_v10 }
 0x34e   : > { %8331 = vmatmul.mubr.msk.bf16.gmra.mrb[28].mxu1 %vm449_vm2, %v2278_v27  ;;  %v2285_v27 = vrot.slane %v12057_v19, 2 }
 0x34f   : > { %8334 = vmatprep.mubr.msk.bf16.mxu1 %vm10497_vm1, %v10496_v0 }
 0x350   : > { %v2286_v1 = vsel %vm507_vm0, %v2283_v53, %v2285_v27 }
 0x352   : > { %8959 = vmatmul.mubr.msk.bf16.gmra.mrb[32].mxu0 %vm449_vm2, %v5754_v49  ;;  %v5761_v49 = vrot.slane %v12090_v63, 1 }
 0x353   : > { %8962 = vmatprep.mubr.msk.bf16.mxu0 %vm10497_vm1, %v10496_v0 }
 0x354   : > { %v5762_v32 = vsel %vm934_vm6, %v5759_v10, %v5761_v49 }
 0x356   : > { %8335 = vmatmul.mubr.msk.bf16.gmra.mrb[32].mxu1 %vm449_vm2, %v2280_v47  ;;  %v2287_v47 = vrot.slane %v12093_v20, 2 }
 0x357   : > { %8338 = vmatprep.mubr.msk.bf16.mxu1 %vm10497_vm1, %v10496_v0 }
 0x358   : > { %v2288_v34 = vsel %vm507_vm0, %v2285_v27, %v2287_v47 }
 0x35a   : > { %8963 = vmatmul.mubr.msk.bf16.gmra.mrb[36].mxu0 %vm449_vm2, %v5756_v55  ;;  %v5763_v55 = vrot.slane %v12106_v12, 1 }
 0x35b   : > { %8966 = vmatprep.mubr.msk.bf16.mxu0 %vm10497_vm1, %v10496_v0 }
 0x35c   : > { %v5764_v23 = vsel %vm934_vm6, %v5761_v49, %v5763_v55 }
 0x35e   : > { %8339 = vmatmul.mubr.msk.bf16.gmra.mrb[36].mxu1 %vm449_vm2, %v2282_v57  ;;  %v2289_v57 = vrot.slane %v12109_v41, 2 }
 0x35f   : > { %8342 = vmatprep.mubr.msk.bf16.mxu1 %vm10497_vm1, %v10496_v0 }
 0x360   : > { %v2290_v5 = vsel %vm507_vm0, %v2287_v47, %v2289_v57 }
 0x362   : > { %8967 = vmatmul.mubr.msk.bf16.gmra.mrb[40].mxu0 %vm449_vm2, %v5758_v42  ;;  %v5765_v42 = vrot.slane %v12142_v16, 1 }
 0x363   : > { %8970 = vmatprep.mubr.msk.bf16.mxu0 %vm10497_vm1, %v10496_v0 }
 0x364   : > { %v5766_v53 = vsel %vm934_vm6, %v5763_v55, %v5765_v42 }
 0x366   : > { %8343 = vmatmul.mubr.msk.bf16.gmra.mrb[40].mxu1 %vm449_vm2, %v2284_v60  ;;  %v2291_v60 = vrot.slane %v12145_v59, 2 }
 0x367   : > { %8346 = vmatprep.mubr.msk.bf16.mxu1 %vm10497_vm1, %v10496_v0 }
 0x368   : > { %v2292_v10 = vsel %vm507_vm0, %v2289_v57, %v2291_v60 }
 0x36a   : > { %8971 = vmatmul.mubr.msk.bf16.gmra.mrb[44].mxu0 %vm449_vm2, %v5760_v17  ;;  %v5767_v17 = vrot.slane %v12158_v24, 1 }
 0x36b   : > { %8974 = vmatprep.mubr.msk.bf16.mxu0 %vm10497_vm1, %v10496_v0 }
 0x36c   : > { %v5768_v27 = vsel %vm934_vm6, %v5765_v42, %v5767_v17  ;;  %v6071_v42 = vshrl.u32 %v12271_v28, 16 }
 0x36e   : > { %8347 = vmatmul.mubr.msk.bf16.gmra.mrb[44].mxu1 %vm449_vm2, %v2286_v1  ;;  %v2293_v1 = vrot.slane %v12161_v31, 2 }
 0x36f   : > { %8350 = vmatprep.mubr.msk.bf16.mxu1 %vm10497_vm1, %v10496_v0 }
 0x370   : > { %v2294_v49 = vsel %vm507_vm0, %v2291_v60, %v2293_v1 }
 0x372   : > { %8975 = vmatmul.mubr.msk.bf16.gmra.mrb[48].mxu0 %vm449_vm2, %v5762_v32  ;;  %v5769_v32 = vrot.slane %v12194_v4, 1 }
 0x373   : > { %8978 = vmatprep.mubr.msk.bf16.mxu0 %vm10497_vm1, %v10496_v0 }
 0x374   : > { %v5770_v47 = vsel %vm934_vm6, %v5767_v17, %v5769_v32  ;;  %v6078_v17 = vrot.slane %v5297_v50, 1 }
 0x376   : > { %8351 = vmatmul.mubr.msk.bf16.gmra.mrb[48].mxu1 %vm449_vm2, %v2288_v34  ;;  %v2295_v34 = vrot.slane %v12197_v33, 2 }
 0x377   : > { %8354 = vmatprep.mubr.msk.bf16.mxu1 %vm10497_vm1, %v10496_v0 }
 0x378   : > { %v2296_v55 = vsel %vm507_vm0, %v2293_v1, %v2295_v34  ;;  %v6073_v1 = vrot.slane %v6071_v42, 1 }
 0x37a   : > { %8979 = vmatmul.mubr.msk.bf16.gmra.mrb[52].mxu0 %vm449_vm2, %v5764_v23  ;;  %v5771_v23 = vrot.slane %v12210_v11, 1 }
 0x37b   : > { %8982 = vmatprep.mubr.msk.bf16.mxu0 %vm10497_vm1, %v10496_v0 }
 0x37c   : > { %v5772_v57 = vsel %vm934_vm6, %v5769_v32, %v5771_v23  ;;  %v6079_v32 = vrot.slane %v5293_v30, 2 }
 0x37e   : > { %8355 = vmatmul.mubr.msk.bf16.gmra.mrb[52].mxu1 %vm449_vm2, %v2290_v5  ;;  %v2297_v5 = vrot.slane %v12213_v58, 2 }
 0x37f   : > { %8358 = vmatprep.mubr.msk.bf16.mxu1 %vm10497_vm1, %v10496_v0 }
 0x380   : > { %v2298_v60 = vsel %vm507_vm0, %v2295_v34, %v2297_v5 }
 0x382   : > { %8983 = vmatmul.mubr.msk.bf16.gmra.mrb[56].mxu0 %vm449_vm2, %v5766_v53  ;;  %v6074_v53 = vshll.u32 %v12271_v28, 16 }
 0x383   : > { %8986 = vmatprep.mubr.msk.bf16.mxu0 %vm10497_vm1, %v10496_v0 }
 0x386   : > { %8359 = vmatmul.mubr.msk.bf16.gmra.mrb[56].mxu1 %vm449_vm2, %v2292_v10  ;;  %v5773_v10 = vrot.slane %v12246_v2, 1  ;;  %v2601_v2 = vshll.u32 %v12281_v26, 16 }
 0x387   : > { %8362 = vmatprep.mubr.msk.bf16.mxu1 %vm10497_vm1, %v10496_v0 }
 0x388   : > { %v5774_v28 = vsel %vm934_vm6, %v5771_v23, %v5773_v10  ;;  %v2603_v30 = vrot.slane %v2601_v2, 3  ;;  %v2606_v23 = vrot.slane %v1799_v36, 3  ;;  %v13231_v2 = vshrl.u32 %v11830_v45, 16 }
 0x38a   : > { %8987 = vmatmul.mubr.msk.bf16.gmra.mrb[60].mxu0 %vm449_vm2, %v5768_v27  ;;  %v2299_v27 = vrot.slane %v12249_v8, 2  ;;  %v6080_v8 = vor.u32 %v6079_v32, %v6078_v17 }
 0x38b   : > { %8990 = vmatprep.mubr.msk.bf16.mxu0 %vm10497_vm1, %v10496_v0 }
 0x38c   : > { %v2300_v50 = vsel %vm507_vm0, %v2297_v5, %v2299_v27 }
 0x38e   : > { %8363 = vmatmul.mubr.msk.bf16.gmra.mrb[60].mxu1 %vm449_vm2, %v2294_v49  ;;  %v6076_v49 = vrot.slane %v6074_v53, 2  ;;  %v6082_v53 = vrot.slane %v5305_v35, 1  ;;  %v2610_v35 = vrot.slane %v13228_v61, 3 }
 0x38f   : > { %8366 = vmatprep.mubr.msk.bf16.mxu1 %vm10497_vm1, %v10496_v0 }
 0x390   : > { %v6077_v34 = vor.u32 %v6076_v49, %v6073_v1  ;;  %v6084_v10 = vor.u32 %v6083_v62, %v6082_v53  ;;  %v2611_v1 = vor.u32 %v2610_v35, %v2609_v38  ;;  %v13229_v49 = vshrl.u32 %v11827_v43, 16 }
 0x391   : > { %v13236_v53 = vshll.u32 %v11849_v46, 16  ;;  %v13239_v35 = vshrl.u32 %v11885_v52, 16 }
 0x392   : > { %8991 = vmatmul.mubr.msk.bf16.gmra.mrb[64].mxu0 %vm449_vm2, %v5770_v47  ;;  %v2598_v47 = vshrl.u32 %v12281_v26, 16  ;;  %v10411_v26 = vld [vmem:[%s13080_s1 + $0x78] sm:$0x3f]   ;;  %v6085_v27 = vsel %vm1269_vm7, %v6080_v8, %v6084_v10  ;;  %v6086_v32 = vrot.slane %v13229_v49, 1 }
 0x393   : > { %8994 = vmatprep.mubr.msk.bf16.mxu0 %vm10497_vm1, %v10496_v0  ;;  %v6556_v36 = vsel %vm507_vm0, %v10411_v26, 0  ;;  %v2618_v62 = vrot.slane %v13236_v53, 3 }
 0x394   : > { %v2600_v51 = vrot.slane %v2598_v47, 2 }
 0x396   : > { %8367 = vmatmul.mubr.msk.bf16.gmra.mrb[64].mxu1 %vm449_vm2, %v2296_v55  ;;  %v2605_v55 = vrot.slane %v1796_v9, 2  ;;  %v2604_v5 = vor.u32 %v2603_v30, %v2600_v51  ;;  %v10410_v9 = vld [vmem:[%s13080_s1 + $0x38] sm:$0x3f]   ;;  %v13233_v30 = vshrl.u32 %v11846_v25, 16 }
 0x397   : > { %8370 = vmatprep.mubr.msk.bf16.mxu1 %vm10497_vm1, %v10496_v0  ;;  %v3084_v17 = vsel %vm507_vm0, %v10410_v9, 0 }
 0x398   : > { %v2607_v42 = vor.u32 %v2606_v23, %v2605_v55  ;;  %v6090_v55 = vrot.slane %v13233_v30, 1  ;;  %v13234_v23 = vshll.u32 %v11846_v25, 16 }
 0x39a   : > { %8995 = vmatmul.mubr.msk.bf16.gmra.mrb[68].mxu0 %vm449_vm2, %v5772_v57  ;;  %v6081_v57 = vsel %vm1269_vm7, %v6077_v34, %v6080_v8  ;;  %v2612_v13 = vsel %vm2596_vm8, %v2607_v42, %v2611_v1  ;;  %v13232_v34 = vshll.u32 %v11830_v45, 16  ;;  %v6091_v26 = vrot.slane %v13234_v23, 2 }
 0x39b   : > { %8998 = vmatprep.mubr.msk.bf16.mxu0 %vm10497_vm1, %v10496_v0 }
 0x39c   : > { %v2614_v8 = vrot.slane %v13232_v34, 3  ;;  %v6092_v45 = vor.u32 %v6091_v26, %v6090_v55  ;;  %v13244_v34 = vshll.u32 %v11901_v18, 16  ;;  %v13246_v55 = vshll.u32 %v11934_v40, 16 }
 0x39e   : > { %8371 = vmatmul.mubr.msk.bf16.gmra.mrb[68].mxu1 %vm449_vm2, %v2298_v60  ;;  %v2608_v60 = vsel %vm2596_vm8, %v2604_v5, %v2607_v42  ;;  %v13235_v5 = vshrl.u32 %v11849_v46, 16  ;;  %v6103_v23 = vrot.slane %v13246_v55, 2 }
 0x39f   : > { %8374 = vmatprep.mubr.msk.bf16.mxu1 %vm10497_vm1, %v10496_v0 }
 0x3a0   : > { %v2617_v42 = vrot.slane %v13235_v5, 2  ;;  %v13248_v5 = vshll.u32 %v11937_v54, 16 }
 0x3a2   : > { %8999 = vmatmul.mubr.msk.bf16.gmra.mrb[72].mxu0 %vm449_vm2, %v5774_v28  ;;  %v13230_v28 = vshll.u32 %v11827_v43, 16  ;;  %v2619_v25 = vor.u32 %v2618_v62, %v2617_v42  ;;  %v2630_v42 = vrot.slane %v13248_v5, 3  ;;  %v13249_v62 = vshrl.u32 %v11950_v22, 16 }
 0x3a3   : > { %9004 = vmatprep.mubr.msk.bf16.mxu0 %vm10497_vm1, %v10496_v0  ;;  %v13263_v5 = vshrl.u32 %v12041_v56, 16 }
 0x3a4   : > { %v6087_v14 = vrot.slane %v13230_v28, 2 }
 0x3a6   : > { %8375 = vmatmul.mubr.msk.bf16.gmra.mrb[72].mxu1 %vm449_vm2, %v2300_v50  ;;  %v6088_v47 = vor.u32 %v6087_v14, %v6086_v32  ;;  %v2613_v50 = vrot.slane %v13231_v2, 2  ;;  %v13241_v32 = vshrl.u32 %v11898_v44, 16  ;;  %v13242_v14 = vshll.u32 %v11898_v44, 16 }
 0x3a7   : > { %8380 = vmatprep.mubr.msk.bf16.mxu1 %vm10497_vm1, %v10496_v0  ;;  %v13243_v2 = vshrl.u32 %v11901_v18, 16 }
 0x3a8   : > { %v6089_v51 = vsel %vm1269_vm7, %v6084_v10, %v6088_v47  ;;  %v2615_v43 = vor.u32 %v2614_v8, %v2613_v50  ;;  %v6093_v9 = vsel %vm1269_vm7, %v6088_v47, %v6092_v45  ;;  %v13238_v10 = vshll.u32 %v11882_v6, 16 }
 0x3a9   : > { %v6098_v28 = vrot.slane %v13241_v32, 1  ;;  %v2625_v50 = vrot.slane %v13243_v2, 2  ;;  %v2626_v8 = vrot.slane %v13244_v34, 3  ;;  %v13255_v32 = vshrl.u32 %v11989_v15, 16 }
 0x3aa   : > { %9005 = vmatmul.mubr.msk.bf16.vlgmr.msra.gmra.mrb[0].mxu0 %vm449_vm2, %v6081_v57  ;;  %v2616_v57 = vsel %vm2596_vm8, %v2611_v1, %v2615_v43  ;;  %v6095_v38 = vrot.slane %v13238_v10, 2  ;;  %v2620_v61 = vsel %vm2596_vm8, %v2615_v43, %v2619_v25  ;;  %v13245_v43 = vshrl.u32 %v11934_v40, 16 }
 0x3ab   : > { %9081 = vmatpush3.bf16.msra.mxu0 %v6556_v36  ;;  %9008 = vmatprep.mubr.msk.bf16.mxu0 %vm10497_vm1, %v10496_v0  ;;  %v13237_v36 = vshrl.u32 %v11882_v6, 16  ;;  %v2627_v44 = vor.u32 %v2626_v8, %v2625_v50  ;;  %v13251_v10 = vshrl.u32 %v11953_v29, 16  ;;  %v13258_v50 = vshll.u32 %v12002_v37, 16 }
 0x3ac   : > { %v6102_v30 = vrot.slane %v13245_v43, 1  ;;  %v13260_v43 = vshll.u32 %v12005_v3, 16 }
 0x3ad   : > { %v6115_v34 = vrot.slane %v13258_v50, 2  ;;  %v13275_v50 = vshrl.u32 %v12109_v41, 16 }
 0x3ae   : > { %8381 = vmatmul.mubr.msk.bf16.vlgmr.msra.gmra.mrb[0].mxu1 %vm449_vm2, %v2608_v60  ;;  %v6094_v60 = vrot.slane %v13237_v36, 1  ;;  %v6104_v18 = vor.u32 %v6103_v23, %v6102_v30  ;;  %v2642_v30 = vrot.slane %v13260_v43, 3  ;;  %v13261_v23 = vshrl.u32 %v12038_v39, 16 }
 0x3af   : > { %8457 = vmatpush3.bf16.msra.mxu1 %v3084_v17  ;;  %8384 = vmatprep.mubr.msk.bf16.mxu1 %vm10497_vm1, %v10496_v0  ;;  %v2621_v17 = vrot.slane %v13239_v35, 2 }
 0x3b0   : > { %v6096_v46 = vor.u32 %v6095_v38, %v6094_v60  ;;  %v2633_v38 = vrot.slane %v13251_v10, 2  ;;  %v13267_v10 = vshrl.u32 %v12057_v19, 16 }
 0x3b2   : > { %9009 = vmatmul.mubr.msk.bf16.gmra.mrb[4].mxu0 %vm449_vm2, %v6085_v27  ;;  %v13240_v27 = vshll.u32 %v11885_v52, 16  ;;  %v6097_v49 = vsel %vm1269_vm7, %v6092_v45, %v6096_v46 }
 0x3b3   : > { %9012 = vmatprep.mubr.msk.bf16.mxu0 %vm10497_vm1, %v10496_v0 }
 0x3b4   : > { %v2622_v1 = vrot.slane %v13240_v27, 3 }
 0x3b6   : > { %8385 = vmatmul.mubr.msk.bf16.gmra.mrb[4].mxu1 %vm449_vm2, %v2612_v13  ;;  %v2623_v6 = vor.u32 %v2622_v1, %v2621_v17  ;;  %v6099_v13 = vrot.slane %v13242_v14, 2  ;;  %v13253_v17 = vshrl.u32 %v11986_v48, 16  ;;  %v13254_v1 = vshll.u32 %v11986_v48, 16 }
 0x3b7   : > { %8388 = vmatprep.mubr.msk.bf16.mxu1 %vm10497_vm1, %v10496_v0  ;;  %v13256_v14 = vshll.u32 %v11989_v15, 16 }
 0x3b8   : > { %v2624_v47 = vsel %vm2596_vm8, %v2619_v25, %v2623_v6  ;;  %v6100_v52 = vor.u32 %v6099_v13, %v6098_v28  ;;  %v2628_v26 = vsel %vm2596_vm8, %v2623_v6, %v2627_v44  ;;  %v13250_v25 = vshll.u32 %v11950_v22, 16 }
 0x3b9   : > { %v6110_v27 = vrot.slane %v13253_v17, 1  ;;  %v2637_v28 = vrot.slane %v13255_v32, 2  ;;  %v2638_v13 = vrot.slane %v13256_v14, 3  ;;  %v13272_v32 = vshll.u32 %v12093_v20, 16 }
 0x3ba   : > { %9013 = vmatmul.mubr.msk.bf16.gmra.mrb[8].mxu0 %vm449_vm2, %v6089_v51  ;;  %v6101_v51 = vsel %vm1269_vm7, %v6096_v46, %v6100_v52  ;;  %v6105_v53 = vsel %vm1269_vm7, %v6100_v52, %v6104_v18  ;;  %v6107_v36 = vrot.slane %v13250_v25, 2  ;;  %v13257_v52 = vshrl.u32 %v12002_v37, 16 }
 0x3bb   : > { %9016 = vmatprep.mubr.msk.bf16.mxu0 %vm10497_vm1, %v10496_v0  ;;  %v2639_v48 = vor.u32 %v2638_v13, %v2637_v28  ;;  %v2654_v28 = vrot.slane %v13272_v32, 3  ;;  %v13273_v13 = vshrl.u32 %v12106_v12, 16 }
 0x3bc   : > { %v6114_v2 = vrot.slane %v13257_v52, 1 }
 0x3be   : > { %8389 = vmatmul.mubr.msk.bf16.gmra.mrb[8].mxu1 %vm449_vm2, %v2616_v57  ;;  %v13247_v57 = vshrl.u32 %v11937_v54, 16  ;;  %v6116_v15 = vor.u32 %v6115_v34, %v6114_v2  ;;  %v2657_v34 = vrot.slane %v13275_v50, 2 }
 0x3bf   : > { %8392 = vmatprep.mubr.msk.bf16.mxu1 %vm10497_vm1, %v10496_v0 }
 0x3c0   : > { %v2629_v45 = vrot.slane %v13247_v57, 2 }
 0x3c2   : > { %9017 = vmatmul.mubr.msk.bf16.gmra.mrb[12].mxu0 %vm449_vm2, %v6093_v9  ;;  %v2631_v40 = vor.u32 %v2630_v42, %v2629_v45  ;;  %v6106_v9 = vrot.slane %v13249_v62, 1  ;;  %v2645_v42 = vrot.slane %v13263_v5, 2 }
 0x3c3   : > { %9020 = vmatprep.mubr.msk.bf16.mxu0 %vm10497_vm1, %v10496_v0 }
 0x3c4   : > { %v2632_v60 = vsel %vm2596_vm8, %v2627_v44, %v2631_v40  ;;  %v6108_v54 = vor.u32 %v6107_v36, %v6106_v9  ;;  %v13265_v9 = vshrl.u32 %v12054_v21, 16  ;;  %v13266_v36 = vshll.u32 %v12054_v21, 16 }
 0x3c6   : > { %8393 = vmatmul.mubr.msk.bf16.gmra.mrb[12].mxu1 %vm449_vm2, %v2620_v61  ;;  %v13252_v61 = vshll.u32 %v11953_v29, 16  ;;  %v6109_v35 = vsel %vm1269_vm7, %v6104_v18, %v6108_v54  ;;  %v13262_v18 = vshll.u32 %v12038_v39, 16  ;;  %v6122_v25 = vrot.slane %v13265_v9, 1 }
 0x3c7   : > { %8396 = vmatprep.mubr.msk.bf16.mxu1 %vm10497_vm1, %v10496_v0  ;;  %v13284_v9 = vshll.u32 %v12161_v31, 16 }
 0x3c8   : > { %v2634_v46 = vrot.slane %v13252_v61, 3  ;;  %v6119_v57 = vrot.slane %v13262_v18, 2  ;;  %v13268_v61 = vshll.u32 %v12057_v19, 16  ;;  %v13280_v18 = vshll.u32 %v12145_v59, 16 }
 0x3ca   : > { %9021 = vmatmul.mubr.msk.bf16.gmra.mrb[16].mxu0 %vm449_vm2, %v6097_v49  ;;  %v2635_v22 = vor.u32 %v2634_v46, %v2633_v38  ;;  %v6111_v49 = vrot.slane %v13254_v1, 2  ;;  %v2649_v38 = vrot.slane %v13267_v10, 2  ;;  %v2650_v46 = vrot.slane %v13268_v61, 3 }
 0x3cb   : > { %9024 = vmatprep.mubr.msk.bf16.mxu0 %vm10497_vm1, %v10496_v0  ;;  %v13287_v61 = vshrl.u32 %v12197_v33, 16 }
 0x3cc   : > { %v2636_v6 = vsel %vm2596_vm8, %v2631_v40, %v2635_v22  ;;  %v6112_v29 = vor.u32 %v6111_v49, %v6110_v27  ;;  %v2640_v8 = vsel %vm2596_vm8, %v2635_v22, %v2639_v48  ;;  %v2651_v21 = vor.u32 %v2650_v46, %v2649_v38 }
 0x3cd   : > { %v13269_v22 = vshrl.u32 %v12090_v63, 16  ;;  %v13270_v27 = vshll.u32 %v12090_v63, 16  ;;  %v2669_v46 = vrot.slane %v13287_v61, 2 }
 0x3ce   : > { %8397 = vmatmul.mubr.msk.bf16.gmra.mrb[16].mxu1 %vm449_vm2, %v2624_v47  ;;  %v6113_v47 = vsel %vm1269_vm7, %v6108_v54, %v6112_v29  ;;  %v6117_v55 = vsel %vm1269_vm7, %v6112_v29, %v6116_v15 }
 0x3cf   : > { %8400 = vmatprep.mubr.msk.bf16.mxu1 %vm10497_vm1, %v10496_v0  ;;  %v6126_v17 = vrot.slane %v13269_v22, 1  ;;  %v6127_v1 = vrot.slane %v13270_v27, 2  ;;  %v13289_v22 = vshll.u32 %v12210_v11, 16 }
 0x3d1   : > { %v6128_v19 = vor.u32 %v6127_v1, %v6126_v17  ;;  %v6147_v17 = vrot.slane %v13289_v22, 2 }
 0x3d2   : > { %9025 = vmatmul.mubr.msk.bf16.gmra.mrb[20].mxu0 %vm449_vm2, %v6101_v51  ;;  %v13259_v51 = vshrl.u32 %v12005_v3, 16 }
 0x3d3   : > { %9028 = vmatprep.mubr.msk.bf16.mxu0 %vm10497_vm1, %v10496_v0 }
 0x3d4   : > { %v2641_v44 = vrot.slane %v13259_v51, 2 }
 0x3d6   : > { %8401 = vmatmul.mubr.msk.bf16.gmra.mrb[20].mxu1 %vm449_vm2, %v2628_v26  ;;  %v2643_v37 = vor.u32 %v2642_v30, %v2641_v44  ;;  %v6118_v26 = vrot.slane %v13261_v23, 1  ;;  %v13277_v44 = vshrl.u32 %v12142_v16, 16  ;;  %v13278_v30 = vshll.u32 %v12142_v16, 16 }
 0x3d7   : > { %8404 = vmatprep.mubr.msk.bf16.mxu1 %vm10497_vm1, %v10496_v0  ;;  %v13279_v23 = vshrl.u32 %v12145_v59, 16 }
 0x3d8   : > { %v2644_v45 = vsel %vm2596_vm8, %v2639_v48, %v2643_v37  ;;  %v6120_v3 = vor.u32 %v6119_v57, %v6118_v26  ;;  %v13274_v48 = vshll.u32 %v12106_v12, 16  ;;  %v6134_v43 = vrot.slane %v13277_v44, 1 }
 0x3d9   : > { %v2661_v26 = vrot.slane %v13279_v23, 2  ;;  %v2662_v57 = vrot.slane %v13280_v18, 3  ;;  %v10452_v23 = vld [vmem:[%s10543_s18 + $0xc] sm:$0xf] }
 0x3da   : > { %9029 = vmatmul.mubr.msk.bf16.gmra.mrb[24].mxu0 %vm449_vm2, %v6105_v53  ;;  %v13264_v53 = vshll.u32 %v12041_v56, 16  ;;  %v6121_v62 = vsel %vm1269_vm7, %v6116_v15, %v6120_v3  ;;  %v6131_v52 = vrot.slane %v13274_v48, 2 }
 0x3db   : > { %9032 = vmatprep.mubr.msk.bf16.mxu0 %vm10497_vm1, %v10496_v0  ;;  %v2663_v16 = vor.u32 %v2662_v57, %v2661_v26 }
 0x3dc   : > { %v2646_v40 = vrot.slane %v13264_v53, 3 }
 0x3de   : > { %8405 = vmatmul.mubr.msk.bf16.gmra.mrb[24].mxu1 %vm449_vm2, %v2632_v60  ;;  %v2647_v39 = vor.u32 %v2646_v40, %v2645_v42  ;;  %v6123_v60 = vrot.slane %v13266_v36, 2  ;;  %v13282_v42 = vshll.u32 %v12158_v24, 16 }
 0x3df   : > { %8408 = vmatprep.mubr.msk.bf16.mxu1 %vm10497_vm1, %v10496_v0 }
 0x3e0   : > { %v2648_v54 = vsel %vm2596_vm8, %v2643_v37, %v2647_v39  ;;  %v6124_v56 = vor.u32 %v6123_v60, %v6122_v25  ;;  %v2652_v49 = vsel %vm2596_vm8, %v2647_v39, %v2651_v21  ;;  %v6139_v53 = vrot.slane %v13282_v42, 2 }
 0x3e1   : > { %v2666_v25 = vrot.slane %v13284_v9, 3  ;;  %v13285_v60 = vshrl.u32 %v12194_v4, 16 }
 0x3e2   : > { %9033 = vmatmul.mubr.msk.bf16.gmra.mrb[28].mxu0 %vm449_vm2, %v6109_v35  ;;  %v6125_v35 = vsel %vm1269_vm7, %v6120_v3, %v6124_v56  ;;  %v6129_v14 = vsel %vm1269_vm7, %v6124_v56, %v6128_v19  ;;  %v13281_v3 = vshrl.u32 %v12158_v24, 16  ;;  %v13286_v56 = vshll.u32 %v12194_v4, 16 }
 0x3e3   : > { %9036 = vmatprep.mubr.msk.bf16.mxu0 %vm10497_vm1, %v10496_v0  ;;  %v6146_v4 = vrot.slane %v5433_v7, 1 }
 0x3e4   : > { %v6138_v5 = vrot.slane %v13281_v3, 1  ;;  %v6143_v10 = vrot.slane %v13286_v56, 2 }
 0x3e6   : > { %8409 = vmatmul.mubr.msk.bf16.gmra.mrb[28].mxu1 %vm449_vm2, %v2636_v6  ;;  %v13271_v6 = vshrl.u32 %v12093_v20, 16  ;;  %v6140_v59 = vor.u32 %v6139_v53, %v6138_v5  ;;  %v10454_v5 = vld [vmem:[%s10543_s18 + $0x2c] sm:$0xff]  }
 0x3e7   : > { %8412 = vmatprep.mubr.msk.bf16.mxu1 %vm10497_vm1, %v10496_v0  ;;  %v6457_v42 = vrot.slane %v10454_v5, 2 }
 0x3e8   : > { %v2653_v29 = vrot.slane %v13271_v6, 2 }
 0x3ea   : > { %9037 = vmatmul.mubr.msk.bf16.gmra.mrb[32].mxu0 %vm449_vm2, %v6113_v47  ;;  %v2655_v63 = vor.u32 %v2654_v28, %v2653_v29  ;;  %v6130_v47 = vrot.slane %v13273_v13, 1  ;;  %v13291_v29 = vshll.u32 %v12213_v58, 16 }
 0x3eb   : > { %9040 = vmatprep.mubr.msk.bf16.mxu0 %vm10497_vm1, %v10496_v0 }
 0x3ec   : > { %v2656_v2 = vsel %vm2596_vm8, %v2651_v21, %v2655_v63  ;;  %v6132_v20 = vor.u32 %v6131_v52, %v6130_v47  ;;  %v2674_v7 = vrot.slane %v13291_v29, 3 }
 0x3ee   : > { %8413 = vmatmul.mubr.msk.bf16.gmra.mrb[32].mxu1 %vm449_vm2, %v2640_v8  ;;  %v13276_v8 = vshll.u32 %v12109_v41, 16  ;;  %v6133_v51 = vsel %vm1269_vm7, %v6128_v19, %v6132_v20  ;;  %v13290_v19 = vshrl.u32 %v12213_v58, 16 }
 0x3ef   : > { %8416 = vmatprep.mubr.msk.bf16.mxu1 %vm10497_vm1, %v10496_v0 }
 0x3f0   : > { %v2658_v15 = vrot.slane %v13276_v8, 3  ;;  %v2673_v6 = vrot.slane %v13290_v19, 2  ;;  %v6447_v8 = vld [vmem:[%s10543_s18 + $0x1c] sm:$0xc] }
 0x3f1   : > { %v10463_v19 = vld [vmem:[%s10543_s18 + $0x38] sm:$0xff]  }
 0x3f2   : > { %9041 = vmatmul.mubr.msk.bf16.gmra.mrb[36].mxu0 %vm449_vm2, %v6117_v55  ;;  %v2659_v12 = vor.u32 %v2658_v15, %v2657_v34  ;;  %v6135_v55 = vrot.slane %v13278_v30, 2  ;;  %v2675_v13 = vor.u32 %v2674_v7, %v2673_v6  ;;  %v2993_v6 = vrot.slane %v10463_v19, 3  ;;  %v10464_v7 = vld [vmem:[%s10543_s18 + $0x54] sm:$0xff]  }
 0x3f3   : > { %9044 = vmatprep.mubr.msk.bf16.mxu0 %vm10497_vm1, %v10496_v0 }
 0x3f4   : > { %v2660_v37 = vsel %vm2596_vm8, %v2655_v63, %v2659_v12  ;;  %v6136_v41 = vor.u32 %v6135_v55, %v6134_v43  ;;  %v2664_v40 = vsel %vm2596_vm8, %v2659_v12, %v2663_v16  ;;  %v10450_v12 = vld [vmem:[%s10543_s18 + $0x20] sm:$0xf]  ;;  %v2974_v43 = vld [vmem:[%s10543_s18 + $0x8] sm:$0x8] }
 0x3f5   : > { %v7491_v44 = vcombine.low %v6447_v8, %v10450_v12  ;;  %v7232_v26 = vcombine.low %v2974_v43, %v10452_v23  ;;  %v10472_v23 = vld [vmem:[%s10543_s18 + $0x74] sm:$0xff]  }
 0x3f6   : > { %8417 = vmatmul.mubr.msk.bf16.gmra.mrb[36].mxu1 %vm449_vm2, %v2644_v45  ;;  %v6137_v45 = vsel %vm1269_vm7, %v6132_v20, %v6136_v41  ;;  %v6141_v36 = vsel %vm1269_vm7, %v6136_v41, %v6140_v59 }
 0x3f7   : > { %8420 = vmatprep.mubr.msk.bf16.mxu1 %vm10497_vm1, %v10496_v0  ;;  %v6454_v55 = vrot.slane %v7491_v44, 2  ;;  %v2982_v57 = vrot.slane %v7232_v26, 3  ;;  %v10470_v44 = vld [vmem:[%s10543_s18 + $0x6c] sm:$0xff]   ;;  %v6475_v26 = vrot.slane %v10472_v23, 2 }
 0x3f8   : > { %v6473_v43 = vrot.slane %v10470_v44, 2 }
 0x3fa   : > { %9045 = vmatmul.mubr.msk.bf16.gmra.mrb[40].mxu0 %vm449_vm2, %v6121_v62  ;;  %v13283_v62 = vshrl.u32 %v12161_v31, 16 }
 0x3fb   : > { %9048 = vmatprep.mubr.msk.bf16.mxu0 %vm10497_vm1, %v10496_v0 }
 0x3fc   : > { %v2665_v39 = vrot.slane %v13283_v62, 2 }
 0x3fe   : > { %8421 = vmatmul.mubr.msk.bf16.gmra.mrb[40].mxu1 %vm449_vm2, %v2648_v54  ;;  %v2667_v24 = vor.u32 %v2666_v25, %v2665_v39  ;;  %v6142_v54 = vrot.slane %v13285_v60, 1  ;;  %v10456_v39 = vld [vmem:[%s10543_s18 + $0x34] sm:$0xff]  }
 0x3ff   : > { %8424 = vmatprep.mubr.msk.bf16.mxu1 %vm10497_vm1, %v10496_v0  ;;  %v6459_v9 = vrot.slane %v10456_v39, 2 }
 0x400   : > { %v2668_v31 = vsel %vm2596_vm8, %v2663_v16, %v2667_v24  ;;  %v6144_v38 = vor.u32 %v6143_v10, %v6142_v54  ;;  %v10458_v54 = vld [vmem:[%s10543_s18 + $0x3c] sm:$0xff]  }
 0x401   : > { %v6460_v25 = vsel %vm507_vm0, %v6457_v42, %v6459_v9  ;;  %v6461_v56 = vrot.slane %v10458_v54, 2 }
 0x402   : > { %9049 = vmatmul.mubr.msk.bf16.gmra.mrb[44].mxu0 %vm449_vm2, %v6125_v35  ;;  %v13288_v35 = vshll.u32 %v12197_v33, 16  ;;  %v6145_v27 = vsel %vm1269_vm7, %v6140_v59, %v6144_v38  ;;  %v6148_v33 = vor.u32 %v6147_v17, %v6146_v4  ;;  %v10461_v4 = vld [vmem:[%s10543_s18 + $0x30] sm:$0xff]  }
 0x403   : > { %9052 = vmatprep.mubr.msk.bf16.mxu0 %vm10497_vm1, %v10496_v0  ;;  %v6462_v10 = vsel %vm507_vm0, %v6459_v9, %v6461_v56  ;;  %v2991_v22 = vrot.slane %v10461_v4, 3 }
 0x404   : > { %v2670_v21 = vrot.slane %v13288_v35, 3  ;;  %v6149_v63 = vsel %vm1269_vm7, %v6144_v38, %v6148_v33 }
 0x405   : > { %v2994_v29 = vsel %vm2981_vm3, %v2991_v22, %v2993_v6 }
 0x406   : > { %8425 = vmatmul.mubr.msk.bf16.gmra.mrb[44].mxu1 %vm449_vm2, %v2652_v49  ;;  %v2671_v1 = vor.u32 %v2670_v21, %v2669_v46  ;;  %v12768_v49 = vld [vmem:[%s10543_s18 + $0xb4] ss:$0 sps:$4 sm:$0x33]   ;;  %v10460_v46 = vld [vmem:[%s10543_s18 + $0x44] sm:$0xff]  }
 0x407   : > { %8428 = vmatprep.mubr.msk.bf16.mxu1 %vm10497_vm1, %v10496_v0  ;;  %v6151_v32 = vshrl.u32 %v12768_v49, 16  ;;  %v6154_v28 = vshll.u32 %v12768_v49, 16  ;;  %v6463_v35 = vrot.slane %v10460_v46, 2 }
 0x408   : > { %v2672_v11 = vsel %vm2596_vm8, %v2667_v24, %v2671_v1 }
 0x409   : > { %v6153_v58 = vrot.slane %v6151_v32, 1  ;;  %v6156_v47 = vrot.slane %v6154_v28, 2  ;;  %v6464_v21 = vsel %vm507_vm0, %v6461_v56, %v6463_v35  ;;  %v10465_v28 = vld [vmem:[%s10543_s18 + $0x40] sm:$0xff]  }
 0x40a   : > { %9053 = vmatmul.mubr.msk.bf16.gmra.mrb[48].mxu0 %vm449_vm2, %v6129_v14  ;;  %v12781_v14 = vld [vmem:[%s10543_s18 + $0xa0] ss:$0 sps:$4 sm:$0x77]  }
 0x40b   : > { %9056 = vmatprep.mubr.msk.bf16.mxu0 %vm10497_vm1, %v10496_v0  ;;  %v2678_v48 = vshrl.u32 %v12781_v14, 16  ;;  %v2681_v52 = vshll.u32 %v12781_v14, 16  ;;  %v6157_v20 = vor.u32 %v6156_v47, %v6153_v58  ;;  %v10466_v58 = vld [vmem:[%s10543_s18 + $0x5c] sm:$0xff]  }
 0x40c   : > { %v6469_v47 = vrot.slane %v10466_v58, 2 }
 0x40d   : > { %v2680_v50 = vrot.slane %v2678_v48, 2  ;;  %v2683_v34 = vrot.slane %v2681_v52, 3  ;;  %v6158_v15 = vsel %vm1269_vm7, %v6148_v33, %v6157_v20  ;;  %v10467_v52 = vld [vmem:[%s10543_s18 + $0x48] sm:$0xff]  }
 0x40e   : > { %8429 = vmatmul.mubr.msk.bf16.gmra.mrb[48].mxu1 %vm449_vm2, %v2656_v2  ;;  %v2676_v2 = vsel %vm2596_vm8, %v2671_v1, %v2675_v13 }
 0x40f   : > { %8432 = vmatprep.mubr.msk.bf16.mxu1 %vm10497_vm1, %v10496_v0 }
 0x412   : > { %9057 = vmatmul.mubr.msk.bf16.gmra.mrb[52].mxu0 %vm449_vm2, %v6133_v51  ;;  %v2684_v51 = vor.u32 %v2683_v34, %v2680_v50  ;;  %v10468_v50 = vld [vmem:[%s10543_s18 + $0x64] sm:$0xff]  }
 0x413   : > { %9060 = vmatprep.mubr.msk.bf16.mxu0 %vm10497_vm1, %v10496_v0  ;;  %v6471_v34 = vrot.slane %v10468_v50, 2 }
 0x414   : > { %v2685_v30 = vsel %vm2596_vm8, %v2675_v13, %v2684_v51 }
 0x415   : > { %v6472_v8 = vsel %vm507_vm0, %v6469_v47, %v6471_v34 }
 0x416   : > { %8433 = vmatmul.mubr.msk.bf16.gmra.mrb[52].mxu1 %vm449_vm2, %v2660_v37  ;;  %v10451_v37 = vld [vmem:[%s10543_s18 + $0x24] sm:$0xff]  }
 0x417   : > { %8436 = vmatprep.mubr.msk.bf16.mxu1 %vm10497_vm1, %v10496_v0  ;;  %v6455_v41 = vrot.slane %v10451_v37, 2 }
 0x419   : > { %v6456_v18 = vsel %vm507_vm0, %v6454_v55, %v6455_v41  ;;  %v6458_v53 = vsel %vm507_vm0, %v6455_v41, %v6457_v42  ;;  %v10471_v55 = vld [vmem:[%s10543_s18 + $0x58] sm:$0xff]  }
 0x41a   : > { %9061 = vmatmul.mubr.msk.bf16.gmra.mrb[56].mxu0 %vm449_vm2, %v6137_v45  ;;  %v10453_v45 = vld [vmem:[%s10543_s18 + $0x10] sm:$0xff]   ;;  %v3001_v37 = vrot.slane %v10471_v55, 3 }
 0x41b   : > { %9064 = vmatprep.mubr.msk.bf16.mxu0 %vm10497_vm1, %v10496_v0  ;;  %v2983_v16 = vrot.slane %v10453_v45, 3 }
 0x41d   : > { %v2984_v3 = vsel %vm2981_vm3, %v2982_v57, %v2983_v16  ;;  %v10473_v57 = vld [vmem:[%s10543_s18 + $0x60] sm:$0xff]  }
 0x41e   : > { %8437 = vmatmul.mubr.msk.bf16.gmra.mrb[56].mxu1 %vm449_vm2, %v2664_v40  ;;  %v10455_v40 = vld [vmem:[%s10543_s18 + $0x18] sm:$0xff]   ;;  %v3003_v45 = vrot.slane %v10473_v57, 3 }
 0x41f   : > { %8440 = vmatprep.mubr.msk.bf16.mxu1 %vm10497_vm1, %v10496_v0  ;;  %v2985_v59 = vrot.slane %v10455_v40, 3 }
 0x421   : > { %v2986_v62 = vsel %vm2981_vm3, %v2983_v16, %v2985_v59  ;;  %v3004_v16 = vsel %vm2981_vm3, %v3001_v37, %v3003_v45 }
 0x422   : > { %9065 = vmatmul.mubr.msk.bf16.gmra.mrb[60].mxu0 %vm449_vm2, %v6141_v36  ;;  %v10457_v36 = vld [vmem:[%s10543_s18 + $0x20] sm:$0xff]  }
 0x423   : > { %9068 = vmatprep.mubr.msk.bf16.mxu0 %vm10497_vm1, %v10496_v0  ;;  %v2987_v24 = vrot.slane %v10457_v36, 3 }
 0x425   : > { %v2988_v60 = vsel %vm2981_vm3, %v2985_v59, %v2987_v24 }
 0x426   : > { %8441 = vmatmul.mubr.msk.bf16.gmra.mrb[60].mxu1 %vm449_vm2, %v2668_v31  ;;  %v10459_v31 = vld [vmem:[%s10543_s18 + $0x28] sm:$0xff]  }
 0x427   : > { %8444 = vmatprep.mubr.msk.bf16.mxu1 %vm10497_vm1, %v10496_v0  ;;  %v2989_v38 = vrot.slane %v10459_v31, 3 }
 0x429   : > { %v2990_v61 = vsel %vm2981_vm3, %v2987_v24, %v2989_v38  ;;  %v2992_v17 = vsel %vm2981_vm3, %v2989_v38, %v2991_v22 }
 0x42a   : > { %9069 = vmatmul.mubr.msk.bf16.gmra.mrb[64].mxu0 %vm449_vm2, %v6145_v27  ;;  %v10462_v27 = vld [vmem:[%s10543_s18 + $0x4c] sm:$0xff]  }
 0x42b   : > { %9072 = vmatprep.mubr.msk.bf16.mxu0 %vm10497_vm1, %v10496_v0  ;;  %v6465_v1 = vrot.slane %v10462_v27, 2 }
 0x42d   : > { %v6466_v33 = vsel %vm507_vm0, %v6463_v35, %v6465_v1 }
 0x42e   : > { %8445 = vmatmul.mubr.msk.bf16.gmra.mrb[64].mxu1 %vm449_vm2, %v2672_v11  ;;  %v6467_v11 = vrot.slane %v10464_v7, 2 }
 0x42f   : > { %8448 = vmatprep.mubr.msk.bf16.mxu1 %vm10497_vm1, %v10496_v0 }
 0x430   : > { %v6468_v32 = vsel %vm507_vm0, %v6465_v1, %v6467_v11  ;;  %v6470_v48 = vsel %vm507_vm0, %v6467_v11, %v6469_v47 }
 0x432   : > { %9073 = vmatmul.mubr.msk.bf16.gmra.mrb[68].mxu0 %vm449_vm2, %v6149_v63  ;;  %v2995_v63 = vrot.slane %v10465_v28, 3 }
 0x433   : > { %9076 = vmatprep.mubr.msk.bf16.mxu0 %vm10497_vm1, %v10496_v0 }
 0x434   : > { %v2996_v13 = vsel %vm2981_vm3, %v2993_v6, %v2995_v63 }
 0x436   : > { %8449 = vmatmul.mubr.msk.bf16.gmra.mrb[68].mxu1 %vm449_vm2, %v2676_v2  ;;  %v2997_v2 = vrot.slane %v10467_v52, 3 }
 0x437   : > { %8452 = vmatprep.mubr.msk.bf16.mxu1 %vm10497_vm1, %v10496_v0 }
 0x438   : > { %v2998_v20 = vsel %vm2981_vm3, %v2995_v63, %v2997_v2 }
 0x43a   : > { %9077 = vmatmul.mubr.msk.bf16.gmra.mrb[72].mxu0 %vm449_vm2, %v6158_v15  ;;  %v10469_v15 = vld [vmem:[%s10543_s18 + $0x50] sm:$0xff]  }
 0x43b   : > { %9082 = vmatprep.mubr.msk.bf16.mxu0 %vm10497_vm1, %v10496_v0  ;;  %v2999_v51 = vrot.slane %v10469_v15, 3 }
 0x43d   : > { %v3000_v12 = vsel %vm2981_vm3, %v2997_v2, %v2999_v51  ;;  %v3002_v41 = vsel %vm2981_vm3, %v2999_v51, %v3001_v37 }
 0x43e   : > { %8453 = vmatmul.mubr.msk.bf16.gmra.mrb[72].mxu1 %vm449_vm2, %v2685_v30  ;;  %v6474_v30 = vsel %vm507_vm0, %v6471_v34, %v6473_v43  ;;  %v3019_v34 = vrot.slane %v12781_v14, 3 }
 0x43f   : > { %8458 = vmatprep.mubr.msk.bf16.mxu1 %vm10497_vm1, %v10496_v0 }
 0x442   : > { %9083 = vmatmul.mubr.msk.bf16.vlgmr.msra.gmra.mrb[0].mxu0 %vm449_vm2, %v6456_v18  ;;  %v6476_v18 = vsel %vm507_vm0, %v6473_v43, %v6475_v26 }
 0x443   : > { %9086 = vmatprep.mubr.msk.bf16.mxu0 %vm10497_vm1, %v10496_v0 }
 0x446   : > { %8459 = vmatmul.mubr.msk.bf16.vlgmr.msra.gmra.mrb[0].mxu1 %vm449_vm2, %v2984_v3  ;;  %v10474_v3 = vld [vmem:[%s10543_s18 + $0x7c] sm:$0xff]  }
 0x447   : > { %8462 = vmatprep.mubr.msk.bf16.mxu1 %vm10497_vm1, %v10496_v0  ;;  %v6477_v5 = vrot.slane %v10474_v3, 2 }
 0x449   : > { %v6478_v42 = vsel %vm507_vm0, %v6475_v26, %v6477_v5 }
 0x44a   : > { %9087 = vmatmul.mubr.msk.bf16.gmra.mrb[4].mxu0 %vm449_vm2, %v6458_v53  ;;  %v10475_v53 = vld [vmem:[%s10543_s18 + $0x68] sm:$0xff]  }
 0x44b   : > { %9090 = vmatprep.mubr.msk.bf16.mxu0 %vm10497_vm1, %v10496_v0  ;;  %v3005_v40 = vrot.slane %v10475_v53, 3 }
 0x44d   : > { %v3006_v59 = vsel %vm2981_vm3, %v3003_v45, %v3005_v40 }
 0x44e   : > { %8463 = vmatmul.mubr.msk.bf16.gmra.mrb[4].mxu1 %vm449_vm2, %v2986_v62  ;;  %v10476_v62 = vld [vmem:[%s10543_s18 + $0x84] sm:$0xff]  }
 0x44f   : > { %8466 = vmatprep.mubr.msk.bf16.mxu1 %vm10497_vm1, %v10496_v0  ;;  %v6479_v39 = vrot.slane %v10476_v62, 2 }
 0x451   : > { %v6480_v9 = vsel %vm507_vm0, %v6477_v5, %v6479_v39 }
 0x452   : > { %9091 = vmatmul.mubr.msk.bf16.gmra.mrb[8].mxu0 %vm449_vm2, %v6460_v25  ;;  %v10477_v25 = vld [vmem:[%s10543_s18 + $0x70] sm:$0xff]  }
 0x453   : > { %9094 = vmatprep.mubr.msk.bf16.mxu0 %vm10497_vm1, %v10496_v0  ;;  %v3007_v36 = vrot.slane %v10477_v25, 3 }
 0x455   : > { %v3008_v24 = vsel %vm2981_vm3, %v3005_v40, %v3007_v36 }
 0x456   : > { %8467 = vmatmul.mubr.msk.bf16.gmra.mrb[8].mxu1 %vm449_vm2, %v2988_v60  ;;  %v10478_v60 = vld [vmem:[%s10543_s18 + $0x8c] sm:$0xff]  }
 0x457   : > { %8470 = vmatprep.mubr.msk.bf16.mxu1 %vm10497_vm1, %v10496_v0  ;;  %v6481_v54 = vrot.slane %v10478_v60, 2 }
 0x459   : > { %v6482_v56 = vsel %vm507_vm0, %v6479_v39, %v6481_v54 }
 0x45a   : > { %9095 = vmatmul.mubr.msk.bf16.gmra.mrb[12].mxu0 %vm449_vm2, %v6462_v10  ;;  %v10479_v10 = vld [vmem:[%s10543_s18 + $0x78] sm:$0xff]  }
 0x45b   : > { %9098 = vmatprep.mubr.msk.bf16.mxu0 %vm10497_vm1, %v10496_v0  ;;  %v3009_v31 = vrot.slane %v10479_v10, 3 }
 0x45d   : > { %v3010_v38 = vsel %vm2981_vm3, %v3007_v36, %v3009_v31 }
 0x45e   : > { %8471 = vmatmul.mubr.msk.bf16.gmra.mrb[12].mxu1 %vm449_vm2, %v2990_v61  ;;  %v10480_v61 = vld [vmem:[%s10543_s18 + $0x94] sm:$0xff]  }
 0x45f   : > { %8474 = vmatprep.mubr.msk.bf16.mxu1 %vm10497_vm1, %v10496_v0  ;;  %v6483_v46 = vrot.slane %v10480_v61, 2 }
 0x461   : > { %v6484_v35 = vsel %vm507_vm0, %v6481_v54, %v6483_v46 }
 0x462   : > { %9099 = vmatmul.mubr.msk.bf16.gmra.mrb[16].mxu0 %vm449_vm2, %v6464_v21  ;;  %v10481_v21 = vld [vmem:[%s10543_s18 + $0x80] sm:$0xff]  }
 0x463   : > { %9102 = vmatprep.mubr.msk.bf16.mxu0 %vm10497_vm1, %v10496_v0  ;;  %v3011_v4 = vrot.slane %v10481_v21, 3 }
 0x465   : > { %v3012_v22 = vsel %vm2981_vm3, %v3009_v31, %v3011_v4 }
 0x466   : > { %8475 = vmatmul.mubr.msk.bf16.gmra.mrb[16].mxu1 %vm449_vm2, %v2992_v17  ;;  %v10482_v17 = vld [vmem:[%s10543_s18 + $0x9c] sm:$0xff]  }
 0x467   : > { %8478 = vmatprep.mubr.msk.bf16.mxu1 %vm10497_vm1, %v10496_v0  ;;  %v6485_v27 = vrot.slane %v10482_v17, 2 }
 0x469   : > { %v6486_v1 = vsel %vm507_vm0, %v6483_v46, %v6485_v27 }
 0x46a   : > { %9103 = vmatmul.mubr.msk.bf16.gmra.mrb[20].mxu0 %vm449_vm2, %v6466_v33  ;;  %v10483_v33 = vld [vmem:[%s10543_s18 + $0x88] sm:$0xff]  }
 0x46b   : > { %9106 = vmatprep.mubr.msk.bf16.mxu0 %vm10497_vm1, %v10496_v0  ;;  %v3013_v19 = vrot.slane %v10483_v33, 3 }
 0x46d   : > { %v3014_v6 = vsel %vm2981_vm3, %v3011_v4, %v3013_v19 }
 0x46e   : > { %8479 = vmatmul.mubr.msk.bf16.gmra.mrb[20].mxu1 %vm449_vm2, %v2994_v29  ;;  %v10484_v29 = vld [vmem:[%s10543_s18 + $0xa4] sm:$0xff]  }
 0x46f   : > { %8482 = vmatprep.mubr.msk.bf16.mxu1 %vm10497_vm1, %v10496_v0  ;;  %v6487_v7 = vrot.slane %v10484_v29, 2 }
 0x471   : > { %v6488_v11 = vsel %vm507_vm0, %v6485_v27, %v6487_v7 }
 0x472   : > { %9107 = vmatmul.mubr.msk.bf16.gmra.mrb[24].mxu0 %vm449_vm2, %v6468_v32  ;;  %v10485_v32 = vld [vmem:[%s10543_s18 + $0x90] sm:$0xff]  }
 0x473   : > { %9110 = vmatprep.mubr.msk.bf16.mxu0 %vm10497_vm1, %v10496_v0  ;;  %v3015_v28 = vrot.slane %v10485_v32, 3 }
 0x475   : > { %v3016_v63 = vsel %vm2981_vm3, %v3013_v19, %v3015_v28 }
 0x476   : > { %8483 = vmatmul.mubr.msk.bf16.gmra.mrb[24].mxu1 %vm449_vm2, %v2996_v13  ;;  %v10486_v13 = vld [vmem:[%s10543_s18 + $0xac] sm:$0xff]  }
 0x477   : > { %8486 = vmatprep.mubr.msk.bf16.mxu1 %vm10497_vm1, %v10496_v0  ;;  %v6489_v58 = vrot.slane %v10486_v13, 2 }
 0x479   : > { %v6490_v47 = vsel %vm507_vm0, %v6487_v7, %v6489_v58 }
 0x47a   : > { %9111 = vmatmul.mubr.msk.bf16.gmra.mrb[28].mxu0 %vm449_vm2, %v6470_v48  ;;  %v10487_v48 = vld [vmem:[%s10543_s18 + $0x98] sm:$0xff]   ;;  %s10261_s18 = smul.u32 152, %s13293_s10 }
 0x47b   : > { %9114 = vmatprep.mubr.msk.bf16.mxu0 %vm10497_vm1, %v10496_v0  ;;  %v3017_v52 = vrot.slane %v10487_v48, 3 }
 0x47c   : > { %s12998_s24 = scalar_lea.vmem %s13081_s2, %s10261_s18 }
 0x47d   : > { %v3018_v2 = vsel %vm2981_vm3, %v3015_v28, %v3017_v52 }
 0x47e   : > { %8487 = vmatmul.mubr.msk.bf16.gmra.mrb[28].mxu1 %vm449_vm2, %v2998_v20  ;;  %v6491_v20 = vrot.slane %v12768_v49, 2 }
 0x47f   : > { %8490 = vmatprep.mubr.msk.bf16.mxu1 %vm10497_vm1, %v10496_v0 }
 0x480   : > { %v6492_v50 = vsel %vm507_vm0, %v6489_v58, %v6491_v20 }
 0x482   : > { %9115 = vmatmul.mubr.msk.bf16.gmra.mrb[32].mxu0 %vm449_vm2, %v6472_v8  ;;  %v3020_v8 = vsel %vm2981_vm3, %v3017_v52, %v3019_v34 }
 0x483   : > { %9118 = vmatprep.mubr.msk.bf16.mxu0 %vm10497_vm1, %v10496_v0 }
 0x486   : > { %8491 = vmatmul.mubr.msk.bf16.gmra.mrb[32].mxu1 %vm449_vm2, %v3000_v12 }
 0x487   : > { %8494 = vmatprep.mubr.msk.bf16.mxu1 %vm10497_vm1, %v10496_v0 }
 0x48a   : > { %9119 = vmatmul.mubr.msk.bf16.gmra.mrb[36].mxu0 %vm449_vm2, %v6474_v30 }
 0x48b   : > { %9122 = vmatprep.mubr.msk.bf16.mxu0 %vm10497_vm1, %v10496_v0 }
 0x48e   : > { %8495 = vmatmul.mubr.msk.bf16.gmra.mrb[36].mxu1 %vm449_vm2, %v3002_v41 }
 0x48f   : > { %8498 = vmatprep.mubr.msk.bf16.mxu1 %vm10497_vm1, %v10496_v0 }
 0x492   : > { %9123 = vmatmul.mubr.msk.bf16.gmra.mrb[40].mxu0 %vm449_vm2, %v6476_v18 }
 0x493   : > { %9126 = vmatprep.mubr.msk.bf16.mxu0 %vm10497_vm1, %v10496_v0 }
 0x496   : > { %8499 = vmatmul.mubr.msk.bf16.gmra.mrb[40].mxu1 %vm449_vm2, %v3004_v16 }
 0x497   : > { %8502 = vmatprep.mubr.msk.bf16.mxu1 %vm10497_vm1, %v10496_v0 }
 0x49a   : > { %9127 = vmatmul.mubr.msk.bf16.gmra.mrb[44].mxu0 %vm449_vm2, %v6478_v42 }
 0x49b   : > { %9130 = vmatprep.mubr.msk.bf16.mxu0 %vm10497_vm1, %v10496_v0 }
 0x49e   : > { %8503 = vmatmul.mubr.msk.bf16.gmra.mrb[44].mxu1 %vm449_vm2, %v3006_v59 }
 0x49f   : > { %8506 = vmatprep.mubr.msk.bf16.mxu1 %vm10497_vm1, %v10496_v0 }
 0x4a2   : > { %9131 = vmatmul.mubr.msk.bf16.gmra.mrb[48].mxu0 %vm449_vm2, %v6480_v9 }
 0x4a3   : > { %9134 = vmatprep.mubr.msk.bf16.mxu0 %vm10497_vm1, %v10496_v0 }
 0x4a6   : > { %8507 = vmatmul.mubr.msk.bf16.gmra.mrb[48].mxu1 %vm449_vm2, %v3008_v24 }
 0x4a7   : > { %8510 = vmatprep.mubr.msk.bf16.mxu1 %vm10497_vm1, %v10496_v0 }
 0x4aa   : > { %9135 = vmatmul.mubr.msk.bf16.gmra.mrb[52].mxu0 %vm449_vm2, %v6482_v56 }
 0x4ab   : > { %9138 = vmatprep.mubr.msk.bf16.mxu0 %vm10497_vm1, %v10496_v0 }
 0x4ae   : > { %8511 = vmatmul.mubr.msk.bf16.gmra.mrb[52].mxu1 %vm449_vm2, %v3010_v38 }
 0x4af   : > { %8514 = vmatprep.mubr.msk.bf16.mxu1 %vm10497_vm1, %v10496_v0 }
 0x4b2   : > { %9139 = vmatmul.mubr.msk.bf16.gmra.mrb[56].mxu0 %vm449_vm2, %v6484_v35 }
 0x4b3   : > { %9142 = vmatprep.mubr.msk.bf16.mxu0 %vm10497_vm1, %v10496_v0 }
 0x4b6   : > { %8515 = vmatmul.mubr.msk.bf16.gmra.mrb[56].mxu1 %vm449_vm2, %v3012_v22 }
 0x4b7   : > { %8518 = vmatprep.mubr.msk.bf16.mxu1 %vm10497_vm1, %v10496_v0 }
 0x4ba   : > { %9143 = vmatmul.mubr.msk.bf16.gmra.mrb[60].mxu0 %vm449_vm2, %v6486_v1 }
 0x4bb   : > { %9146 = vmatprep.mubr.msk.bf16.mxu0 %vm10497_vm1, %v10496_v0 }
 0x4be   : > { %8519 = vmatmul.mubr.msk.bf16.gmra.mrb[60].mxu1 %vm449_vm2, %v3014_v6 }
 0x4bf   : > { %8522 = vmatprep.mubr.msk.bf16.mxu1 %vm10497_vm1, %v10496_v0 }
 0x4c2   : > { %9147 = vmatmul.mubr.msk.bf16.gmra.mrb[64].mxu0 %vm449_vm2, %v6488_v11 }
 0x4c3   : > { %9150 = vmatprep.mubr.msk.bf16.mxu0 %vm10497_vm1, %v10496_v0 }
 0x4c6   : > { %8523 = vmatmul.mubr.msk.bf16.gmra.mrb[64].mxu1 %vm449_vm2, %v3016_v63 }
 0x4c7   : > { %8526 = vmatprep.mubr.msk.bf16.mxu1 %vm10497_vm1, %v10496_v0 }
 0x4ca   : > { %9151 = vmatmul.mubr.msk.bf16.gmra.mrb[68].mxu0 %vm449_vm2, %v6490_v47 }
 0x4cb   : > { %9154 = vmatprep.mubr.msk.bf16.mxu0 %vm10497_vm1, %v10496_v0 }
 0x4ce   : > { %8527 = vmatmul.mubr.msk.bf16.gmra.mrb[68].mxu1 %vm449_vm2, %v3018_v2 }
 0x4cf   : > { %8530 = vmatprep.mubr.msk.bf16.mxu1 %vm10497_vm1, %v10496_v0 }
 0x4d2   : > { %9155 = vmatmul.mubr.msk.bf16.gmra.mrb[72].mxu0 %vm449_vm2, %v6492_v50 }
 0x4d6   : > { %8531 = vmatmul.mubr.msk.bf16.gmra.mrb[72].mxu1 %vm449_vm2, %v3020_v8 }
 0x515   : > { %v6592_v15 = vpop.f32.mrb[0].mxu0 }
 0x516   : > { %v9084_v51 = vpop.f32.mrb[1].mxu0 }
 0x517   : > { %v6595_v12 = vpop.f32.mrb[2].mxu0 }
 0x518   : > { %v9085_v49 = vpop.f32.mrb[3].mxu0 }
 0x519   : > { %v3120_v44 = vpop.f32.mrb[0].mxu1 }
 0x51a   : > { %v9158_v43 = vadd.f32 %v6592_v15, %v3120_v44  ;;  %v8460_v30 = vpop.f32.mrb[1].mxu1 }
 0x51b   : > { %v3123_v0 = vpop.f32.mrb[2].mxu1 }
 0x51c   : > { %v7552_v14 = vpack.c.bf16 %v9158_v43, %v9158_v43  ;;  %v9159_v55 = vadd.f32 %v6595_v12, %v3123_v0  ;;  %v8461_v37 = vpop.f32.mrb[3].mxu1 }
 0x51d   : > { %v6600_v41 = vpop.f32.mrb[4].mxu0 }
 0x51e   : > { %6934 = vst.msk [vmem:[%s12998_s24] sm:$0xf] %vm6933_vm9, %v7552_v14  ;;  %v7553_v23 = vpack.c.bf16 %v9159_v55, %v9159_v55  ;;  %v9088_v26 = vpop.f32.mrb[5].mxu0 }
 0x51f   : > { %v6603_v18 = vpop.f32.mrb[6].mxu0 }
 0x520   : > { %6935 = vst.msk [vmem:[%s12998_s24 + $0x4] sm:$0xf] %vm6933_vm9, %v7553_v23  ;;  %v9089_v57 = vpop.f32.mrb[7].mxu0 }
 0x521   : > { %v3128_v45 = vpop.f32.mrb[4].mxu1 }
 0x522   : > { %v9160_v16 = vadd.f32 %v6600_v41, %v3128_v45  ;;  %v8464_v3 = vpop.f32.mrb[5].mxu1 }
 0x523   : > { %v3131_v5 = vpop.f32.mrb[6].mxu1 }
 0x524   : > { %v7554_v42 = vpack.c.bf16 %v9160_v16, %v9160_v16  ;;  %v9161_v53 = vadd.f32 %v6603_v18, %v3131_v5  ;;  %v8465_v40 = vpop.f32.mrb[7].mxu1 }
 0x525   : > { %v6608_v59 = vpop.f32.mrb[8].mxu0 }
 0x526   : > { %6936 = vst.msk [vmem:[%s12998_s24 + $0x8] sm:$0xf] %vm6933_vm9, %v7554_v42  ;;  %v7555_v62 = vpack.c.bf16 %v9161_v53, %v9161_v53  ;;  %v9092_v39 = vpop.f32.mrb[9].mxu0 }
 0x527   : > { %v6611_v9 = vpop.f32.mrb[10].mxu0 }
 0x528   : > { %6937 = vst.msk [vmem:[%s12998_s24 + $0xc] sm:$0xf] %vm6933_vm9, %v7555_v62  ;;  %v9093_v25 = vpop.f32.mrb[11].mxu0 }
 0x529   : > { %v3136_v36 = vpop.f32.mrb[8].mxu1 }
 0x52a   : > { %v9162_v24 = vadd.f32 %v6608_v59, %v3136_v36  ;;  %v8468_v60 = vpop.f32.mrb[9].mxu1 }
 0x52b   : > { %v3139_v54 = vpop.f32.mrb[10].mxu1 }
 0x52c   : > { %v7556_v56 = vpack.c.bf16 %v9162_v24, %v9162_v24  ;;  %v9163_v10 = vadd.f32 %v6611_v9, %v3139_v54  ;;  %v8469_v31 = vpop.f32.mrb[11].mxu1 }
 0x52d   : > { %v6616_v38 = vpop.f32.mrb[12].mxu0 }
 0x52e   : > { %6938 = vst.msk [vmem:[%s12998_s24 + $0x10] sm:$0xf] %vm6933_vm9, %v7556_v56  ;;  %v7557_v61 = vpack.c.bf16 %v9163_v10, %v9163_v10  ;;  %v9096_v46 = vpop.f32.mrb[13].mxu0 }
 0x52f   : > { %v6619_v35 = vpop.f32.mrb[14].mxu0 }
 0x530   : > { %6939 = vst.msk [vmem:[%s12998_s24 + $0x14] sm:$0xf] %vm6933_vm9, %v7557_v61  ;;  %v9097_v21 = vpop.f32.mrb[15].mxu0 }
 0x531   : > { %v3144_v4 = vpop.f32.mrb[12].mxu1 }
 0x532   : > { %v9164_v22 = vadd.f32 %v6616_v38, %v3144_v4  ;;  %v8472_v17 = vpop.f32.mrb[13].mxu1 }
 0x533   : > { %v3147_v27 = vpop.f32.mrb[14].mxu1 }
 0x534   : > { %v7558_v1 = vpack.c.bf16 %v9164_v22, %v9164_v22  ;;  %v9165_v33 = vadd.f32 %v6619_v35, %v3147_v27  ;;  %v8473_v19 = vpop.f32.mrb[15].mxu1 }
 0x535   : > { %v6624_v6 = vpop.f32.mrb[16].mxu0 }
 0x536   : > { %6940 = vst.msk [vmem:[%s12998_s24 + $0x18] sm:$0xf] %vm6933_vm9, %v7558_v1  ;;  %v7559_v29 = vpack.c.bf16 %v9165_v33, %v9165_v33  ;;  %v9100_v7 = vpop.f32.mrb[17].mxu0 }
 0x537   : > { %v6627_v11 = vpop.f32.mrb[18].mxu0 }
 0x538   : > { %6941 = vst.msk [vmem:[%s12998_s24 + $0x1c] sm:$0xf] %vm6933_vm9, %v7559_v29  ;;  %v9101_v32 = vpop.f32.mrb[19].mxu0 }
 0x539   : > { %v3152_v28 = vpop.f32.mrb[16].mxu1 }
 0x53a   : > { %v9166_v63 = vadd.f32 %v6624_v6, %v3152_v28  ;;  %v8476_v13 = vpop.f32.mrb[17].mxu1 }
 0x53b   : > { %v3155_v58 = vpop.f32.mrb[18].mxu1 }
 0x53c   : > { %v7560_v47 = vpack.c.bf16 %v9166_v63, %v9166_v63  ;;  %v9167_v48 = vadd.f32 %v6627_v11, %v3155_v58  ;;  %v8477_v52 = vpop.f32.mrb[19].mxu1 }
 0x53d   : > { %v6632_v2 = vpop.f32.mrb[20].mxu0 }
 0x53e   : > { %6942 = vst.msk [vmem:[%s12998_s24 + $0x20] sm:$0xf] %vm6933_vm9, %v7560_v47  ;;  %v7561_v20 = vpack.c.bf16 %v9167_v48, %v9167_v48  ;;  %v9104_v50 = vpop.f32.mrb[21].mxu0 }
 0x53f   : > { %v6635_v34 = vpop.f32.mrb[22].mxu0 }
 0x540   : > { %6943 = vst.msk [vmem:[%s12998_s24 + $0x24] sm:$0xf] %vm6933_vm9, %v7561_v20  ;;  %v9105_v8 = vpop.f32.mrb[23].mxu0 }
 0x541   : > { %v3160_v15 = vpop.f32.mrb[20].mxu1 }
 0x542   : > { %v9168_v51 = vadd.f32 %v6632_v2, %v3160_v15  ;;  %v8480_v12 = vpop.f32.mrb[21].mxu1 }
 0x543   : > { %v3163_v49 = vpop.f32.mrb[22].mxu1 }
 0x544   : > { %v7562_v44 = vpack.c.bf16 %v9168_v51, %v9168_v51  ;;  %v9169_v43 = vadd.f32 %v6635_v34, %v3163_v49  ;;  %v8481_v30 = vpop.f32.mrb[23].mxu1 }
 0x545   : > { %v6640_v0 = vpop.f32.mrb[24].mxu0 }
 0x546   : > { %6944 = vst.msk [vmem:[%s12998_s24 + $0x28] sm:$0xf] %vm6933_vm9, %v7562_v44  ;;  %v7563_v14 = vpack.c.bf16 %v9169_v43, %v9169_v43  ;;  %v9108_v55 = vpop.f32.mrb[25].mxu0 }
 0x547   : > { %v6643_v37 = vpop.f32.mrb[26].mxu0 }
 0x548   : > { %6945 = vst.msk [vmem:[%s12998_s24 + $0x2c] sm:$0xf] %vm6933_vm9, %v7563_v14  ;;  %v9109_v41 = vpop.f32.mrb[27].mxu0 }
 0x549   : > { %v3168_v23 = vpop.f32.mrb[24].mxu1 }
 0x54a   : > { %v9170_v26 = vadd.f32 %v6640_v0, %v3168_v23  ;;  %v8484_v18 = vpop.f32.mrb[25].mxu1 }
 0x54b   : > { %v3171_v57 = vpop.f32.mrb[26].mxu1 }
 0x54c   : > { %v7564_v45 = vpack.c.bf16 %v9170_v26, %v9170_v26  ;;  %v9171_v16 = vadd.f32 %v6643_v37, %v3171_v57  ;;  %v8485_v3 = vpop.f32.mrb[27].mxu1 }
 0x54d   : > { %v6648_v5 = vpop.f32.mrb[28].mxu0 }
 0x54e   : > { %6946 = vst.msk [vmem:[%s12998_s24 + $0x30] sm:$0xf] %vm6933_vm9, %v7564_v45  ;;  %v7565_v42 = vpack.c.bf16 %v9171_v16, %v9171_v16  ;;  %v9112_v53 = vpop.f32.mrb[29].mxu0 }
 0x54f   : > { %v6651_v40 = vpop.f32.mrb[30].mxu0 }
 0x550   : > { %6947 = vst.msk [vmem:[%s12998_s24 + $0x34] sm:$0xf] %vm6933_vm9, %v7565_v42  ;;  %v9113_v59 = vpop.f32.mrb[31].mxu0 }
 0x551   : > { %v3176_v62 = vpop.f32.mrb[28].mxu1 }
 0x552   : > { %v9172_v39 = vadd.f32 %v6648_v5, %v3176_v62  ;;  %v8488_v9 = vpop.f32.mrb[29].mxu1 }
 0x553   : > { %v3179_v25 = vpop.f32.mrb[30].mxu1 }
 0x554   : > { %v7566_v36 = vpack.c.bf16 %v9172_v39, %v9172_v39  ;;  %v9173_v24 = vadd.f32 %v6651_v40, %v3179_v25  ;;  %v8489_v60 = vpop.f32.mrb[31].mxu1 }
 0x555   : > { %v6656_v54 = vpop.f32.mrb[32].mxu0 }
 0x556   : > { %6948 = vst.msk [vmem:[%s12998_s24 + $0x38] sm:$0xf] %vm6933_vm9, %v7566_v36  ;;  %v7567_v56 = vpack.c.bf16 %v9173_v24, %v9173_v24  ;;  %v9116_v10 = vpop.f32.mrb[33].mxu0 }
 0x557   : > { %v6659_v31 = vpop.f32.mrb[34].mxu0 }
 0x558   : > { %6949 = vst.msk [vmem:[%s12998_s24 + $0x3c] sm:$0xf] %vm6933_vm9, %v7567_v56  ;;  %v9117_v38 = vpop.f32.mrb[35].mxu0 }
 0x559   : > { %v3184_v61 = vpop.f32.mrb[32].mxu1 }
 0x55a   : > { %v9174_v46 = vadd.f32 %v6656_v54, %v3184_v61  ;;  %v8492_v35 = vpop.f32.mrb[33].mxu1 }
 0x55b   : > { %v3187_v21 = vpop.f32.mrb[34].mxu1 }
 0x55c   : > { %v7568_v4 = vpack.c.bf16 %v9174_v46, %v9174_v46  ;;  %v9175_v22 = vadd.f32 %v6659_v31, %v3187_v21  ;;  %v8493_v17 = vpop.f32.mrb[35].mxu1 }
 0x55d   : > { %v6664_v27 = vpop.f32.mrb[36].mxu0 }
 0x55e   : > { %6950 = vst.msk [vmem:[%s12998_s24 + $0x40] sm:$0xf] %vm6933_vm9, %v7568_v4  ;;  %v7569_v1 = vpack.c.bf16 %v9175_v22, %v9175_v22  ;;  %v9120_v33 = vpop.f32.mrb[37].mxu0 }
 0x55f   : > { %v6667_v19 = vpop.f32.mrb[38].mxu0 }
 0x560   : > { %6951 = vst.msk [vmem:[%s12998_s24 + $0x44] sm:$0xf] %vm6933_vm9, %v7569_v1  ;;  %v9121_v6 = vpop.f32.mrb[39].mxu0 }
 0x561   : > { %v3192_v29 = vpop.f32.mrb[36].mxu1 }
 0x562   : > { %v9176_v7 = vadd.f32 %v6664_v27, %v3192_v29  ;;  %v8496_v11 = vpop.f32.mrb[37].mxu1 }
 0x563   : > { %v3195_v32 = vpop.f32.mrb[38].mxu1 }
 0x564   : > { %v7570_v28 = vpack.c.bf16 %v9176_v7, %v9176_v7  ;;  %v9177_v63 = vadd.f32 %v6667_v19, %v3195_v32  ;;  %v8497_v13 = vpop.f32.mrb[39].mxu1 }
 0x565   : > { %v6672_v58 = vpop.f32.mrb[40].mxu0 }
 0x566   : > { %6952 = vst.msk [vmem:[%s12998_s24 + $0x48] sm:$0xf] %vm6933_vm9, %v7570_v28  ;;  %v7571_v47 = vpack.c.bf16 %v9177_v63, %v9177_v63  ;;  %v9124_v48 = vpop.f32.mrb[41].mxu0 }
 0x567   : > { %v6675_v52 = vpop.f32.mrb[42].mxu0 }
 0x568   : > { %6953 = vst.msk [vmem:[%s12998_s24 + $0x4c] sm:$0xf] %vm6933_vm9, %v7571_v47  ;;  %v9125_v2 = vpop.f32.mrb[43].mxu0 }
 0x569   : > { %v3200_v20 = vpop.f32.mrb[40].mxu1 }
 0x56a   : > { %v9178_v50 = vadd.f32 %v6672_v58, %v3200_v20  ;;  %v8500_v34 = vpop.f32.mrb[41].mxu1 }
 0x56b   : > { %v3203_v8 = vpop.f32.mrb[42].mxu1 }
 0x56c   : > { %v7572_v15 = vpack.c.bf16 %v9178_v50, %v9178_v50  ;;  %v9179_v51 = vadd.f32 %v6675_v52, %v3203_v8  ;;  %v8501_v12 = vpop.f32.mrb[43].mxu1 }
 0x56d   : > { %v6680_v49 = vpop.f32.mrb[44].mxu0 }
 0x56e   : > { %6954 = vst.msk [vmem:[%s12998_s24 + $0x50] sm:$0xf] %vm6933_vm9, %v7572_v15  ;;  %v7573_v44 = vpack.c.bf16 %v9179_v51, %v9179_v51  ;;  %v9128_v43 = vpop.f32.mrb[45].mxu0 }
 0x56f   : > { %v6683_v30 = vpop.f32.mrb[46].mxu0 }
 0x570   : > { %6955 = vst.msk [vmem:[%s12998_s24 + $0x54] sm:$0xf] %vm6933_vm9, %v7573_v44  ;;  %v9129_v0 = vpop.f32.mrb[47].mxu0 }
 0x571   : > { %v3208_v14 = vpop.f32.mrb[44].mxu1 }
 0x572   : > { %v9180_v55 = vadd.f32 %v6680_v49, %v3208_v14  ;;  %v8504_v37 = vpop.f32.mrb[45].mxu1 }
 0x573   : > { %v3211_v41 = vpop.f32.mrb[46].mxu1 }
 0x574   : > { %v7574_v23 = vpack.c.bf16 %v9180_v55, %v9180_v55  ;;  %v9181_v26 = vadd.f32 %v6683_v30, %v3211_v41  ;;  %v8505_v18 = vpop.f32.mrb[47].mxu1 }
 0x575   : > { %v6688_v57 = vpop.f32.mrb[48].mxu0 }
 0x576   : > { %6956 = vst.msk [vmem:[%s12998_s24 + $0x58] sm:$0xf] %vm6933_vm9, %v7574_v23  ;;  %v7575_v45 = vpack.c.bf16 %v9181_v26, %v9181_v26  ;;  %v9132_v16 = vpop.f32.mrb[49].mxu0 }
 0x577   : > { %v6691_v3 = vpop.f32.mrb[50].mxu0 }
 0x578   : > { %6957 = vst.msk [vmem:[%s12998_s24 + $0x5c] sm:$0xf] %vm6933_vm9, %v7575_v45  ;;  %v9133_v5 = vpop.f32.mrb[51].mxu0 }
 0x579   : > { %v3216_v42 = vpop.f32.mrb[48].mxu1 }
 0x57a   : > { %v9182_v53 = vadd.f32 %v6688_v57, %v3216_v42  ;;  %v8508_v40 = vpop.f32.mrb[49].mxu1 }
 0x57b   : > { %v3219_v59 = vpop.f32.mrb[50].mxu1 }
 0x57c   : > { %v7576_v62 = vpack.c.bf16 %v9182_v53, %v9182_v53  ;;  %v9183_v39 = vadd.f32 %v6691_v3, %v3219_v59  ;;  %v8509_v9 = vpop.f32.mrb[51].mxu1 }
 0x57d   : > { %v6696_v25 = vpop.f32.mrb[52].mxu0 }
 0x57e   : > { %6958 = vst.msk [vmem:[%s12998_s24 + $0x60] sm:$0xf] %vm6933_vm9, %v7576_v62  ;;  %v7577_v36 = vpack.c.bf16 %v9183_v39, %v9183_v39  ;;  %v9136_v24 = vpop.f32.mrb[53].mxu0 }
 0x57f   : > { %v6699_v60 = vpop.f32.mrb[54].mxu0 }
 0x580   : > { %6959 = vst.msk [vmem:[%s12998_s24 + $0x64] sm:$0xf] %vm6933_vm9, %v7577_v36  ;;  %v9137_v54 = vpop.f32.mrb[55].mxu0 }
 0x581   : > { %v3224_v56 = vpop.f32.mrb[52].mxu1 }
 0x582   : > { %v9184_v10 = vadd.f32 %v6696_v25, %v3224_v56  ;;  %v8512_v31 = vpop.f32.mrb[53].mxu1 }
 0x583   : > { %v3227_v38 = vpop.f32.mrb[54].mxu1 }
 0x584   : > { %v7578_v61 = vpack.c.bf16 %v9184_v10, %v9184_v10  ;;  %v9185_v46 = vadd.f32 %v6699_v60, %v3227_v38  ;;  %v8513_v35 = vpop.f32.mrb[55].mxu1 }
 0x585   : > { %v6704_v21 = vpop.f32.mrb[56].mxu0 }
 0x586   : > { %6960 = vst.msk [vmem:[%s12998_s24 + $0x68] sm:$0xf] %vm6933_vm9, %v7578_v61  ;;  %v7579_v4 = vpack.c.bf16 %v9185_v46, %v9185_v46  ;;  %v9140_v22 = vpop.f32.mrb[57].mxu0 }
 0x587   : > { %v6707_v17 = vpop.f32.mrb[58].mxu0 }
 0x588   : > { %6961 = vst.msk [vmem:[%s12998_s24 + $0x6c] sm:$0xf] %vm6933_vm9, %v7579_v4  ;;  %v9141_v27 = vpop.f32.mrb[59].mxu0 }
 0x589   : > { %v3232_v1 = vpop.f32.mrb[56].mxu1 }
 0x58a   : > { %v9186_v33 = vadd.f32 %v6704_v21, %v3232_v1  ;;  %v8516_v19 = vpop.f32.mrb[57].mxu1 }
 0x58b   : > { %v3235_v6 = vpop.f32.mrb[58].mxu1 }
 0x58c   : > { %v7580_v29 = vpack.c.bf16 %v9186_v33, %v9186_v33  ;;  %v9187_v7 = vadd.f32 %v6707_v17, %v3235_v6  ;;  %v8517_v11 = vpop.f32.mrb[59].mxu1 }
 0x58d   : > { %v6712_v32 = vpop.f32.mrb[60].mxu0 }
 0x58e   : > { %6962 = vst.msk [vmem:[%s12998_s24 + $0x70] sm:$0xf] %vm6933_vm9, %v7580_v29  ;;  %v7581_v28 = vpack.c.bf16 %v9187_v7, %v9187_v7  ;;  %v9144_v63 = vpop.f32.mrb[61].mxu0 }
 0x58f   : > { %v6715_v13 = vpop.f32.mrb[62].mxu0 }
 0x590   : > { %6963 = vst.msk [vmem:[%s12998_s24 + $0x74] sm:$0xf] %vm6933_vm9, %v7581_v28  ;;  %v9145_v58 = vpop.f32.mrb[63].mxu0 }
 0x591   : > { %v3240_v47 = vpop.f32.mrb[60].mxu1 }
 0x592   : > { %v9188_v48 = vadd.f32 %v6712_v32, %v3240_v47  ;;  %v8520_v52 = vpop.f32.mrb[61].mxu1 }
 0x593   : > { %v3243_v2 = vpop.f32.mrb[62].mxu1 }
 0x594   : > { %v7582_v20 = vpack.c.bf16 %v9188_v48, %v9188_v48  ;;  %v9189_v50 = vadd.f32 %v6715_v13, %v3243_v2  ;;  %v8521_v34 = vpop.f32.mrb[63].mxu1 }
 0x595   : > { %v6720_v8 = vpop.f32.mrb[64].mxu0 }
 0x596   : > { %6964 = vst.msk [vmem:[%s12998_s24 + $0x78] sm:$0xf] %vm6933_vm9, %v7582_v20  ;;  %v7583_v15 = vpack.c.bf16 %v9189_v50, %v9189_v50  ;;  %v9148_v51 = vpop.f32.mrb[65].mxu0 }
 0x597   : > { %v6723_v12 = vpop.f32.mrb[66].mxu0 }
 0x598   : > { %6965 = vst.msk [vmem:[%s12998_s24 + $0x7c] sm:$0xf] %vm6933_vm9, %v7583_v15  ;;  %v9149_v49 = vpop.f32.mrb[67].mxu0 }
 0x599   : > { %v3248_v44 = vpop.f32.mrb[64].mxu1 }
 0x59a   : > { %v9190_v43 = vadd.f32 %v6720_v8, %v3248_v44  ;;  %v8524_v30 = vpop.f32.mrb[65].mxu1 }
 0x59b   : > { %v3251_v0 = vpop.f32.mrb[66].mxu1 }
 0x59c   : > { %v7584_v14 = vpack.c.bf16 %v9190_v43, %v9190_v43  ;;  %v9191_v55 = vadd.f32 %v6723_v12, %v3251_v0  ;;  %v8525_v37 = vpop.f32.mrb[67].mxu1 }
 0x59d   : > { %v6728_v41 = vpop.f32.mrb[68].mxu0 }
 0x59e   : > { %6966 = vst.msk [vmem:[%s12998_s24 + $0x80] sm:$0xf] %vm6933_vm9, %v7584_v14  ;;  %v7585_v23 = vpack.c.bf16 %v9191_v55, %v9191_v55  ;;  %v9152_v26 = vpop.f32.mrb[69].mxu0 }
 0x59f   : > { %v6731_v18 = vpop.f32.mrb[70].mxu0 }
 0x5a0   : > { %6967 = vst.msk [vmem:[%s12998_s24 + $0x84] sm:$0xf] %vm6933_vm9, %v7585_v23  ;;  %v9153_v57 = vpop.f32.mrb[71].mxu0 }
 0x5a1   : > { %v3256_v45 = vpop.f32.mrb[68].mxu1 }
 0x5a2   : > { %v9192_v16 = vadd.f32 %v6728_v41, %v3256_v45  ;;  %v8528_v3 = vpop.f32.mrb[69].mxu1 }
 0x5a3   : > { %v3259_v5 = vpop.f32.mrb[70].mxu1 }
 0x5a4   : > { %v7586_v42 = vpack.c.bf16 %v9192_v16, %v9192_v16  ;;  %v9193_v53 = vadd.f32 %v6731_v18, %v3259_v5  ;;  %v8529_v40 = vpop.f32.mrb[71].mxu1 }
 0x5a5   : > { %v6736_v59 = vpop.f32.mrb[72].mxu0 }
 0x5a6   : > { %6968 = vst.msk [vmem:[%s12998_s24 + $0x88] sm:$0xf] %vm6933_vm9, %v7586_v42  ;;  %v7587_v62 = vpack.c.bf16 %v9193_v53, %v9193_v53  ;;  %v9156_v39 = vpop.f32.mrb[73].mxu0 }
 0x5a7   : > { %v6739_v9 = vpop.f32.mrb[74].mxu0 }
 0x5a8   : > { %6969 = vst.msk [vmem:[%s12998_s24 + $0x8c] sm:$0xf] %vm6933_vm9, %v7587_v62  ;;  %v9157_v25 = vpop.f32.mrb[75].mxu0 }
 0x5a9   : > { %v3264_v36 = vpop.f32.mrb[72].mxu1 }
 0x5aa   : > { %v9194_v24 = vadd.f32 %v6736_v59, %v3264_v36  ;;  %v8532_v60 = vpop.f32.mrb[73].mxu1 }
 0x5ab   : > { %v3267_v54 = vpop.f32.mrb[74].mxu1 }
 0x5ac   : > { %v7588_v56 = vpack.c.bf16 %v9194_v24, %v9194_v24  ;;  %v9195_v10 = vadd.f32 %v6739_v9, %v3267_v54  ;;  %v8533_v31 = vpop.f32.mrb[75].mxu1 }
 0x5ae   : > { %6970 = vst.msk [vmem:[%s12998_s24 + $0x90] sm:$0xf] %vm6933_vm9, %v7588_v56  ;;  %v7589_v38 = vpack.c.bf16 %v9195_v10, %v9195_v10 }
 0x5b0   : > { %6971 = vst.msk [vmem:[%s12998_s24 + $0x94] sm:$0xf] %vm6933_vm9, %v7589_v38 }
 0x5b1 PF: > { %s12_s9 = sadd.s32 1, %s10494_s9  }
 0x5b2   : > { %p9_p4 = scmp.ge.s32.totalorder %s12_s9, 4  }
 0x5b4   :  { %11 = sbr.rel (!%p9_p4) target bundleno = 1 (0x1), region = 73 }

</bundles_post_ra>
